<compile_context>
chip_gen: v7x
topology: tpu7x:2x2x1
jax: 0.10.0
libtpu: 0.0.40
codegen_flags: <defaults>
</compile_context>

<pallas_src>
import jax
import jax.numpy as jnp
from jax.experimental import pallas as pl
from jax.experimental.pallas import tpu as pltpu


def _fused_kernel(x_ref, w1_ref, res_ref, w2_ref, bias_ref, o_ref):
    # conv1x1 #1 (BN scale already folded into w1): (C_mid, C_in) @ (C_in, TP)
    h = jnp.dot(w1_ref[...], x_ref[...], preferred_element_type=jnp.float32)
    # residual add (BN shift is folded into `bias`, applied after conv2)
    h = h + res_ref[...]
    # conv1x1 #2: (C_out, C_mid) @ (C_mid, TP)  + per-out-channel bias
    o = jnp.dot(w2_ref[...], h, preferred_element_type=jnp.float32) + bias_ref[...]
    o_ref[...] = o.astype(o_ref.dtype)


def fused_conv_bn_add_conv(x, res, w1, bn_gamma, bn_beta, bn_mean, bn_var, w2,
                           eps=1e-5, pixel_tile=128):
    """x: (N, C_in, H, W), res: (N, C_mid, H, W); w1/w2 in torch 1x1-conv layout."""
    N, C_in, H, W = x.shape
    C_mid = w1.shape[0]   # w1: (C_mid, C_in, 1, 1)
    C_out = w2.shape[0]   # w2: (C_out, C_mid, 1, 1)
    P = H * W

    # Fold BN (inference / running-stats semantics) into the conv weights.
    # TODO(synk): training-mode batch statistics not implemented; running stats used.
    inv_std = 1.0 / jnp.sqrt(bn_var + eps)
    scale = bn_gamma * inv_std                      # (C_mid,)
    shift = bn_beta - bn_mean * scale               # (C_mid,)

    w1m = w1.reshape(C_mid, C_in).astype(jnp.float32)
    w2m = w2.reshape(C_out, C_mid).astype(jnp.float32)
    w1s = w1m * scale[:, None]                      # BN scale folded into conv1 weights
    bias = (w2m @ shift).reshape(C_out, 1)          # BN shift pushed through conv2

    # Channel-major layout: free reshapes, no transposes, no pads.
    x3 = x.reshape(N, C_in, P)
    r3 = res.reshape(N, C_mid, P)

    tp = min(pixel_tile, P)
    grid = (N, pl.cdiv(P, tp))

    out = pl.pallas_call(
        _fused_kernel,
        out_shape=jax.ShapeDtypeStruct((N, C_out, P), x.dtype),
        grid=grid,
        in_specs=[
            pl.BlockSpec((None, C_in, tp), lambda n, p: (n, 0, p)),   # x tile
            pl.BlockSpec((C_mid, C_in), lambda n, p: (0, 0)),          # w1 (resident)
            pl.BlockSpec((None, C_mid, tp), lambda n, p: (n, 0, p)),  # residual tile
            pl.BlockSpec((C_out, C_mid), lambda n, p: (0, 0)),         # w2 (resident)
            pl.BlockSpec((C_out, 1), lambda n, p: (0, 0)),             # fused bias
        ],
        out_specs=pl.BlockSpec((None, C_out, tp), lambda n, p: (n, 0, p)),
        compiler_params=pltpu.CompilerParams(
            dimension_semantics=("parallel", "parallel")),
    )(x3, w1s, r3, w2m, bias)

    return out.reshape(N, C_out, H, W)


def _reference(x, res, w1, bn_gamma, bn_beta, bn_mean, bn_var, w2, eps=1e-5):
    # plain-JAX reference (1x1 convs as einsums), inference-mode BN
    h = jnp.einsum('nchw,oc->nohw', x, w1.reshape(w1.shape[0], w1.shape[1]))
    inv_std = 1.0 / jnp.sqrt(bn_var + eps)
    h = (h - bn_mean[None, :, None, None]) * inv_std[None, :, None, None]
    h = h * bn_gamma[None, :, None, None] + bn_beta[None, :, None, None]
    h = h + res
    return jnp.einsum('nchw,oc->nohw', h, w2.reshape(w2.shape[0], w2.shape[1]))


if __name__ == "__main__":
    key = jax.random.PRNGKey(0)
    k = jax.random.split(key, 8)

    N, H, W = 1, 14, 14
    C_in, C_mid = 816, 136   # conv2d88: 816 -> 136, conv2d89: 136 -> 816

    x261 = jax.random.normal(k[0], (N, C_in, H, W), dtype=jnp.float32)
    x249 = jax.random.normal(k[1], (N, C_mid, H, W), dtype=jnp.float32)

    w1 = jax.random.normal(k[2], (C_mid, C_in, 1, 1), dtype=jnp.float32) * 0.02
    w2 = jax.random.normal(k[3], (C_in, C_mid, 1, 1), dtype=jnp.float32) * 0.02
    bn_gamma = jax.random.normal(k[4], (C_mid,), dtype=jnp.float32) * 0.1 + 1.0
    bn_beta = jax.random.normal(k[5], (C_mid,), dtype=jnp.float32) * 0.1
    bn_mean = jax.random.normal(k[6], (C_mid,), dtype=jnp.float32) * 0.1
    bn_var = jnp.abs(jax.random.normal(k[7], (C_mid,), dtype=jnp.float32)) * 0.1 + 1.0

    out = fused_conv_bn_add_conv(x261, x249, w1, bn_gamma, bn_beta,
                                 bn_mean, bn_var, w2)
    out = jax.block_until_ready(out)

    ref = _reference(x261, x249, w1, bn_gamma, bn_beta, bn_mean, bn_var, w2)
    assert out.shape == (N, C_in, H, W), out.shape
    assert jnp.allclose(out, ref, atol=1e-3, rtol=1e-3), float(
        jnp.max(jnp.abs(out - ref)))
    print("KERNEL_OK")
</pallas_src>

<mosaic_0001>
module attributes {stable_mosaic.version = 11 : i64} {
  func.func @_fused_kernel(%arg0: i32, %arg1: i32, %arg2: memref<1x816x128xf32, #tpu.memory_space<vmem>>, %arg3: memref<136x816xf32, #tpu.memory_space<vmem>>, %arg4: memref<1x136x128xf32, #tpu.memory_space<vmem>>, %arg5: memref<816x136xf32, #tpu.memory_space<vmem>>, %arg6: memref<816x1xf32, #tpu.memory_space<vmem>>, %arg7: memref<1x816x128xf32, #tpu.memory_space<vmem>>) attributes {dimension_semantics = [#tpu.dimension_semantics<parallel>, #tpu.dimension_semantics<parallel>], iteration_bounds = array<i64: 1, 2>, scalar_prefetch = 0 : i64, scratch_operands = 0 : i64, tpu.core_type = #tpu.core_type<tc>, window_params = [{transform_indices = @transform_0, window_bounds = array<i64: 1, 816, 128>}, {pipeline_mode = #tpu.pipeline_mode<synchronous>, transform_indices = @transform_1, window_bounds = array<i64: 136, 816>}, {transform_indices = @transform_2, window_bounds = array<i64: 1, 136, 128>}, {pipeline_mode = #tpu.pipeline_mode<synchronous>, transform_indices = @transform_3, window_bounds = array<i64: 816, 136>}, {pipeline_mode = #tpu.pipeline_mode<synchronous>, transform_indices = @transform_4, window_bounds = array<i64: 816, 1>}, {transform_indices = @transform_5, window_bounds = array<i64: 1, 816, 128>}]} {
    %c0 = arith.constant 0 : index
    %c0_0 = arith.constant 0 : index
    %0 = vector.load %arg3[%c0, %c0_0] : memref<136x816xf32, #tpu.memory_space<vmem>>, vector<136x816xf32>
    %c0_1 = arith.constant 0 : index
    %c0_2 = arith.constant 0 : index
    %c0_3 = arith.constant 0 : index
    %1 = vector.load %arg2[%c0_1, %c0_2, %c0_3] : memref<1x816x128xf32, #tpu.memory_space<vmem>>, vector<1x816x128xf32>
    %2 = vector.shape_cast %1 : vector<1x816x128xf32> to vector<816x128xf32>
    %cst = arith.constant dense<0.000000e+00> : vector<136x128xf32>
    %3 = tpu.matmul %0, %2, %cst {dimension_numbers = #tpu.dot_dimension_numbers<[1], [0], [0], [1], [0, 0, 1, 1], [], []>} : vector<136x816xf32>, vector<816x128xf32>, vector<136x128xf32> -> vector<136x128xf32>
    %c0_4 = arith.constant 0 : index
    %c0_5 = arith.constant 0 : index
    %c0_6 = arith.constant 0 : index
    %4 = vector.load %arg4[%c0_4, %c0_5, %c0_6] : memref<1x136x128xf32, #tpu.memory_space<vmem>>, vector<1x136x128xf32>
    %5 = vector.shape_cast %4 : vector<1x136x128xf32> to vector<136x128xf32>
    %6 = arith.addf %3, %5 : vector<136x128xf32>
    %c0_7 = arith.constant 0 : index
    %c0_8 = arith.constant 0 : index
    %7 = vector.load %arg5[%c0_7, %c0_8] : memref<816x136xf32, #tpu.memory_space<vmem>>, vector<816x136xf32>
    %cst_9 = arith.constant dense<0.000000e+00> : vector<816x128xf32>
    %8 = tpu.matmul %7, %6, %cst_9 {dimension_numbers = #tpu.dot_dimension_numbers<[1], [0], [0], [1], [0, 0, 1, 1], [], []>} : vector<816x136xf32>, vector<136x128xf32>, vector<816x128xf32> -> vector<816x128xf32>
    %c0_10 = arith.constant 0 : index
    %c0_11 = arith.constant 0 : index
    %9 = vector.load %arg6[%c0_10, %c0_11] : memref<816x1xf32, #tpu.memory_space<vmem>>, vector<816x1xf32>
    %10 = vector.broadcast %9 : vector<816x1xf32> to vector<816x128xf32>
    %11 = arith.addf %8, %10 : vector<816x128xf32>
    %c0_12 = arith.constant 0 : index
    %c0_13 = arith.constant 0 : index
    %c0_14 = arith.constant 0 : index
    %12 = vector.load %arg7[%c0_12, %c0_13, %c0_14] : memref<1x816x128xf32, #tpu.memory_space<vmem>>, vector<1x816x128xf32>
    %13 = vector.shape_cast %12 : vector<1x816x128xf32> to vector<816x128xf32>
    %14 = vector.shape_cast %11 : vector<816x128xf32> to vector<1x816x128xf32>
    tpu.vector_store %arg7[%c0_12, %c0_13, %c0_14], %14 {strides = array<i32>} : memref<1x816x128xf32, #tpu.memory_space<vmem>>, vector<1x816x128xf32>,
    return
  }
  func.func @transform_0(%arg0: i32, %arg1: i32) -> (i32, i32, i32) {
    %c0_i32 = arith.constant 0 : i32
    %c0_i32_0 = arith.constant 0 : i32
    return %arg0, %c0_i32, %arg1 : i32, i32, i32
  }
  func.func @transform_1(%arg0: i32, %arg1: i32) -> (i32, i32) {
    %c0_i32 = arith.constant 0 : i32
    %c0_i32_0 = arith.constant 0 : i32
    %c0_i32_1 = arith.constant 0 : i32
    return %c0_i32, %c0_i32_0 : i32, i32
  }
  func.func @transform_2(%arg0: i32, %arg1: i32) -> (i32, i32, i32) {
    %c0_i32 = arith.constant 0 : i32
    %c0_i32_0 = arith.constant 0 : i32
    return %arg0, %c0_i32, %arg1 : i32, i32, i32
  }
  func.func @transform_3(%arg0: i32, %arg1: i32) -> (i32, i32) {
    %c0_i32 = arith.constant 0 : i32
    %c0_i32_0 = arith.constant 0 : i32
    %c0_i32_1 = arith.constant 0 : i32
    return %c0_i32, %c0_i32_0 : i32, i32
  }
  func.func @transform_4(%arg0: i32, %arg1: i32) -> (i32, i32) {
    %c0_i32 = arith.constant 0 : i32
    %c0_i32_0 = arith.constant 0 : i32
    %c0_i32_1 = arith.constant 0 : i32
    return %c0_i32, %c0_i32_0 : i32, i32
  }
  func.func @transform_5(%arg0: i32, %arg1: i32) -> (i32, i32, i32) {
    %c0_i32 = arith.constant 0 : i32
    %c0_i32_0 = arith.constant 0 : i32
    return %arg0, %c0_i32, %arg1 : i32, i32, i32
  }
}

</mosaic_0001>

<bundles_post_ra>
// kernel: tpu_custom_call.1
= control target key start
LH: loop header
LB: loop body
LE: loop exit
PB: predicated region body
PF: predicated region fallthrough
CT: control target
= control target key end

     0   :  { %s4676_s18 = smov 0   ;;  %s4678_s19 = smov 0   ;;  %s6965_s0 = inlined_call_operand.vmem [shape: f32[1,816,196], index: 0, kind: input, shape index: {}]   ;;  %s6966_s1 = inlined_call_operand.vmem [shape: f32[136,816], index: 1, kind: input, shape index: {}]   ;;  %s6967_s2 = inlined_call_operand.vmem [shape: f32[1,136,196], index: 2, kind: input, shape index: {}]   ;;  %s6968_s3 = inlined_call_operand.vmem [shape: f32[816,136], index: 3, kind: input, shape index: {}]   ;;  %s6969_s4 = inlined_call_operand.vmem [shape: f32[816,1], index: 4, kind: input, shape index: {}]   ;;  %s6970_s5 = inlined_call_operand.vmem [shape: f32[1,816,196], index: 5, kind: output, shape index: {}]  }
   0x1   :  { %s4680_s20 = smov 0   ;;  %s4682_s21 = smov 0  }
   0x2   :  { %s4684_s22 = smov 0  }
   0x3 LB: > { %s24_s23 = sadd.s32 1, %s4636_s21  ;;  %s4023_s24 = sadd.s32 4294967295, %s4640_s22   ;;  %s4640_s22 = sphi %s4684_s22, %s15_s22   ;;  %s4636_s21 = sphi %s4682_s21, %s6976_s21   ;;  %s4632_s20 = sphi %s4680_s20, %s6975_s20   ;;  %s4628_s19 = sphi %s4678_s19, %s6974_s19   ;;  %s4624_s18 = sphi %s4676_s18, %s6973_s18  }
   0x4   : > { %p25_p0 = scmp.ge.s32.totalorder %s24_s23, 2  ;;  %p43_p1 = scmp.ne.s32.totalorder %s4628_s19, %s4624_s18 }
   0x5   : > { %p44_p2 = scmp.eq.s32.totalorder %s4640_s22, 0  ;;  %p166_p4 = scmp.eq.s32.totalorder %s4023_s24, 1 }
   0x6   : > { %s6978_s23 = smov (%p25_p0, %s24_s23), 0  ;;  %s36_s27 = sadd.s32 1, %s4628_s19 }
   0x7   : > { %p4708_p3 = por %p44_p2, %p43_p1  ;;  %s32_s26 = ssub.s32 %s4636_s21, %s6978_s23 }
   0x8   : > { %p34_p5 = scmp.eq.s32.totalorder %s32_s26, 0  ;;  %p4715_p6 = por %p166_p4, %p43_p1 }
   0x9   : > { %p4026_p7 = scmp.ge.s32.totalorder %s4640_s22, 2 }
   0xa   : > { %s4720_s29 = scalar_select %p34_p5, %s4628_s19, %s36_s27  }
   0xb   : > { %197 = sbr.rel (%p4026_p7) target bundleno = 86 (0x56), region = 28 }
  0x12   : > { %200 = sbr.rel (!%p4708_p3) target bundleno = 73 (0x49), region = 32  ;;  %s202_s30 = sand.u32 (%p4708_p3), 1, %s4628_s19  }
  0x13   : > { %s4027_s6 = sshll.u32 (%p4708_p3), %s4636_s21, 3  ;;  %s4552_s7 = smul.u32 (%p4708_p3), 816, %s202_s30 }
  0x14   : > { %s4730_s10 = scalar_lea.vmem (%p4708_p3), %s6965_s0, %s4027_s6 }
  0x15   : > { %v438_v0 = vld [vmem:[%s4730_s10] sm:$0xff] (%p4708_p3)  ;;  %v440_v1 = vld [vmem:[%s4730_s10 + $0x10] sm:$0xff] (%p4708_p3)  ;;  %s4738_s11 = scalar_lea.vmem (%p4708_p3), [#allocation2], %s4552_s7 }
  0x16   : > { %v442_v2 = vld [vmem:[%s4730_s10 + $0x20] sm:$0xff] (%p4708_p3)  ;;  %v444_v3 = vld [vmem:[%s4730_s10 + $0x30] sm:$0xff] (%p4708_p3)  ;;  %439 = vst [vmem:[%s4738_s11] sm:$0xff] (%p4708_p3), %v438_v0  ;;  %441 = vst [vmem:[%s4738_s11 + $0x8] sm:$0xff] (%p4708_p3), %v440_v1 }
  0x17   : > { %v446_v4 = vld [vmem:[%s4730_s10 + $0x40] sm:$0xff] (%p4708_p3)  ;;  %v448_v5 = vld [vmem:[%s4730_s10 + $0x50] sm:$0xff] (%p4708_p3)  ;;  %443 = vst [vmem:[%s4738_s11 + $0x10] sm:$0xff] (%p4708_p3), %v442_v2  ;;  %445 = vst [vmem:[%s4738_s11 + $0x18] sm:$0xff] (%p4708_p3), %v444_v3 }
  0x18   : > { %447 = vst [vmem:[%s4738_s11 + $0x20] sm:$0xff] (%p4708_p3), %v446_v4  ;;  %449 = vst [vmem:[%s4738_s11 + $0x28] sm:$0xff] (%p4708_p3), %v448_v5  ;;  %v450_v6 = vld [vmem:[%s4730_s10 + $0x60] sm:$0xff] (%p4708_p3)  ;;  %v452_v7 = vld [vmem:[%s4730_s10 + $0x70] sm:$0xff] (%p4708_p3) }
  0x19   : > { %v454_v8 = vld [vmem:[%s4730_s10 + $0x80] sm:$0xff]  ;;  %451 = vst [vmem:[%s4738_s11 + $0x30] sm:$0xff] %v450_v6  ;;  %453 = vst [vmem:[%s4738_s11 + $0x38] sm:$0xff] %v452_v7  ;;  %v456_v9 = vld [vmem:[%s4730_s10 + $0x90] sm:$0xff] }
  0x1a   : > { %455 = vst [vmem:[%s4738_s11 + $0x40] sm:$0xff] %v454_v8  ;;  %v458_v10 = vld [vmem:[%s4730_s10 + $0xa0] sm:$0xff]  ;;  %v460_v11 = vld [vmem:[%s4730_s10 + $0xb0] sm:$0xff]  ;;  %457 = vst [vmem:[%s4738_s11 + $0x48] sm:$0xff] %v456_v9 }
  0x1b   : > { %459 = vst [vmem:[%s4738_s11 + $0x50] sm:$0xff] %v458_v10  ;;  %461 = vst [vmem:[%s4738_s11 + $0x58] sm:$0xff] %v460_v11  ;;  %v462_v12 = vld [vmem:[%s4730_s10 + $0xc0] sm:$0xff]  ;;  %v464_v13 = vld [vmem:[%s4730_s10 + $0xd0] sm:$0xff] }
  0x1c   : > { %v466_v14 = vld [vmem:[%s4730_s10 + $0xe0] sm:$0xff]  ;;  %463 = vst [vmem:[%s4738_s11 + $0x60] sm:$0xff] %v462_v12  ;;  %465 = vst [vmem:[%s4738_s11 + $0x68] sm:$0xff] %v464_v13  ;;  %v468_v15 = vld [vmem:[%s4730_s10 + $0xf0] sm:$0xff] }
  0x1d   : > { %467 = vst [vmem:[%s4738_s11 + $0x70] sm:$0xff] %v466_v14  ;;  %v470_v16 = vld [vmem:[%s4730_s10 + $0x100] sm:$0xff]  ;;  %v472_v17 = vld [vmem:[%s4730_s10 + $0x110] sm:$0xff]  ;;  %469 = vst [vmem:[%s4738_s11 + $0x78] sm:$0xff] %v468_v15 }
  0x1e   : > { %471 = vst [vmem:[%s4738_s11 + $0x80] sm:$0xff] %v470_v16  ;;  %473 = vst [vmem:[%s4738_s11 + $0x88] sm:$0xff] %v472_v17  ;;  %v474_v18 = vld [vmem:[%s4730_s10 + $0x120] sm:$0xff]  ;;  %v476_v19 = vld [vmem:[%s4730_s10 + $0x130] sm:$0xff] }
  0x1f   : > { %v478_v20 = vld [vmem:[%s4730_s10 + $0x140] sm:$0xff]  ;;  %475 = vst [vmem:[%s4738_s11 + $0x90] sm:$0xff] %v474_v18  ;;  %477 = vst [vmem:[%s4738_s11 + $0x98] sm:$0xff] %v476_v19  ;;  %v480_v21 = vld [vmem:[%s4730_s10 + $0x150] sm:$0xff] }
  0x20   : > { %479 = vst [vmem:[%s4738_s11 + $0xa0] sm:$0xff] %v478_v20  ;;  %v482_v22 = vld [vmem:[%s4730_s10 + $0x160] sm:$0xff]  ;;  %v484_v23 = vld [vmem:[%s4730_s10 + $0x170] sm:$0xff]  ;;  %481 = vst [vmem:[%s4738_s11 + $0xa8] sm:$0xff] %v480_v21 }
  0x21   : > { %483 = vst [vmem:[%s4738_s11 + $0xb0] sm:$0xff] %v482_v22  ;;  %485 = vst [vmem:[%s4738_s11 + $0xb8] sm:$0xff] %v484_v23  ;;  %v486_v24 = vld [vmem:[%s4730_s10 + $0x180] sm:$0xff]  ;;  %v488_v25 = vld [vmem:[%s4730_s10 + $0x190] sm:$0xff] }
  0x22   : > { %v490_v26 = vld [vmem:[%s4730_s10 + $0x1a0] sm:$0xff]  ;;  %487 = vst [vmem:[%s4738_s11 + $0xc0] sm:$0xff] %v486_v24  ;;  %489 = vst [vmem:[%s4738_s11 + $0xc8] sm:$0xff] %v488_v25  ;;  %v492_v27 = vld [vmem:[%s4730_s10 + $0x1b0] sm:$0xff] }
  0x23   : > { %491 = vst [vmem:[%s4738_s11 + $0xd0] sm:$0xff] %v490_v26  ;;  %v494_v28 = vld [vmem:[%s4730_s10 + $0x1c0] sm:$0xff]  ;;  %v496_v29 = vld [vmem:[%s4730_s10 + $0x1d0] sm:$0xff]  ;;  %493 = vst [vmem:[%s4738_s11 + $0xd8] sm:$0xff] %v492_v27 }
  0x24   : > { %495 = vst [vmem:[%s4738_s11 + $0xe0] sm:$0xff] %v494_v28  ;;  %497 = vst [vmem:[%s4738_s11 + $0xe8] sm:$0xff] %v496_v29  ;;  %v498_v30 = vld [vmem:[%s4730_s10 + $0x1e0] sm:$0xff]  ;;  %v500_v31 = vld [vmem:[%s4730_s10 + $0x1f0] sm:$0xff] }
  0x25   : > { %v502_v32 = vld [vmem:[%s4730_s10 + $0x200] sm:$0xff]  ;;  %499 = vst [vmem:[%s4738_s11 + $0xf0] sm:$0xff] %v498_v30  ;;  %501 = vst [vmem:[%s4738_s11 + $0xf8] sm:$0xff] %v500_v31  ;;  %v504_v33 = vld [vmem:[%s4730_s10 + $0x210] sm:$0xff] }
  0x26   : > { %503 = vst [vmem:[%s4738_s11 + $0x100] sm:$0xff] %v502_v32  ;;  %v506_v34 = vld [vmem:[%s4730_s10 + $0x220] sm:$0xff]  ;;  %v508_v35 = vld [vmem:[%s4730_s10 + $0x230] sm:$0xff]  ;;  %505 = vst [vmem:[%s4738_s11 + $0x108] sm:$0xff] %v504_v33 }
  0x27   : > { %507 = vst [vmem:[%s4738_s11 + $0x110] sm:$0xff] %v506_v34  ;;  %509 = vst [vmem:[%s4738_s11 + $0x118] sm:$0xff] %v508_v35  ;;  %v510_v36 = vld [vmem:[%s4730_s10 + $0x240] sm:$0xff]  ;;  %v512_v37 = vld [vmem:[%s4730_s10 + $0x250] sm:$0xff] }
  0x28   : > { %v514_v38 = vld [vmem:[%s4730_s10 + $0x260] sm:$0xff]  ;;  %511 = vst [vmem:[%s4738_s11 + $0x120] sm:$0xff] %v510_v36  ;;  %513 = vst [vmem:[%s4738_s11 + $0x128] sm:$0xff] %v512_v37  ;;  %v516_v39 = vld [vmem:[%s4730_s10 + $0x270] sm:$0xff] }
  0x29   : > { %515 = vst [vmem:[%s4738_s11 + $0x130] sm:$0xff] %v514_v38  ;;  %v518_v40 = vld [vmem:[%s4730_s10 + $0x280] sm:$0xff]  ;;  %v520_v41 = vld [vmem:[%s4730_s10 + $0x290] sm:$0xff]  ;;  %517 = vst [vmem:[%s4738_s11 + $0x138] sm:$0xff] %v516_v39 }
  0x2a   : > { %519 = vst [vmem:[%s4738_s11 + $0x140] sm:$0xff] %v518_v40  ;;  %521 = vst [vmem:[%s4738_s11 + $0x148] sm:$0xff] %v520_v41  ;;  %v522_v42 = vld [vmem:[%s4730_s10 + $0x2a0] sm:$0xff]  ;;  %v524_v43 = vld [vmem:[%s4730_s10 + $0x2b0] sm:$0xff] }
  0x2b   : > { %v526_v44 = vld [vmem:[%s4730_s10 + $0x2c0] sm:$0xff]  ;;  %523 = vst [vmem:[%s4738_s11 + $0x150] sm:$0xff] %v522_v42  ;;  %525 = vst [vmem:[%s4738_s11 + $0x158] sm:$0xff] %v524_v43  ;;  %v528_v45 = vld [vmem:[%s4730_s10 + $0x2d0] sm:$0xff] }
  0x2c   : > { %527 = vst [vmem:[%s4738_s11 + $0x160] sm:$0xff] %v526_v44  ;;  %v530_v46 = vld [vmem:[%s4730_s10 + $0x2e0] sm:$0xff]  ;;  %v532_v47 = vld [vmem:[%s4730_s10 + $0x2f0] sm:$0xff]  ;;  %529 = vst [vmem:[%s4738_s11 + $0x168] sm:$0xff] %v528_v45 }
  0x2d   : > { %531 = vst [vmem:[%s4738_s11 + $0x170] sm:$0xff] %v530_v46  ;;  %533 = vst [vmem:[%s4738_s11 + $0x178] sm:$0xff] %v532_v47  ;;  %v534_v48 = vld [vmem:[%s4730_s10 + $0x300] sm:$0xff]  ;;  %v536_v49 = vld [vmem:[%s4730_s10 + $0x310] sm:$0xff] }
  0x2e   : > { %v538_v50 = vld [vmem:[%s4730_s10 + $0x320] sm:$0xff]  ;;  %535 = vst [vmem:[%s4738_s11 + $0x180] sm:$0xff] %v534_v48  ;;  %537 = vst [vmem:[%s4738_s11 + $0x188] sm:$0xff] %v536_v49  ;;  %v540_v51 = vld [vmem:[%s4730_s10 + $0x330] sm:$0xff] }
  0x2f   : > { %539 = vst [vmem:[%s4738_s11 + $0x190] sm:$0xff] %v538_v50  ;;  %v542_v52 = vld [vmem:[%s4730_s10 + $0x340] sm:$0xff]  ;;  %v544_v53 = vld [vmem:[%s4730_s10 + $0x350] sm:$0xff]  ;;  %541 = vst [vmem:[%s4738_s11 + $0x198] sm:$0xff] %v540_v51 }
  0x30   : > { %543 = vst [vmem:[%s4738_s11 + $0x1a0] sm:$0xff] %v542_v52  ;;  %545 = vst [vmem:[%s4738_s11 + $0x1a8] sm:$0xff] %v544_v53  ;;  %v546_v54 = vld [vmem:[%s4730_s10 + $0x360] sm:$0xff]  ;;  %v548_v55 = vld [vmem:[%s4730_s10 + $0x370] sm:$0xff] }
  0x31   : > { %v550_v56 = vld [vmem:[%s4730_s10 + $0x380] sm:$0xff]  ;;  %547 = vst [vmem:[%s4738_s11 + $0x1b0] sm:$0xff] %v546_v54  ;;  %549 = vst [vmem:[%s4738_s11 + $0x1b8] sm:$0xff] %v548_v55  ;;  %v552_v57 = vld [vmem:[%s4730_s10 + $0x390] sm:$0xff] }
  0x32   : > { %551 = vst [vmem:[%s4738_s11 + $0x1c0] sm:$0xff] %v550_v56  ;;  %v554_v58 = vld [vmem:[%s4730_s10 + $0x3a0] sm:$0xff]  ;;  %v556_v59 = vld [vmem:[%s4730_s10 + $0x3b0] sm:$0xff]  ;;  %553 = vst [vmem:[%s4738_s11 + $0x1c8] sm:$0xff] %v552_v57 }
  0x33   : > { %555 = vst [vmem:[%s4738_s11 + $0x1d0] sm:$0xff] %v554_v58  ;;  %557 = vst [vmem:[%s4738_s11 + $0x1d8] sm:$0xff] %v556_v59  ;;  %v558_v60 = vld [vmem:[%s4730_s10 + $0x3c0] sm:$0xff]  ;;  %v560_v61 = vld [vmem:[%s4730_s10 + $0x3d0] sm:$0xff] }
  0x34   : > { %v562_v62 = vld [vmem:[%s4730_s10 + $0x3e0] sm:$0xff]  ;;  %559 = vst [vmem:[%s4738_s11 + $0x1e0] sm:$0xff] %v558_v60  ;;  %561 = vst [vmem:[%s4738_s11 + $0x1e8] sm:$0xff] %v560_v61  ;;  %v564_v63 = vld [vmem:[%s4730_s10 + $0x3f0] sm:$0xff] }
  0x35   : > { %563 = vst [vmem:[%s4738_s11 + $0x1f0] sm:$0xff] %v562_v62  ;;  %v566_v0 = vld [vmem:[%s4730_s10 + $0x400] sm:$0xff]  ;;  %v568_v1 = vld [vmem:[%s4730_s10 + $0x410] sm:$0xff]  ;;  %565 = vst [vmem:[%s4738_s11 + $0x1f8] sm:$0xff] %v564_v63 }
  0x36   : > { %567 = vst [vmem:[%s4738_s11 + $0x200] sm:$0xff] %v566_v0  ;;  %569 = vst [vmem:[%s4738_s11 + $0x208] sm:$0xff] %v568_v1  ;;  %v570_v2 = vld [vmem:[%s4730_s10 + $0x420] sm:$0xff]  ;;  %v572_v3 = vld [vmem:[%s4730_s10 + $0x430] sm:$0xff] }
  0x37   : > { %v574_v4 = vld [vmem:[%s4730_s10 + $0x440] sm:$0xff]  ;;  %571 = vst [vmem:[%s4738_s11 + $0x210] sm:$0xff] %v570_v2  ;;  %573 = vst [vmem:[%s4738_s11 + $0x218] sm:$0xff] %v572_v3  ;;  %v576_v5 = vld [vmem:[%s4730_s10 + $0x450] sm:$0xff] }
  0x38   : > { %575 = vst [vmem:[%s4738_s11 + $0x220] sm:$0xff] %v574_v4  ;;  %v578_v6 = vld [vmem:[%s4730_s10 + $0x460] sm:$0xff]  ;;  %v580_v7 = vld [vmem:[%s4730_s10 + $0x470] sm:$0xff]  ;;  %577 = vst [vmem:[%s4738_s11 + $0x228] sm:$0xff] %v576_v5 }
  0x39   : > { %579 = vst [vmem:[%s4738_s11 + $0x230] sm:$0xff] %v578_v6  ;;  %581 = vst [vmem:[%s4738_s11 + $0x238] sm:$0xff] %v580_v7  ;;  %v582_v8 = vld [vmem:[%s4730_s10 + $0x480] sm:$0xff]  ;;  %v584_v9 = vld [vmem:[%s4730_s10 + $0x490] sm:$0xff] }
  0x3a   : > { %v586_v10 = vld [vmem:[%s4730_s10 + $0x4a0] sm:$0xff]  ;;  %583 = vst [vmem:[%s4738_s11 + $0x240] sm:$0xff] %v582_v8  ;;  %585 = vst [vmem:[%s4738_s11 + $0x248] sm:$0xff] %v584_v9  ;;  %v588_v11 = vld [vmem:[%s4730_s10 + $0x4b0] sm:$0xff] }
  0x3b   : > { %587 = vst [vmem:[%s4738_s11 + $0x250] sm:$0xff] %v586_v10  ;;  %v590_v12 = vld [vmem:[%s4730_s10 + $0x4c0] sm:$0xff]  ;;  %v592_v13 = vld [vmem:[%s4730_s10 + $0x4d0] sm:$0xff]  ;;  %589 = vst [vmem:[%s4738_s11 + $0x258] sm:$0xff] %v588_v11 }
  0x3c   : > { %591 = vst [vmem:[%s4738_s11 + $0x260] sm:$0xff] %v590_v12  ;;  %593 = vst [vmem:[%s4738_s11 + $0x268] sm:$0xff] %v592_v13  ;;  %v594_v14 = vld [vmem:[%s4730_s10 + $0x4e0] sm:$0xff]  ;;  %v596_v15 = vld [vmem:[%s4730_s10 + $0x4f0] sm:$0xff] }
  0x3d   : > { %v598_v16 = vld [vmem:[%s4730_s10 + $0x500] sm:$0xff]  ;;  %595 = vst [vmem:[%s4738_s11 + $0x270] sm:$0xff] %v594_v14  ;;  %597 = vst [vmem:[%s4738_s11 + $0x278] sm:$0xff] %v596_v15  ;;  %v600_v17 = vld [vmem:[%s4730_s10 + $0x510] sm:$0xff] }
  0x3e   : > { %599 = vst [vmem:[%s4738_s11 + $0x280] sm:$0xff] %v598_v16  ;;  %v602_v18 = vld [vmem:[%s4730_s10 + $0x520] sm:$0xff]  ;;  %v604_v19 = vld [vmem:[%s4730_s10 + $0x530] sm:$0xff]  ;;  %601 = vst [vmem:[%s4738_s11 + $0x288] sm:$0xff] %v600_v17 }
  0x3f   : > { %603 = vst [vmem:[%s4738_s11 + $0x290] sm:$0xff] %v602_v18  ;;  %605 = vst [vmem:[%s4738_s11 + $0x298] sm:$0xff] %v604_v19  ;;  %v606_v20 = vld [vmem:[%s4730_s10 + $0x540] sm:$0xff]  ;;  %v608_v21 = vld [vmem:[%s4730_s10 + $0x550] sm:$0xff] }
  0x40   : > { %v610_v22 = vld [vmem:[%s4730_s10 + $0x560] sm:$0xff]  ;;  %607 = vst [vmem:[%s4738_s11 + $0x2a0] sm:$0xff] %v606_v20  ;;  %609 = vst [vmem:[%s4738_s11 + $0x2a8] sm:$0xff] %v608_v21  ;;  %v612_v23 = vld [vmem:[%s4730_s10 + $0x570] sm:$0xff] }
  0x41   : > { %611 = vst [vmem:[%s4738_s11 + $0x2b0] sm:$0xff] %v610_v22  ;;  %v614_v24 = vld [vmem:[%s4730_s10 + $0x580] sm:$0xff]  ;;  %v616_v25 = vld [vmem:[%s4730_s10 + $0x590] sm:$0xff]  ;;  %613 = vst [vmem:[%s4738_s11 + $0x2b8] sm:$0xff] %v612_v23 }
  0x42   : > { %615 = vst [vmem:[%s4738_s11 + $0x2c0] sm:$0xff] %v614_v24  ;;  %617 = vst [vmem:[%s4738_s11 + $0x2c8] sm:$0xff] %v616_v25  ;;  %v618_v26 = vld [vmem:[%s4730_s10 + $0x5a0] sm:$0xff]  ;;  %v620_v27 = vld [vmem:[%s4730_s10 + $0x5b0] sm:$0xff] }
  0x43   : > { %v622_v28 = vld [vmem:[%s4730_s10 + $0x5c0] sm:$0xff]  ;;  %619 = vst [vmem:[%s4738_s11 + $0x2d0] sm:$0xff] %v618_v26  ;;  %621 = vst [vmem:[%s4738_s11 + $0x2d8] sm:$0xff] %v620_v27  ;;  %v624_v29 = vld [vmem:[%s4730_s10 + $0x5d0] sm:$0xff] }
  0x44   : > { %623 = vst [vmem:[%s4738_s11 + $0x2e0] sm:$0xff] %v622_v28  ;;  %v626_v30 = vld [vmem:[%s4730_s10 + $0x5e0] sm:$0xff]  ;;  %v628_v31 = vld [vmem:[%s4730_s10 + $0x5f0] sm:$0xff]  ;;  %625 = vst [vmem:[%s4738_s11 + $0x2e8] sm:$0xff] %v624_v29 }
  0x45   : > { %627 = vst [vmem:[%s4738_s11 + $0x2f0] sm:$0xff] %v626_v30  ;;  %629 = vst [vmem:[%s4738_s11 + $0x2f8] sm:$0xff] %v628_v31  ;;  %v630_v32 = vld [vmem:[%s4730_s10 + $0x600] sm:$0xff]  ;;  %v632_v33 = vld [vmem:[%s4730_s10 + $0x610] sm:$0xff] }
  0x46   : > { %v634_v34 = vld [vmem:[%s4730_s10 + $0x620] sm:$0xff]  ;;  %631 = vst [vmem:[%s4738_s11 + $0x300] sm:$0xff] %v630_v32  ;;  %633 = vst [vmem:[%s4738_s11 + $0x308] sm:$0xff] %v632_v33  ;;  %v636_v35 = vld [vmem:[%s4730_s10 + $0x630] sm:$0xff] }
  0x47   : > { %635 = vst [vmem:[%s4738_s11 + $0x310] sm:$0xff] %v634_v34  ;;  %v638_v36 = vld [vmem:[%s4730_s10 + $0x640] sm:$0xff]  ;;  %v640_v37 = vld [vmem:[%s4730_s10 + $0x650] sm:$0xff]  ;;  %637 = vst [vmem:[%s4738_s11 + $0x318] sm:$0xff] %v636_v35 }
  0x48   : > { %639 = vst [vmem:[%s4738_s11 + $0x320] sm:$0xff] %v638_v36  ;;  %641 = vst [vmem:[%s4738_s11 + $0x328] sm:$0xff] %v640_v37 }
  0x49 PF: > { %647 = sbr.rel (!%p4708_p3) target bundleno = 86 (0x56), region = 70  ;;  %s649_s12 = sand.u32 (%p4708_p3), 1, %s4628_s19  }
  0x4a   : > { %s4028_s13 = sshll.u32 (%p4708_p3), %s4636_s21, 3  ;;  %s4553_s14 = smul.u32 (%p4708_p3), 136, %s649_s12 }
  0x4b   : > { %s4945_s17 = scalar_lea.vmem (%p4708_p3), %s6967_s2, %s4028_s13 }
  0x4c   : > { %v715_v38 = vld [vmem:[%s4945_s17] sm:$0xff] (%p4708_p3)  ;;  %v717_v39 = vld [vmem:[%s4945_s17 + $0x10] sm:$0xff] (%p4708_p3)  ;;  %s651_s24 = scalar_lea.vmem (%p4708_p3), [#allocation3], %s4553_s14 }
  0x4d   : > { %v719_v40 = vld [vmem:[%s4945_s17 + $0x20] sm:$0xff] (%p4708_p3)  ;;  %v721_v41 = vld [vmem:[%s4945_s17 + $0x30] sm:$0xff] (%p4708_p3)  ;;  %716 = vst [vmem:[%s651_s24] sm:$0xff] (%p4708_p3), %v715_v38  ;;  %718 = vst [vmem:[%s651_s24 + $0x8] sm:$0xff] (%p4708_p3), %v717_v39 }
  0x4e   : > { %v723_v42 = vld [vmem:[%s4945_s17 + $0x40] sm:$0xff] (%p4708_p3)  ;;  %v725_v43 = vld [vmem:[%s4945_s17 + $0x50] sm:$0xff] (%p4708_p3)  ;;  %720 = vst [vmem:[%s651_s24 + $0x10] sm:$0xff] (%p4708_p3), %v719_v40  ;;  %722 = vst [vmem:[%s651_s24 + $0x18] sm:$0xff] (%p4708_p3), %v721_v41 }
  0x4f   : > { %724 = vst [vmem:[%s651_s24 + $0x20] sm:$0xff] (%p4708_p3), %v723_v42  ;;  %726 = vst [vmem:[%s651_s24 + $0x28] sm:$0xff] (%p4708_p3), %v725_v43  ;;  %v727_v44 = vld [vmem:[%s4945_s17 + $0x60] sm:$0xff] (%p4708_p3)  ;;  %v729_v45 = vld [vmem:[%s4945_s17 + $0x70] sm:$0xff] (%p4708_p3) }
  0x50   : > { %v731_v46 = vld [vmem:[%s4945_s17 + $0x80] sm:$0xff]  ;;  %728 = vst [vmem:[%s651_s24 + $0x30] sm:$0xff] %v727_v44  ;;  %730 = vst [vmem:[%s651_s24 + $0x38] sm:$0xff] %v729_v45  ;;  %v733_v47 = vld [vmem:[%s4945_s17 + $0x90] sm:$0xff] }
  0x51   : > { %732 = vst [vmem:[%s651_s24 + $0x40] sm:$0xff] %v731_v46  ;;  %v735_v48 = vld [vmem:[%s4945_s17 + $0xa0] sm:$0xff]  ;;  %v737_v49 = vld [vmem:[%s4945_s17 + $0xb0] sm:$0xff]  ;;  %734 = vst [vmem:[%s651_s24 + $0x48] sm:$0xff] %v733_v47 }
  0x52   : > { %736 = vst [vmem:[%s651_s24 + $0x50] sm:$0xff] %v735_v48  ;;  %738 = vst [vmem:[%s651_s24 + $0x58] sm:$0xff] %v737_v49  ;;  %v739_v50 = vld [vmem:[%s4945_s17 + $0xc0] sm:$0xff]  ;;  %v741_v51 = vld [vmem:[%s4945_s17 + $0xd0] sm:$0xff] }
  0x53   : > { %v743_v52 = vld [vmem:[%s4945_s17 + $0xe0] sm:$0xff]  ;;  %740 = vst [vmem:[%s651_s24 + $0x60] sm:$0xff] %v739_v50  ;;  %742 = vst [vmem:[%s651_s24 + $0x68] sm:$0xff] %v741_v51  ;;  %v745_v53 = vld [vmem:[%s4945_s17 + $0xf0] sm:$0xff] }
  0x54   : > { %744 = vst [vmem:[%s651_s24 + $0x70] sm:$0xff] %v743_v52  ;;  %v747_v54 = vld [vmem:[%s4945_s17 + $0x100] sm:$0xff]  ;;  %746 = vst [vmem:[%s651_s24 + $0x78] sm:$0xff] %v745_v53 }
  0x55   : > { %748 = vst [vmem:[%s651_s24 + $0x80] sm:$0xff] %v747_v54 }
  0x56 PF: > { %p4029_p8 = scmp.ge.s32.totalorder %s4640_s22, 1  ;;  %p753_p9 = scmp.lt.s32.totalorder %s4640_s22, 3 }
  0x58   : > { %p754_p10 = pnand %p4029_p8, %p753_p9 }
  0x59   : > { %s760_s25 = sand.u32 (!%p754_p10), 1, %s4624_s18   ;;  %v798_v55 = vld [vmem:[%s6966_s1 + $0x8] sm:$0xff] (!%p754_p10)  ;;  %v4642_v56 = vmov (!%p754_p10), 0.0|0.0   ;;  %v797_v43 = vld [vmem:[%s6966_s1] sm:$0xff] (!%p754_p10)  ;;  %v804_v48 = vld [vmem:[%s6966_s1 + $0x38] sm:$0xff] (!%p754_p10)  ;;  %vm4643_vm0 = vmmov (!%p754_p10), 0  }
  0x5a   : > { %757 = sbr.rel (%p754_p10) target bundleno = 1220 (0x4c4), region = 108  ;;  %4238 = vmatprep.subr.bf16.mxu0 (!%p754_p10), %v4642_v56  ;;  %1151 = vmatprep.mubr.f32.mxu0 (!%p754_p10), %v798_v55  ;;  %v805_v45 = vld [vmem:[%s6966_s1 + $0x40] sm:$0xff] (!%p754_p10)  ;;  %v812_v50 = vld [vmem:[%s6966_s1 + $0x78] sm:$0xff] (!%p754_p10)  ;;  %v811_v53 = vld [vmem:[%s6966_s1 + $0x70] sm:$0xff] (!%p754_p10)  ;;  %vm1035_vm1 = vcmask (!%p754_p10), 392192   ;;  %vm2503_vm2 = vcmask (!%p754_p10), 64512  }
  0x5b   : > { %s4973_s30 = smul.u32 (!%p754_p10), 816, %s760_s25  ;;  %4415 = vmatprep.subr.bf16.mxu1 (!%p754_p10), %v4642_v56  ;;  %v819_v55 = vld [vmem:[%s6966_s1 + $0xb0] sm:$0xff] (!%p754_p10) }
  0x5c   : > { %s4555_s26 = smul.u32 (!%p754_p10), 136, %s760_s25 }
  0x5d   : > { %s4977_s6 = scalar_lea.vmem (!%p754_p10), [#allocation2], %s4973_s30 }
  0x5e   : > { %v916_v57 = vld [vmem:[%s4977_s6] sm:$0xff] (!%p754_p10)  ;;  %v917_v58 = vld [vmem:[%s4977_s6 + $0x8] sm:$0xff] (!%p754_p10)  ;;  %v918_v59 = vld [vmem:[%s4977_s6 + $0x10] sm:$0xff] (!%p754_p10)  ;;  %s5585_s18 = scalar_lea.vmem (!%p754_p10), [#allocation3], %s4555_s26  ;;  %s6383_s26 = scalar_lea.vmem (!%p754_p10), [#allocation4], %s4973_s30 }
  0x5f   : > { %v4239_v60 = vpack.c.bf16 (!%p754_p10), %v917_v58, %v916_v57  ;;  %v919_v61 = vld [vmem:[%s4977_s6 + $0x18] sm:$0xff] (!%p754_p10)  ;;  %v920_v63 = vld [vmem:[%s4977_s6 + $0x20] sm:$0xff] (!%p754_p10)  ;;  %v921_v0 = vld [vmem:[%s4977_s6 + $0x28] sm:$0xff] (!%p754_p10) }
  0x60   : > { %v4242_v62 = vpack.c.bf16 (!%p754_p10), %v919_v61, %v918_v59  ;;  %v4245_v1 = vpack.c.bf16 (!%p754_p10), %v921_v0, %v920_v63  ;;  %v922_v2 = vld [vmem:[%s4977_s6 + $0x30] sm:$0xff] (!%p754_p10)  ;;  %v923_v3 = vld [vmem:[%s4977_s6 + $0x38] sm:$0xff] (!%p754_p10)  ;;  %v924_v5 = vld [vmem:[%s4977_s6 + $0x40] sm:$0xff] (!%p754_p10) }
  0x61   : > { %4240 = vmatpush1.bf16.msra.mxu0 %v4239_v60  ;;  %v4248_v4 = vpack.c.bf16 %v923_v3, %v922_v2  ;;  %v925_v6 = vld [vmem:[%s4977_s6 + $0x48] sm:$0xff]  ;;  %v926_v8 = vld [vmem:[%s4977_s6 + $0x50] sm:$0xff]  ;;  %v927_v9 = vld [vmem:[%s4977_s6 + $0x58] sm:$0xff]  ;;  %s4149_s27 = sshll.u32 (%p4715_p6), %s4632_s20, 3 }
  0x62   : > { %4241 = vmatprep.subr.bf16.mxu0 %v4642_v56  ;;  %v4251_v7 = vpack.c.bf16 %v925_v6, %v924_v5  ;;  %v4254_v10 = vpack.c.bf16 %v927_v9, %v926_v8  ;;  %v928_v11 = vld [vmem:[%s4977_s6 + $0x60] sm:$0xff]  ;;  %v929_v12 = vld [vmem:[%s4977_s6 + $0x68] sm:$0xff]  ;;  %v930_v14 = vld [vmem:[%s4977_s6 + $0x70] sm:$0xff]  ;;  %s6747_s8 = scalar_lea.vmem (%p4715_p6), %s6970_s5, %s4149_s27 }
  0x63   : > { %v4257_v13 = vpack.c.bf16 %v929_v12, %v928_v11  ;;  %v931_v15 = vld [vmem:[%s4977_s6 + $0x78] sm:$0xff]  ;;  %v932_v17 = vld [vmem:[%s4977_s6 + $0x80] sm:$0xff]  ;;  %v933_v18 = vld [vmem:[%s4977_s6 + $0x88] sm:$0xff] }
  0x64   : > { %v4260_v16 = vpack.c.bf16 %v931_v15, %v930_v14  ;;  %v4263_v19 = vpack.c.bf16 %v933_v18, %v932_v17  ;;  %v934_v20 = vld [vmem:[%s4977_s6 + $0x90] sm:$0xff]  ;;  %v935_v21 = vld [vmem:[%s4977_s6 + $0x98] sm:$0xff]  ;;  %v936_v23 = vld [vmem:[%s4977_s6 + $0xa0] sm:$0xff] }
  0x65   : > { %4243 = vmatpush1.bf16.msra.mxu0 %v4242_v62  ;;  %v4266_v22 = vpack.c.bf16 %v935_v21, %v934_v20  ;;  %v937_v24 = vld [vmem:[%s4977_s6 + $0xa8] sm:$0xff]  ;;  %v938_v26 = vld [vmem:[%s4977_s6 + $0xb0] sm:$0xff]  ;;  %v939_v27 = vld [vmem:[%s4977_s6 + $0xb8] sm:$0xff] }
  0x66   : > { %4244 = vmatprep.subr.bf16.mxu0 %v4642_v56  ;;  %v4269_v25 = vpack.c.bf16 %v937_v24, %v936_v23  ;;  %v4272_v28 = vpack.c.bf16 %v939_v27, %v938_v26  ;;  %v940_v29 = vld [vmem:[%s4977_s6 + $0xc0] sm:$0xff]  ;;  %v941_v30 = vld [vmem:[%s4977_s6 + $0xc8] sm:$0xff]  ;;  %v942_v32 = vld [vmem:[%s4977_s6 + $0xd0] sm:$0xff] }
  0x67   : > { %v4275_v31 = vpack.c.bf16 %v941_v30, %v940_v29  ;;  %v943_v33 = vld [vmem:[%s4977_s6 + $0xd8] sm:$0xff]  ;;  %v944_v35 = vld [vmem:[%s4977_s6 + $0xe0] sm:$0xff]  ;;  %v945_v36 = vld [vmem:[%s4977_s6 + $0xe8] sm:$0xff] }
  0x68   : > { %v4278_v34 = vpack.c.bf16 %v943_v33, %v942_v32  ;;  %v4281_v37 = vpack.c.bf16 %v945_v36, %v944_v35  ;;  %v946_v38 = vld [vmem:[%s4977_s6 + $0xf0] sm:$0xff]  ;;  %v947_v39 = vld [vmem:[%s4977_s6 + $0xf8] sm:$0xff]  ;;  %v948_v41 = vld [vmem:[%s4977_s6 + $0x100] sm:$0xff] }
  0x69   : > { %4246 = vmatpush1.bf16.msra.mxu0 %v4245_v1  ;;  %v4284_v40 = vpack.c.bf16 %v947_v39, %v946_v38  ;;  %v949_v42 = vld [vmem:[%s4977_s6 + $0x108] sm:$0xff]  ;;  %v950_v46 = vld [vmem:[%s4977_s6 + $0x110] sm:$0xff]  ;;  %v951_v47 = vld [vmem:[%s4977_s6 + $0x118] sm:$0xff] }
  0x6a   : > { %4247 = vmatprep.subr.bf16.mxu0 %v4642_v56  ;;  %v4287_v44 = vpack.c.bf16 %v949_v42, %v948_v41  ;;  %v4290_v49 = vpack.c.bf16 %v951_v47, %v950_v46  ;;  %v952_v51 = vld [vmem:[%s4977_s6 + $0x120] sm:$0xff]  ;;  %v953_v52 = vld [vmem:[%s4977_s6 + $0x128] sm:$0xff]  ;;  %v954_v57 = vld [vmem:[%s4977_s6 + $0x130] sm:$0xff] }
  0x6b   : > { %v4293_v54 = vpack.c.bf16 %v953_v52, %v952_v51  ;;  %v955_v58 = vld [vmem:[%s4977_s6 + $0x138] sm:$0xff]  ;;  %v956_v62 = vld [vmem:[%s4977_s6 + $0x140] sm:$0xff]  ;;  %v957_v63 = vld [vmem:[%s4977_s6 + $0x148] sm:$0xff] }
  0x6c   : > { %v818_v59 = vld [vmem:[%s6966_s1 + $0xa8] sm:$0xff]  ;;  %v4296_v60 = vpack.c.bf16 %v955_v58, %v954_v57  ;;  %v825_v0 = vld [vmem:[%s6966_s1 + $0xe0] sm:$0xff]  ;;  %v4299_v1 = vpack.c.bf16 %v957_v63, %v956_v62  ;;  %v832_v5 = vld [vmem:[%s6966_s1 + $0x118] sm:$0xff] }
  0x6d   : > { %4249 = vmatpush1.bf16.msra.mxu0 %v4248_v4  ;;  %v826_v61 = vld [vmem:[%s6966_s1 + $0xe8] sm:$0xff]  ;;  %v833_v2 = vld [vmem:[%s6966_s1 + $0x120] sm:$0xff]  ;;  %v847_v12 = vld [vmem:[%s6966_s1 + $0x190] sm:$0xff] }
  0x6e   : > { %4250 = vmatprep.subr.bf16.mxu0 %v4642_v56  ;;  %v958_v3 = vld [vmem:[%s4977_s6 + $0x150] sm:$0xff]  ;;  %v959_v4 = vld [vmem:[%s4977_s6 + $0x158] sm:$0xff]  ;;  %v960_v8 = vld [vmem:[%s4977_s6 + $0x160] sm:$0xff] }
  0x6f   : > { %v4302_v6 = vpack.c.bf16 %v959_v4, %v958_v3  ;;  %v961_v9 = vld [vmem:[%s4977_s6 + $0x168] sm:$0xff]  ;;  %v963_v14 = vld [vmem:[%s4977_s6 + $0x178] sm:$0xff]  ;;  %v964_v18 = vld [vmem:[%s4977_s6 + $0x180] sm:$0xff] }
  0x70   : > { %v4305_v11 = vpack.c.bf16 %v961_v9, %v960_v8  ;;  %v846_v15 = vld [vmem:[%s6966_s1 + $0x188] sm:$0xff]  ;;  %v853_v20 = vld [vmem:[%s6966_s1 + $0x1c0] sm:$0xff]  ;;  %v868_v27 = vld [vmem:[%s6966_s1 + $0x238] sm:$0xff] }
  0x71   : > { %4252 = vmatpush1.bf16.msra.mxu0 %v4251_v7  ;;  %v840_v7 = vld [vmem:[%s6966_s1 + $0x158] sm:$0xff]  ;;  %v854_v17 = vld [vmem:[%s6966_s1 + $0x1c8] sm:$0xff]  ;;  %v966_v23 = vld [vmem:[%s4977_s6 + $0x190] sm:$0xff] }
  0x72   : > { %4253 = vmatprep.subr.bf16.mxu0 %v4642_v56  ;;  %v967_v24 = vld [vmem:[%s4977_s6 + $0x198] sm:$0xff]  ;;  %v969_v29 = vld [vmem:[%s4977_s6 + $0x1a8] sm:$0xff]  ;;  %v867_v30 = vld [vmem:[%s6966_s1 + $0x230] sm:$0xff] }
  0x73   : > { %v4314_v26 = vpack.c.bf16 %v967_v24, %v966_v23  ;;  %v875_v32 = vld [vmem:[%s6966_s1 + $0x270] sm:$0xff]  ;;  %v874_v35 = vld [vmem:[%s6966_s1 + $0x268] sm:$0xff]  ;;  %v889_v42 = vld [vmem:[%s6966_s1 + $0x2e0] sm:$0xff] }
  0x74   : > { %v970_v33 = vld [vmem:[%s4977_s6 + $0x1b0] sm:$0xff]  ;;  %v972_v38 = vld [vmem:[%s4977_s6 + $0x1c0] sm:$0xff]  ;;  %v973_v39 = vld [vmem:[%s4977_s6 + $0x1c8] sm:$0xff] }
  0x75   : > { %4255 = vmatpush1.bf16.msra.mxu0 %v4254_v10  ;;  %v839_v10 = vld [vmem:[%s6966_s1 + $0x150] sm:$0xff]  ;;  %v4323_v41 = vpack.c.bf16 %v973_v39, %v972_v38  ;;  %v896_v47 = vld [vmem:[%s6966_s1 + $0x318] sm:$0xff]  ;;  %v910_v58 = vld [vmem:[%s6966_s1 + $0x388] sm:$0xff] }
  0x76   : > { %4256 = vmatprep.subr.bf16.mxu0 %v4642_v56  ;;  %v903_v52 = vld [vmem:[%s6966_s1 + $0x350] sm:$0xff]  ;;  %v981_v62 = vld [vmem:[%s4977_s6 + $0x208] sm:$0xff]  ;;  %v983_v3 = vld [vmem:[%s4977_s6 + $0x218] sm:$0xff] }
  0x77   : > { %v799_v63 = vld [vmem:[%s6966_s1 + $0x10] sm:$0xff]  ;;  %v806_v4 = vld [vmem:[%s6966_s1 + $0x48] sm:$0xff]  ;;  %v813_v9 = vld [vmem:[%s6966_s1 + $0x80] sm:$0xff] }
  0x78   : > { %v985_v8 = vld [vmem:[%s4977_s6 + $0x228] sm:$0xff]  ;;  %v991_v23 = vld [vmem:[%s4977_s6 + $0x258] sm:$0xff]  ;;  %v855_v39 = vld [vmem:[%s6966_s1 + $0x1d0] sm:$0xff] }
  0x79   : > { %4258 = vmatpush1.bf16.msra.mxu0 %v4257_v13  ;;  %v962_v13 = vld [vmem:[%s4977_s6 + $0x170] sm:$0xff]  ;;  %v834_v24 = vld [vmem:[%s6966_s1 + $0x128] sm:$0xff] }
  0x7a   : > { %4259 = vmatprep.subr.bf16.mxu0 %v4642_v56  ;;  %v997_v38 = vld [vmem:[%s4977_s6 + $0x288] sm:$0xff] }
  0x7d   : > { %4261 = vmatpush1.bf16.msra.mxu0 %v4260_v16  ;;  %v4308_v16 = vpack.c.bf16 %v963_v14, %v962_v13  ;;  %v987_v13 = vld [vmem:[%s4977_s6 + $0x238] sm:$0xff] }
  0x7e   : > { %4262 = vmatprep.subr.bf16.mxu0 %v4642_v56  ;;  %v820_v14 = vld [vmem:[%s6966_s1 + $0xb8] sm:$0xff] }
  0x81   : > { %4264 = vmatpush1.bf16.msra.mxu0 %v4263_v19  ;;  %v965_v19 = vld [vmem:[%s4977_s6 + $0x188] sm:$0xff] }
  0x82   : > { %4265 = vmatprep.subr.bf16.mxu0 %v4642_v56  ;;  %v4311_v21 = vpack.c.bf16 %v965_v19, %v964_v18  ;;  %v989_v18 = vld [vmem:[%s4977_s6 + $0x248] sm:$0xff]  ;;  %v827_v19 = vld [vmem:[%s6966_s1 + $0xf0] sm:$0xff] }
  0x85   : > { %4267 = vmatpush1.bf16.msra.mxu0 %v4266_v22  ;;  %v861_v22 = vld [vmem:[%s6966_s1 + $0x200] sm:$0xff] }
  0x86   : > { %4268 = vmatprep.subr.bf16.mxu0 %v4642_v56 }
  0x89   : > { %4270 = vmatpush1.bf16.msra.mxu0 %v4269_v25  ;;  %v860_v25 = vld [vmem:[%s6966_s1 + $0x1f8] sm:$0xff] }
  0x8a   : > { %4271 = vmatprep.subr.bf16.mxu0 %v4642_v56 }
  0x8d   : > { %4273 = vmatpush1.bf16.msra.mxu0 %v4272_v28  ;;  %v968_v28 = vld [vmem:[%s4977_s6 + $0x1a0] sm:$0xff] }
  0x8e   : > { %4274 = vmatprep.subr.bf16.mxu0 %v4642_v56 }
  0x91   : > { %4276 = vmatpush1.bf16.msra.mxu0 %v4275_v31  ;;  %v4317_v31 = vpack.c.bf16 %v969_v29, %v968_v28  ;;  %v993_v28 = vld [vmem:[%s4977_s6 + $0x268] sm:$0xff]  ;;  %v841_v29 = vld [vmem:[%s6966_s1 + $0x160] sm:$0xff] }
  0x92   : > { %4277 = vmatprep.subr.bf16.mxu0 %v4642_v56 }
  0x95   : > { %4279 = vmatpush1.bf16.msra.mxu0 %v4278_v34  ;;  %v971_v34 = vld [vmem:[%s4977_s6 + $0x1b8] sm:$0xff] }
  0x96   : > { %4280 = vmatprep.subr.bf16.mxu0 %v4642_v56  ;;  %v4320_v36 = vpack.c.bf16 %v971_v34, %v970_v33  ;;  %v995_v33 = vld [vmem:[%s4977_s6 + $0x278] sm:$0xff] }
  0x97   : > { %v848_v34 = vld [vmem:[%s6966_s1 + $0x198] sm:$0xff] }
  0x99   : > { %4282 = vmatpush1.bf16.msra.mxu0 %v4281_v37  ;;  %v882_v37 = vld [vmem:[%s6966_s1 + $0x2a8] sm:$0xff] }
  0x9a   : > { %4283 = vmatprep.subr.bf16.mxu0 %v4642_v56 }
  0x9d   : > { %4285 = vmatpush1.bf16.msra.mxu0 %v4284_v40  ;;  %v881_v40 = vld [vmem:[%s6966_s1 + $0x2a0] sm:$0xff] }
  0x9e   : > { %4286 = vmatprep.subr.bf16.mxu0 %v4642_v56 }
  0xa0   : > { %1152 = vmatmul.mubr.f32.vlgmr.msra.gmra.mrb[0].mxu0 %v797_v43  ;;  %v974_v43 = vld [vmem:[%s4977_s6 + $0x1d0] sm:$0xff] }
  0xa1   : > { %4288 = vmatpush1.bf16.msra.mxu0 %v4287_v44  ;;  %1156 = vmatprep.mubr.f32.mxu0 %v805_v45  ;;  %v975_v44 = vld [vmem:[%s4977_s6 + $0x1d8] sm:$0xff] }
  0xa2   : > { %4289 = vmatprep.subr.bf16.mxu0 %v4642_v56  ;;  %v888_v45 = vld [vmem:[%s6966_s1 + $0x2d8] sm:$0xff]  ;;  %v4326_v46 = vpack.c.bf16 %v975_v44, %v974_v43  ;;  %v862_v44 = vld [vmem:[%s6966_s1 + $0x208] sm:$0xff] }
  0xa3   : > { %v999_v43 = vld [vmem:[%s4977_s6 + $0x298] sm:$0xff] }
  0xa4   : > { %1157 = vmatmul.mubr.f32.gmra.mrb[2].mxu0 %v804_v48  ;;  %v976_v48 = vld [vmem:[%s4977_s6 + $0x1e0] sm:$0xff] }
  0xa5   : > { %4291 = vmatpush1.bf16.msra.mxu0 %v4290_v49  ;;  %1161 = vmatprep.mubr.f32.mxu0 %v812_v50  ;;  %v977_v49 = vld [vmem:[%s4977_s6 + $0x1e8] sm:$0xff]  ;;  %v895_v50 = vld [vmem:[%s6966_s1 + $0x310] sm:$0xff] }
  0xa6   : > { %4292 = vmatprep.subr.bf16.mxu0 %v4642_v56  ;;  %v4329_v51 = vpack.c.bf16 %v977_v49, %v976_v48  ;;  %v1001_v48 = vld [vmem:[%s4977_s6 + $0x2a8] sm:$0xff]  ;;  %v869_v49 = vld [vmem:[%s6966_s1 + $0x240] sm:$0xff] }
  0xa8   : > { %1162 = vmatmul.mubr.f32.gmra.mrb[4].mxu0 %v811_v53  ;;  %v978_v53 = vld [vmem:[%s4977_s6 + $0x1f0] sm:$0xff] }
  0xa9   : > { %4294 = vmatpush1.bf16.msra.mxu0 %v4293_v54  ;;  %1166 = vmatprep.mubr.f32.mxu0 %v819_v55  ;;  %v979_v54 = vld [vmem:[%s4977_s6 + $0x1f8] sm:$0xff] }
  0xaa   : > { %4295 = vmatprep.subr.bf16.mxu0 %v4642_v56  ;;  %v902_v55 = vld [vmem:[%s6966_s1 + $0x348] sm:$0xff]  ;;  %v4332_v57 = vpack.c.bf16 %v979_v54, %v978_v53  ;;  %v876_v54 = vld [vmem:[%s6966_s1 + $0x278] sm:$0xff] }
  0xab   : > { %v1003_v53 = vld [vmem:[%s4977_s6 + $0x2b8] sm:$0xff] }
  0xac   : > { %1167 = vmatmul.mubr.f32.gmra.mrb[6].mxu0 %v818_v59  ;;  %v909_v59 = vld [vmem:[%s6966_s1 + $0x380] sm:$0xff] }
  0xad   : > { %4297 = vmatpush1.bf16.msra.mxu0 %v4296_v60  ;;  %1171 = vmatprep.mubr.f32.mxu0 %v826_v61  ;;  %v800_v60 = vld [vmem:[%s6966_s1 + $0x18] sm:$0xff]  ;;  %v980_v61 = vld [vmem:[%s4977_s6 + $0x200] sm:$0xff] }
  0xae   : > { %4298 = vmatprep.subr.bf16.mxu0 %v4642_v56 }
  0xb0   : > { %1172 = vmatmul.mubr.f32.gmra.mrb[8].mxu0 %v825_v0  ;;  %v4335_v0 = vpack.c.bf16 %v981_v62, %v980_v61  ;;  %v891_v62 = vld [vmem:[%s6966_s1 + $0x2f0] sm:$0xff] }
  0xb1   : > { %4300 = vmatpush1.bf16.msra.mxu0 %v4299_v1  ;;  %1176 = vmatprep.mubr.f32.mxu0 %v833_v2  ;;  %v807_v1 = vld [vmem:[%s6966_s1 + $0x50] sm:$0xff] }
  0xb2   : > { %4301 = vmatprep.subr.bf16.mxu0 %v4642_v56  ;;  %v982_v2 = vld [vmem:[%s4977_s6 + $0x210] sm:$0xff] }
  0xb4   : > { %1177 = vmatmul.mubr.f32.gmra.mrb[10].mxu0 %v832_v5  ;;  %v4338_v5 = vpack.c.bf16 %v983_v3, %v982_v2  ;;  %v898_v3 = vld [vmem:[%s6966_s1 + $0x328] sm:$0xff] }
  0xb5   : > { %1181 = vmatprep.mubr.f32.mxu0 %v840_v7  ;;  %4303 = vmatpush1.bf16.msra.mxu0 %v4302_v6  ;;  %v814_v6 = vld [vmem:[%s6966_s1 + $0x88] sm:$0xff]  ;;  %v984_v7 = vld [vmem:[%s4977_s6 + $0x220] sm:$0xff] }
  0xb6   : > { %4304 = vmatprep.subr.bf16.mxu0 %v4642_v56 }
  0xb8   : > { %1182 = vmatmul.mubr.f32.gmra.mrb[12].mxu0 %v839_v10  ;;  %v4341_v10 = vpack.c.bf16 %v985_v8, %v984_v7  ;;  %v905_v8 = vld [vmem:[%s6966_s1 + $0x360] sm:$0xff] }
  0xb9   : > { %1186 = vmatprep.mubr.f32.mxu0 %v847_v12  ;;  %4306 = vmatpush1.bf16.msra.mxu0 %v4305_v11  ;;  %v821_v11 = vld [vmem:[%s6966_s1 + $0xc0] sm:$0xff] }
  0xba   : > { %4307 = vmatprep.subr.bf16.mxu0 %v4642_v56  ;;  %v986_v12 = vld [vmem:[%s4977_s6 + $0x230] sm:$0xff] }
  0xbc   : > { %1187 = vmatmul.mubr.f32.gmra.mrb[14].mxu0 %v846_v15  ;;  %v4344_v15 = vpack.c.bf16 %v987_v13, %v986_v12  ;;  %v912_v13 = vld [vmem:[%s6966_s1 + $0x398] sm:$0xff] }
  0xbd   : > { %1191 = vmatprep.mubr.f32.mxu0 %v854_v17  ;;  %4309 = vmatpush1.bf16.msra.mxu0 %v4308_v16  ;;  %v828_v16 = vld [vmem:[%s6966_s1 + $0xf8] sm:$0xff]  ;;  %v988_v17 = vld [vmem:[%s4977_s6 + $0x240] sm:$0xff] }
  0xbe   : > { %4310 = vmatprep.subr.bf16.mxu0 %v4642_v56 }
  0xc0   : > { %1192 = vmatmul.mubr.f32.gmra.mrb[16].mxu0 %v853_v20  ;;  %v4347_v20 = vpack.c.bf16 %v989_v18, %v988_v17  ;;  %v1013_v17 = vld [vmem:[%s4977_s6 + $0x308] sm:$0xff]  ;;  %v801_v18 = vld [vmem:[%s6966_s1 + $0x20] sm:$0xff] }
  0xc1   : > { %1196 = vmatprep.mubr.f32.mxu0 %v861_v22  ;;  %4312 = vmatpush1.bf16.msra.mxu0 %v4311_v21  ;;  %v835_v21 = vld [vmem:[%s6966_s1 + $0x130] sm:$0xff] }
  0xc2   : > { %4313 = vmatprep.subr.bf16.mxu0 %v4642_v56  ;;  %v990_v22 = vld [vmem:[%s4977_s6 + $0x250] sm:$0xff] }
  0xc4   : > { %1197 = vmatmul.mubr.f32.gmra.mrb[18].mxu0 %v860_v25  ;;  %v4350_v25 = vpack.c.bf16 %v991_v23, %v990_v22  ;;  %v1015_v22 = vld [vmem:[%s4977_s6 + $0x318] sm:$0xff] }
  0xc5   : > { %1201 = vmatprep.mubr.f32.mxu0 %v868_v27  ;;  %4315 = vmatpush1.bf16.msra.mxu0 %v4314_v26  ;;  %v842_v26 = vld [vmem:[%s6966_s1 + $0x168] sm:$0xff]  ;;  %v992_v27 = vld [vmem:[%s4977_s6 + $0x260] sm:$0xff]  ;;  %v808_v23 = vld [vmem:[%s6966_s1 + $0x58] sm:$0xff] }
  0xc6   : > { %4316 = vmatprep.subr.bf16.mxu0 %v4642_v56 }
  0xc8   : > { %1202 = vmatmul.mubr.f32.gmra.mrb[20].mxu0 %v867_v30  ;;  %v4353_v30 = vpack.c.bf16 %v993_v28, %v992_v27  ;;  %v1017_v27 = vld [vmem:[%s4977_s6 + $0x328] sm:$0xff]  ;;  %v815_v28 = vld [vmem:[%s6966_s1 + $0x90] sm:$0xff] }
  0xc9   : > { %1206 = vmatprep.mubr.f32.mxu0 %v875_v32  ;;  %4318 = vmatpush1.bf16.msra.mxu0 %v4317_v31  ;;  %v849_v31 = vld [vmem:[%s6966_s1 + $0x1a0] sm:$0xff] }
  0xca   : > { %4319 = vmatprep.subr.bf16.mxu0 %v4642_v56  ;;  %v994_v32 = vld [vmem:[%s4977_s6 + $0x270] sm:$0xff] }
  0xcc   : > { %1207 = vmatmul.mubr.f32.gmra.mrb[22].mxu0 %v874_v35  ;;  %v4356_v35 = vpack.c.bf16 %v995_v33, %v994_v32  ;;  %v830_v32 = vld [vmem:[%s6966_s1 + $0x108] sm:$0xff]  ;;  %v829_v33 = vld [vmem:[%s6966_s1 + $0x100] sm:$0xff] }
  0xcd   : > { %1211 = vmatprep.mubr.f32.mxu0 %v882_v37  ;;  %4321 = vmatpush1.bf16.msra.mxu0 %v4320_v36  ;;  %v856_v36 = vld [vmem:[%s6966_s1 + $0x1d8] sm:$0xff]  ;;  %v996_v37 = vld [vmem:[%s4977_s6 + $0x280] sm:$0xff] }
  0xce   : > { %4322 = vmatprep.subr.bf16.mxu0 %v4642_v56 }
  0xd0   : > { %1212 = vmatmul.mubr.f32.gmra.mrb[24].mxu0 %v881_v40  ;;  %v4359_v40 = vpack.c.bf16 %v997_v38, %v996_v37  ;;  %v843_v37 = vld [vmem:[%s6966_s1 + $0x170] sm:$0xff] }
  0xd1   : > { %1216 = vmatprep.mubr.f32.mxu0 %v889_v42  ;;  %4324 = vmatpush1.bf16.msra.mxu0 %v4323_v41  ;;  %v863_v41 = vld [vmem:[%s6966_s1 + $0x210] sm:$0xff] }
  0xd2   : > { %4325 = vmatprep.subr.bf16.mxu0 %v4642_v56  ;;  %v998_v42 = vld [vmem:[%s4977_s6 + $0x290] sm:$0xff] }
  0xd3   : > { %v851_v38 = vld [vmem:[%s6966_s1 + $0x1b0] sm:$0xff] }
  0xd4   : > { %1217 = vmatmul.mubr.f32.gmra.mrb[26].mxu0 %v888_v45  ;;  %v4362_v45 = vpack.c.bf16 %v999_v43, %v998_v42  ;;  %v865_v42 = vld [vmem:[%s6966_s1 + $0x220] sm:$0xff]  ;;  %v864_v43 = vld [vmem:[%s6966_s1 + $0x218] sm:$0xff] }
  0xd5   : > { %1221 = vmatprep.mubr.f32.mxu0 %v896_v47  ;;  %4327 = vmatpush1.bf16.msra.mxu0 %v4326_v46  ;;  %v870_v46 = vld [vmem:[%s6966_s1 + $0x248] sm:$0xff]  ;;  %v1000_v47 = vld [vmem:[%s4977_s6 + $0x2a0] sm:$0xff] }
  0xd6   : > { %4328 = vmatprep.subr.bf16.mxu0 %v4642_v56 }
  0xd8   : > { %1222 = vmatmul.mubr.f32.gmra.mrb[28].mxu0 %v895_v50  ;;  %v4365_v50 = vpack.c.bf16 %v1001_v48, %v1000_v47  ;;  %v878_v47 = vld [vmem:[%s6966_s1 + $0x288] sm:$0xff] }
  0xd9   : > { %1226 = vmatprep.mubr.f32.mxu0 %v903_v52  ;;  %4330 = vmatpush1.bf16.msra.mxu0 %v4329_v51  ;;  %v877_v51 = vld [vmem:[%s6966_s1 + $0x280] sm:$0xff]  ;;  %v886_v48 = vld [vmem:[%s6966_s1 + $0x2c8] sm:$0xff] }
  0xda   : > { %4331 = vmatprep.subr.bf16.mxu0 %v4642_v56  ;;  %v1002_v52 = vld [vmem:[%s4977_s6 + $0x2b0] sm:$0xff] }
  0xdc   : > { %1227 = vmatmul.mubr.f32.gmra.mrb[30].mxu0 %v902_v55  ;;  %v4368_v55 = vpack.c.bf16 %v1003_v53, %v1002_v52  ;;  %v900_v52 = vld [vmem:[%s6966_s1 + $0x338] sm:$0xff]  ;;  %v899_v53 = vld [vmem:[%s6966_s1 + $0x330] sm:$0xff] }
  0xdd   : > { %1231 = vmatprep.mubr.f32.mxu0 %v910_v58  ;;  %4333 = vmatpush1.bf16.msra.mxu0 %v4332_v57  ;;  %v884_v57 = vld [vmem:[%s6966_s1 + $0x2b8] sm:$0xff]  ;;  %v1004_v58 = vld [vmem:[%s4977_s6 + $0x2c0] sm:$0xff] }
  0xde   : > { %4334 = vmatprep.subr.bf16.mxu0 %v4642_v56 }
  0xe0   : > { %1232 = vmatmul.mubr.f32.gmra.mrb[32].mxu0 %v909_v59  ;;  %v1005_v59 = vld [vmem:[%s4977_s6 + $0x2c8] sm:$0xff] }
  0xe1   : > { %1301 = vmatprep.mubr.f32.mxu0 %v800_v60  ;;  %v883_v60 = vld [vmem:[%s6966_s1 + $0x2b0] sm:$0xff]  ;;  %v4371_v61 = vpack.c.bf16 %v1005_v59, %v1004_v58  ;;  %v913_v58 = vld [vmem:[%s6966_s1 + $0x3a0] sm:$0xff]  ;;  %v4644_v59 = vmov 0.0  }
  0xe4   : > { %1302 = vmatmul.mubr.f32.vlgmr.msra.gmra.mrb[0].mxu0 %v799_v63  ;;  %v1006_v63 = vld [vmem:[%s4977_s6 + $0x2d0] sm:$0xff] }
  0xe5   : > { %4336 = vmatpush1.bf16.msra.mxu0 %v4335_v0  ;;  %1306 = vmatprep.mubr.f32.mxu0 %v807_v1  ;;  %v1007_v0 = vld [vmem:[%s4977_s6 + $0x2d8] sm:$0xff] }
  0xe6   : > { %4337 = vmatprep.subr.bf16.mxu0 %v4642_v56  ;;  %v890_v1 = vld [vmem:[%s6966_s1 + $0x2e8] sm:$0xff]  ;;  %v4374_v2 = vpack.c.bf16 %v1007_v0, %v1006_v63  ;;  %v824_v63 = vld [vmem:[%s6966_s1 + $0xd8] sm:$0xff]  ;;  %v831_v0 = vld [vmem:[%s6966_s1 + $0x110] sm:$0xff] }
  0xe8   : > { %1307 = vmatmul.mubr.f32.gmra.mrb[2].mxu0 %v806_v4  ;;  %v1008_v4 = vld [vmem:[%s4977_s6 + $0x2e0] sm:$0xff] }
  0xe9   : > { %4339 = vmatpush1.bf16.msra.mxu0 %v4338_v5  ;;  %1311 = vmatprep.mubr.f32.mxu0 %v814_v6  ;;  %v1009_v5 = vld [vmem:[%s4977_s6 + $0x2e8] sm:$0xff]  ;;  %v897_v6 = vld [vmem:[%s6966_s1 + $0x320] sm:$0xff] }
  0xea   : > { %4340 = vmatprep.subr.bf16.mxu0 %v4642_v56  ;;  %v4377_v7 = vpack.c.bf16 %v1009_v5, %v1008_v4  ;;  %v859_v4 = vld [vmem:[%s6966_s1 + $0x1f0] sm:$0xff]  ;;  %v866_v5 = vld [vmem:[%s6966_s1 + $0x228] sm:$0xff] }
  0xec   : > { %1312 = vmatmul.mubr.f32.gmra.mrb[4].mxu0 %v813_v9  ;;  %v1010_v9 = vld [vmem:[%s4977_s6 + $0x2f0] sm:$0xff] }
  0xed   : > { %4342 = vmatpush1.bf16.msra.mxu0 %v4341_v10  ;;  %1316 = vmatprep.mubr.f32.mxu0 %v821_v11  ;;  %v1011_v10 = vld [vmem:[%s4977_s6 + $0x2f8] sm:$0xff] }
  0xee   : > { %4343 = vmatprep.subr.bf16.mxu0 %v4642_v56  ;;  %v904_v11 = vld [vmem:[%s6966_s1 + $0x358] sm:$0xff]  ;;  %v4380_v12 = vpack.c.bf16 %v1011_v10, %v1010_v9  ;;  %v894_v9 = vld [vmem:[%s6966_s1 + $0x308] sm:$0xff]  ;;  %v901_v10 = vld [vmem:[%s6966_s1 + $0x340] sm:$0xff] }
  0xf0   : > { %1317 = vmatmul.mubr.f32.gmra.mrb[6].mxu0 %v820_v14  ;;  %v911_v14 = vld [vmem:[%s6966_s1 + $0x390] sm:$0xff] }
  0xf1   : > { %4345 = vmatpush1.bf16.msra.mxu0 %v4344_v15  ;;  %1321 = vmatprep.mubr.f32.mxu0 %v828_v16  ;;  %v802_v15 = vld [vmem:[%s6966_s1 + $0x28] sm:$0xff]  ;;  %v1012_v16 = vld [vmem:[%s4977_s6 + $0x300] sm:$0xff] }
  0xf2   : > { %4346 = vmatprep.subr.bf16.mxu0 %v4642_v56 }
  0xf4   : > { %1322 = vmatmul.mubr.f32.gmra.mrb[8].mxu0 %v827_v19  ;;  %v4383_v19 = vpack.c.bf16 %v1013_v17, %v1012_v16  ;;  %v1891_v16 = vld [vmem:[%s6969_s4] sm:$0xff]  ;;  %v1894_v17 = vld [vmem:[%s6969_s4 + $0x18] sm:$0xff] }
  0xf5   : > { %4348 = vmatpush1.bf16.msra.mxu0 %v4347_v20  ;;  %1326 = vmatprep.mubr.f32.mxu0 %v835_v21  ;;  %v809_v20 = vld [vmem:[%s6966_s1 + $0x60] sm:$0xff] }
  0xf6   : > { %4349 = vmatprep.subr.bf16.mxu0 %v4642_v56  ;;  %v1014_v21 = vld [vmem:[%s4977_s6 + $0x310] sm:$0xff] }
  0xf8   : > { %1327 = vmatmul.mubr.f32.gmra.mrb[10].mxu0 %v834_v24  ;;  %v4386_v24 = vpack.c.bf16 %v1015_v22, %v1014_v21  ;;  %v1898_v21 = vld [vmem:[%s6969_s4 + $0x38] sm:$0xff]  ;;  %v1897_v22 = vld [vmem:[%s6969_s4 + $0x30] sm:$0xff] }
  0xf9   : > { %1331 = vmatprep.mubr.f32.mxu0 %v842_v26  ;;  %4351 = vmatpush1.bf16.msra.mxu0 %v4350_v25  ;;  %v816_v25 = vld [vmem:[%s6966_s1 + $0x98] sm:$0xff]  ;;  %v1016_v26 = vld [vmem:[%s4977_s6 + $0x320] sm:$0xff] }
  0xfa   : > { %4352 = vmatprep.subr.bf16.mxu0 %v4642_v56 }
  0xfc   : > { %1332 = vmatmul.mubr.f32.gmra.mrb[12].mxu0 %v841_v29  ;;  %v4389_v29 = vpack.c.bf16 %v1017_v27, %v1016_v26  ;;  %v1901_v26 = vld [vmem:[%s6969_s4 + $0x50] sm:$0xff] }
  0xfd   : > { %1336 = vmatprep.mubr.f32.mxu0 %v849_v31  ;;  %4354 = vmatpush1.bf16.msra.mxu0 %v4353_v30  ;;  %v823_v30 = vld [vmem:[%s6966_s1 + $0xd0] sm:$0xff]  ;;  %v822_v31 = vld [vmem:[%s6966_s1 + $0xc8] sm:$0xff] }
  0xfe   : > { %4355 = vmatprep.subr.bf16.mxu0 %v4642_v56 }
 0x100   : > { %1337 = vmatmul.mubr.f32.gmra.mrb[14].mxu0 %v848_v34  ;;  %v837_v34 = vld [vmem:[%s6966_s1 + $0x140] sm:$0xff] }
 0x101   : > { %1341 = vmatprep.mubr.f32.mxu0 %v856_v36  ;;  %4357 = vmatpush1.bf16.msra.mxu0 %v4356_v35  ;;  %v836_v35 = vld [vmem:[%s6966_s1 + $0x138] sm:$0xff] }
 0x102   : > { %4358 = vmatprep.subr.bf16.mxu0 %v4642_v56  ;;  %v844_v36 = vld [vmem:[%s6966_s1 + $0x178] sm:$0xff] }
 0x104   : > { %1342 = vmatmul.mubr.f32.gmra.mrb[16].mxu0 %v855_v39  ;;  %v850_v39 = vld [vmem:[%s6966_s1 + $0x1a8] sm:$0xff] }
 0x105   : > { %1346 = vmatprep.mubr.f32.mxu0 %v863_v41  ;;  %4360 = vmatpush1.bf16.msra.mxu0 %v4359_v40  ;;  %v858_v40 = vld [vmem:[%s6966_s1 + $0x1e8] sm:$0xff]  ;;  %v857_v41 = vld [vmem:[%s6966_s1 + $0x1e0] sm:$0xff] }
 0x106   : > { %4361 = vmatprep.subr.bf16.mxu0 %v4642_v56 }
 0x108   : > { %1347 = vmatmul.mubr.f32.gmra.mrb[18].mxu0 %v862_v44  ;;  %v872_v44 = vld [vmem:[%s6966_s1 + $0x258] sm:$0xff] }
 0x109   : > { %1351 = vmatprep.mubr.f32.mxu0 %v870_v46  ;;  %4363 = vmatpush1.bf16.msra.mxu0 %v4362_v45  ;;  %v871_v45 = vld [vmem:[%s6966_s1 + $0x250] sm:$0xff] }
 0x10a   : > { %4364 = vmatprep.subr.bf16.mxu0 %v4642_v56  ;;  %v879_v46 = vld [vmem:[%s6966_s1 + $0x290] sm:$0xff] }
 0x10c   : > { %1352 = vmatmul.mubr.f32.gmra.mrb[20].mxu0 %v869_v49  ;;  %v885_v49 = vld [vmem:[%s6966_s1 + $0x2c0] sm:$0xff] }
 0x10d   : > { %1356 = vmatprep.mubr.f32.mxu0 %v877_v51  ;;  %4366 = vmatpush1.bf16.msra.mxu0 %v4365_v50  ;;  %v893_v50 = vld [vmem:[%s6966_s1 + $0x300] sm:$0xff]  ;;  %v892_v51 = vld [vmem:[%s6966_s1 + $0x2f8] sm:$0xff] }
 0x10e   : > { %4367 = vmatprep.subr.bf16.mxu0 %v4642_v56 }
 0x110   : > { %1357 = vmatmul.mubr.f32.gmra.mrb[22].mxu0 %v876_v54  ;;  %v907_v54 = vld [vmem:[%s6966_s1 + $0x370] sm:$0xff] }
 0x111   : > { %1361 = vmatprep.mubr.f32.mxu0 %v884_v57  ;;  %4369 = vmatpush1.bf16.msra.mxu0 %v4368_v55  ;;  %v906_v55 = vld [vmem:[%s6966_s1 + $0x368] sm:$0xff] }
 0x112   : > { %4370 = vmatprep.subr.bf16.mxu0 %v4642_v56  ;;  %v914_v57 = vld [vmem:[%s6966_s1 + $0x3a8] sm:$0xff] }
 0x114   : > { %1362 = vmatmul.mubr.f32.gmra.mrb[24].mxu0 %v883_v60  ;;  %v803_v60 = vld [vmem:[%s6966_s1 + $0x30] sm:$0xff] }
 0x115   : > { %1366 = vmatprep.mubr.f32.mxu0 %v891_v62  ;;  %4372 = vmatpush1.bf16.msra.mxu0 %v4371_v61  ;;  %v810_v61 = vld [vmem:[%s6966_s1 + $0x68] sm:$0xff]  ;;  %v817_v62 = vld [vmem:[%s6966_s1 + $0xa0] sm:$0xff] }
 0x116   : > { %4373 = vmatprep.subr.bf16.mxu0 %v4642_v56 }
 0x118   : > { %1367 = vmatmul.mubr.f32.gmra.mrb[26].mxu0 %v890_v1  ;;  %v838_v1 = vld [vmem:[%s6966_s1 + $0x148] sm:$0xff] }
 0x119   : > { %1371 = vmatprep.mubr.f32.mxu0 %v898_v3  ;;  %4375 = vmatpush1.bf16.msra.mxu0 %v4374_v2  ;;  %v845_v2 = vld [vmem:[%s6966_s1 + $0x180] sm:$0xff]  ;;  %v852_v3 = vld [vmem:[%s6966_s1 + $0x1b8] sm:$0xff] }
 0x11a   : > { %4376 = vmatprep.subr.bf16.mxu0 %v4642_v56 }
 0x11c   : > { %1372 = vmatmul.mubr.f32.gmra.mrb[28].mxu0 %v897_v6  ;;  %v873_v6 = vld [vmem:[%s6966_s1 + $0x260] sm:$0xff] }
 0x11d   : > { %1376 = vmatprep.mubr.f32.mxu0 %v905_v8  ;;  %4378 = vmatpush1.bf16.msra.mxu0 %v4377_v7  ;;  %v880_v7 = vld [vmem:[%s6966_s1 + $0x298] sm:$0xff]  ;;  %v887_v8 = vld [vmem:[%s6966_s1 + $0x2d0] sm:$0xff] }
 0x11e   : > { %4379 = vmatprep.subr.bf16.mxu0 %v4642_v56 }
 0x120   : > { %1377 = vmatmul.mubr.f32.gmra.mrb[30].mxu0 %v904_v11  ;;  %v908_v11 = vld [vmem:[%s6966_s1 + $0x378] sm:$0xff] }
 0x121   : > { %1381 = vmatprep.mubr.f32.mxu0 %v912_v13  ;;  %4381 = vmatpush1.bf16.msra.mxu0 %v4380_v12  ;;  %v915_v12 = vld [vmem:[%s6966_s1 + $0x3b0] sm:$0xff]  ;;  %v1714_v13 = vld [vmem:[%s6968_s3 + $0xd8] sm:$0xff] }
 0x122   : > { %4382 = vmatprep.subr.bf16.mxu0 %v4642_v56  ;;  %4060 = vmatprep.mubr.msk.f32.mxu1 %vm2503_vm2, %v1714_v13 }
 0x124   : > { %1382 = vmatmul.mubr.f32.gmra.mrb[32].mxu0 %v911_v14  ;;  %v4645_v14 = vmov 0  }
 0x125   : > { %1451 = vmatprep.mubr.f32.mxu0 %v802_v15  ;;  %4601 = vset.pattern.permute.xlu1 %v4645_v14  ;;  %v1893_v15 = vld [vmem:[%s6969_s4 + $0x10] sm:$0xff] }
 0x126   : > { %4600 = vset.pattern.permute.xlu0 %v4645_v14  ;;  %2005 = vperm.xlu1 %4601, %v1893_v15   ;;  %v1918_v14 = vld [vmem:[%s6969_s4 + $0xd8] sm:$0xff]  ;;  %v1917_v15 = vld [vmem:[%s6969_s4 + $0xd0] sm:$0xff] }
 0x127   : > { %1995 = vperm.xlu0 %4600, %v1891_v16  }
 0x128   : > { %1452 = vmatmul.mubr.f32.vlgmr.msra.gmra.mrb[0].mxu0 %v801_v18  ;;  %v1892_v18 = vld [vmem:[%s6969_s4 + $0x8] sm:$0xff] }
 0x129   : > { %4384 = vmatpush3.bf16.msra.mxu0 %v4383_v19  ;;  %1456 = vmatprep.mubr.f32.mxu0 %v809_v20  ;;  %v1896_v19 = vld [vmem:[%s6969_s4 + $0x28] sm:$0xff]  ;;  %v1895_v20 = vld [vmem:[%s6969_s4 + $0x20] sm:$0xff] }
 0x12a   : > { %4385 = vmatprep.subr.bf16.mxu0 %v4642_v56  ;;  %2010 = vperm.xlu1 %4601, %v1894_v17  }
 0x12b   : > { %2000 = vperm.xlu0 %4600, %v1892_v18  }
 0x12c   : > { %1457 = vmatmul.mubr.f32.gmra.mrb[2].mxu0 %v808_v23  ;;  %v1900_v23 = vld [vmem:[%s6969_s4 + $0x48] sm:$0xff] }
 0x12d   : > { %1461 = vmatprep.mubr.f32.mxu0 %v816_v25  ;;  %4387 = vmatpush3.bf16.msra.mxu0 %v4386_v24  ;;  %v1899_v24 = vld [vmem:[%s6969_s4 + $0x40] sm:$0xff]  ;;  %v1902_v25 = vld [vmem:[%s6969_s4 + $0x58] sm:$0xff] }
 0x12e   : > { %4388 = vmatprep.subr.bf16.mxu0 %v4642_v56  ;;  %2020 = vperm.xlu1 %4601, %v1896_v19   ;;  %v1920_v19 = vld [vmem:[%s6969_s4 + $0xe8] sm:$0xff] }
 0x12f   : > { %2015 = vperm.xlu0 %4600, %v1895_v20   ;;  %v1919_v20 = vld [vmem:[%s6969_s4 + $0xe0] sm:$0xff] }
 0x130   : > { %1462 = vmatmul.mubr.f32.gmra.mrb[4].mxu0 %v815_v28 }
 0x131   : > { %1466 = vmatprep.mubr.f32.mxu0 %v823_v30  ;;  %4390 = vmatpush3.bf16.msra.mxu0 %v4389_v29  ;;  %v1904_v29 = vld [vmem:[%s6969_s4 + $0x68] sm:$0xff]  ;;  %v1903_v30 = vld [vmem:[%s6969_s4 + $0x60] sm:$0xff] }
 0x132   : > { %4391 = vmatprep.subr.bf16.mxu0 %v4642_v56  ;;  %2030 = vperm.xlu1 %4601, %v1898_v21   ;;  %v1026_v21 = vld [vmem:[%s5585_s18 + $0x40] sm:$0xff] }
 0x133   : > { %2025 = vperm.xlu0 %4600, %v1897_v22   ;;  %v1027_v22 = vld [vmem:[%s5585_s18 + $0x48] sm:$0xff] }
 0x134   : > { %1467 = vmatmul.mubr.f32.gmra.mrb[6].mxu0 %v822_v31  ;;  %v1018_v31 = vld [vmem:[%s5585_s18] sm:$0xff] }
 0x135   : > { %1471 = vmatprep.mubr.f32.mxu0 %v830_v32  ;;  %v1019_v32 = vld [vmem:[%s5585_s18 + $0x8] sm:$0xff] }
 0x136   : > { %2040 = vperm.xlu1 %4601, %v1900_v23  }
 0x137   : > { %2035 = vperm.xlu0 %4600, %v1899_v24  }
 0x138   : > { %1472 = vmatmul.mubr.f32.gmra.mrb[8].mxu0 %v829_v33 }
 0x139   : > { %1476 = vmatprep.mubr.f32.mxu0 %v837_v34 }
 0x13a   : > { %2050 = vperm.xlu1 %4601, %v1902_v25  }
 0x13b   : > { %2045 = vperm.xlu0 %4600, %v1901_v26  }
 0x13c   : > { %1477 = vmatmul.mubr.f32.gmra.mrb[10].mxu0 %v836_v35 }
 0x13d   : > { %1481 = vmatprep.mubr.f32.mxu0 %v844_v36 }
 0x13e   : > { %2060 = vperm.xlu1 %4601, %v1904_v29  }
 0x13f   : > { %2055 = vperm.xlu0 %4600, %v1903_v30  }
 0x140   : > { %1482 = vmatmul.mubr.f32.gmra.mrb[12].mxu0 %v843_v37  ;;  %v1906_v37 = vld [vmem:[%s6969_s4 + $0x78] sm:$0xff] }
 0x141   : > { %1486 = vmatprep.mubr.f32.mxu0 %v851_v38  ;;  %v1905_v38 = vld [vmem:[%s6969_s4 + $0x70] sm:$0xff] }
 0x142   : > { %2070 = vperm.xlu1 %4601, %v1906_v37  }
 0x143   : > { %2065 = vperm.xlu0 %4600, %v1905_v38  }
 0x144   : > { %1487 = vmatmul.mubr.f32.gmra.mrb[14].mxu0 %v850_v39 }
 0x145   : > { %1491 = vmatprep.mubr.f32.mxu0 %v858_v40 }
 0x148   : > { %1492 = vmatmul.mubr.f32.gmra.mrb[16].mxu0 %v857_v41 }
 0x149   : > { %1496 = vmatprep.mubr.f32.mxu0 %v865_v42  ;;  %v1908_v42 = vld [vmem:[%s6969_s4 + $0x88] sm:$0xff] }
 0x14a   : > { %2080 = vperm.xlu1 %4601, %v1908_v42   ;;  %v1925_v42 = vld [vmem:[%s6969_s4 + $0x110] sm:$0xff] }
 0x14c   : > { %1497 = vmatmul.mubr.f32.gmra.mrb[18].mxu0 %v864_v43  ;;  %v1907_v43 = vld [vmem:[%s6969_s4 + $0x80] sm:$0xff] }
 0x14d   : > { %1501 = vmatprep.mubr.f32.mxu0 %v872_v44  ;;  %v1020_v44 = vld [vmem:[%s5585_s18 + $0x10] sm:$0xff]  ;;  %2075 = vperm.xlu0 %4600, %v1907_v43  }
 0x150   : > { %1502 = vmatmul.mubr.f32.gmra.mrb[20].mxu0 %v871_v45  ;;  %v1021_v45 = vld [vmem:[%s5585_s18 + $0x18] sm:$0xff] }
 0x151   : > { %1506 = vmatprep.mubr.f32.mxu0 %v879_v46 }
 0x154   : > { %1507 = vmatmul.mubr.f32.gmra.mrb[22].mxu0 %v878_v47 }
 0x155   : > { %1511 = vmatprep.mubr.f32.mxu0 %v886_v48 }
 0x158   : > { %1512 = vmatmul.mubr.f32.gmra.mrb[24].mxu0 %v885_v49 }
 0x159   : > { %1516 = vmatprep.mubr.f32.mxu0 %v893_v50  ;;  %v1910_v50 = vld [vmem:[%s6969_s4 + $0x98] sm:$0xff] }
 0x15a   : > { %2090 = vperm.xlu1 %4601, %v1910_v50  }
 0x15c   : > { %1517 = vmatmul.mubr.f32.gmra.mrb[26].mxu0 %v892_v51  ;;  %v1909_v51 = vld [vmem:[%s6969_s4 + $0x90] sm:$0xff] }
 0x15d   : > { %1521 = vmatprep.mubr.f32.mxu0 %v900_v52  ;;  %2085 = vperm.xlu0 %4600, %v1909_v51  }
 0x160   : > { %1522 = vmatmul.mubr.f32.gmra.mrb[28].mxu0 %v899_v53 }
 0x161   : > { %1526 = vmatprep.mubr.f32.mxu0 %v907_v54 }
 0x164   : > { %1527 = vmatmul.mubr.f32.gmra.mrb[30].mxu0 %v906_v55  ;;  %v1912_v55 = vld [vmem:[%s6969_s4 + $0xa8] sm:$0xff] }
 0x165   : > { %1531 = vmatprep.mubr.f32.mxu0 %v914_v57  ;;  %v1911_v57 = vld [vmem:[%s6969_s4 + $0xa0] sm:$0xff]  ;;  %2100 = vperm.xlu1 %4601, %v1912_v55   ;;  %v1929_v55 = vld [vmem:[%s6969_s4 + $0x130] sm:$0xff] }
 0x166   : > { %2095 = vperm.xlu0 %4600, %v1911_v57  }
 0x168   : > { %1532 = vmatmul.mubr.f32.gmra.mrb[32].mxu0 %v913_v58  ;;  %v1022_v58 = vld [vmem:[%s5585_s18 + $0x20] sm:$0xff] }
 0x169   : > { %4187 = vmatprep.mubr.msk.f32.mxu0 %vm4643_vm0, %v4644_v59 }
 0x16c   : > { %4188 = vmatmul.mubr.msk.f32.vlgmr.msra.gmra.mrb[0].mxu0 %vm1035_vm1, %v803_v60  ;;  %v1023_v60 = vld [vmem:[%s5585_s18 + $0x28] sm:$0xff] }
 0x16d   : > { %4190 = vmatprep.mubr.msk.f32.mxu0 %vm4643_vm0, %v4644_v59 }
 0x170   : > { %4191 = vmatmul.mubr.msk.f32.gmra.mrb[2].mxu0 %vm1035_vm1, %v810_v61 }
 0x171   : > { %4193 = vmatprep.mubr.msk.f32.mxu0 %vm4643_vm0, %v4644_v59 }
 0x174   : > { %4194 = vmatmul.mubr.msk.f32.gmra.mrb[4].mxu0 %vm1035_vm1, %v817_v62 }
 0x175   : > { %4196 = vmatprep.mubr.msk.f32.mxu0 %vm4643_vm0, %v4644_v59 }
 0x178   : > { %4197 = vmatmul.mubr.msk.f32.gmra.mrb[6].mxu0 %vm1035_vm1, %v824_v63 }
 0x179   : > { %4199 = vmatprep.mubr.msk.f32.mxu0 %vm4643_vm0, %v4644_v59 }
 0x17c   : > { %4200 = vmatmul.mubr.msk.f32.gmra.mrb[8].mxu0 %vm1035_vm1, %v831_v0 }
 0x17d   : > { %4202 = vmatprep.mubr.msk.f32.mxu0 %vm4643_vm0, %v4644_v59 }
 0x180   : > { %4203 = vmatmul.mubr.msk.f32.gmra.mrb[10].mxu0 %vm1035_vm1, %v838_v1  ;;  %v1914_v1 = vld [vmem:[%s6969_s4 + $0xb8] sm:$0xff] }
 0x181   : > { %4205 = vmatprep.mubr.msk.f32.mxu0 %vm4643_vm0, %v4644_v59  ;;  %2110 = vperm.xlu1 %4601, %v1914_v1  }
 0x184   : > { %4206 = vmatmul.mubr.msk.f32.gmra.mrb[12].mxu0 %vm1035_vm1, %v845_v2  ;;  %v1913_v2 = vld [vmem:[%s6969_s4 + $0xb0] sm:$0xff] }
 0x185   : > { %4208 = vmatprep.mubr.msk.f32.mxu0 %vm4643_vm0, %v4644_v59  ;;  %2105 = vperm.xlu0 %4600, %v1913_v2  }
 0x188   : > { %4209 = vmatmul.mubr.msk.f32.gmra.mrb[14].mxu0 %vm1035_vm1, %v852_v3 }
 0x189   : > { %4211 = vmatprep.mubr.msk.f32.mxu0 %vm4643_vm0, %v4644_v59 }
 0x18c   : > { %4212 = vmatmul.mubr.msk.f32.gmra.mrb[16].mxu0 %vm1035_vm1, %v859_v4 }
 0x18d   : > { %4214 = vmatprep.mubr.msk.f32.mxu0 %vm4643_vm0, %v4644_v59 }
 0x190   : > { %4215 = vmatmul.mubr.msk.f32.gmra.mrb[18].mxu0 %vm1035_vm1, %v866_v5 }
 0x191   : > { %4217 = vmatprep.mubr.msk.f32.mxu0 %vm4643_vm0, %v4644_v59 }
 0x194   : > { %4218 = vmatmul.mubr.msk.f32.gmra.mrb[20].mxu0 %vm1035_vm1, %v873_v6  ;;  %v1916_v6 = vld [vmem:[%s6969_s4 + $0xc8] sm:$0xff] }
 0x195   : > { %4220 = vmatprep.mubr.msk.f32.mxu0 %vm4643_vm0, %v4644_v59  ;;  %2120 = vperm.xlu1 %4601, %v1916_v6   ;;  %v1933_v6 = vld [vmem:[%s6969_s4 + $0x150] sm:$0xff] }
 0x198   : > { %4221 = vmatmul.mubr.msk.f32.gmra.mrb[22].mxu0 %vm1035_vm1, %v880_v7  ;;  %v1915_v7 = vld [vmem:[%s6969_s4 + $0xc0] sm:$0xff] }
 0x199   : > { %4223 = vmatprep.mubr.msk.f32.mxu0 %vm4643_vm0, %v4644_v59  ;;  %2115 = vperm.xlu0 %4600, %v1915_v7  }
 0x19a   : > { %2130 = vperm.xlu1 %4601, %v1918_v14   ;;  %v1687_v14 = vld [vmem:[%s6968_s3] sm:$0xff] }
 0x19c   : > { %4224 = vmatmul.mubr.msk.f32.gmra.mrb[24].mxu0 %vm1035_vm1, %v887_v8  ;;  %v1024_v8 = vld [vmem:[%s5585_s18 + $0x30] sm:$0xff] }
 0x19d   : > { %4226 = vmatprep.mubr.msk.f32.mxu0 %vm4643_vm0, %v4644_v59  ;;  %2125 = vperm.xlu0 %4600, %v1917_v15   ;;  %v1716_v15 = vld [vmem:[%s6968_s3 + $0xe8] sm:$0xff] }
 0x19e   : > { %2140 = vperm.xlu1 %4601, %v1920_v19   ;;  %v1689_v19 = vld [vmem:[%s6968_s3 + $0x10] sm:$0xff] }
 0x1a0   : > { %4227 = vmatmul.mubr.msk.f32.gmra.mrb[26].mxu0 %vm1035_vm1, %v894_v9  ;;  %v1025_v9 = vld [vmem:[%s5585_s18 + $0x38] sm:$0xff] }
 0x1a1   : > { %4229 = vmatprep.mubr.msk.f32.mxu0 %vm4643_vm0, %v4644_v59  ;;  %2135 = vperm.xlu0 %4600, %v1919_v20   ;;  %v1718_v20 = vld [vmem:[%s6968_s3 + $0xf8] sm:$0xff] }
 0x1a4   : > { %4230 = vmatmul.mubr.msk.f32.gmra.mrb[28].mxu0 %vm1035_vm1, %v901_v10 }
 0x1a5   : > { %4232 = vmatprep.mubr.msk.f32.mxu0 %vm4643_vm0, %v4644_v59 }
 0x1a8   : > { %4233 = vmatmul.mubr.msk.f32.gmra.mrb[30].mxu0 %vm1035_vm1, %v908_v11 }
 0x1a9   : > { %4235 = vmatprep.mubr.msk.f32.mxu0 %vm4643_vm0, %v4644_v59 }
 0x1ac   : > { %4236 = vmatmul.mubr.msk.f32.gmra.mrb[32].mxu0 %vm1035_vm1, %v915_v12 }
 0x23f   : > { %v1603_v27 = vpop.f32.mrb[0].mxu0 }
 0x240   : > { %v4189_v28 = vpop.f32.mrb[1].mxu0  ;;  %v4433_v34 = vadd.f32 %v1603_v27, %v1018_v31  ;;  %v1922_v27 = vld [vmem:[%s6969_s4 + $0xf8] sm:$0xff] }
 0x241   : > { %v1921_v28 = vld [vmem:[%s6969_s4 + $0xf0] sm:$0xff]  ;;  %2150 = vperm.xlu1 %4601, %v1922_v27   ;;  %v1694_v27 = vld [vmem:[%s6968_s3 + $0x38] sm:$0xff] }
 0x242   : > { %2145 = vperm.xlu0 %4600, %v1921_v28   ;;  %v1942_v28 = vld [vmem:[%s6969_s4 + $0x198] sm:$0xff] }
 0x243   : > { %v1608_v33 = vpop.f32.mrb[2].mxu0 }
 0x244   : > { %v4434_v35 = vadd.f32 %v1608_v33, %v1019_v32  ;;  %v4192_v36 = vpop.f32.mrb[3].mxu0  ;;  %v1924_v32 = vld [vmem:[%s6969_s4 + $0x108] sm:$0xff]  ;;  %v1923_v33 = vld [vmem:[%s6969_s4 + $0x100] sm:$0xff] }
 0x245   : > { %2160 = vperm.xlu1 %4601, %v1924_v32   ;;  %v1688_v36 = vld [vmem:[%s6968_s3 + $0x8] sm:$0xff]  ;;  %v1722_v32 = vld [vmem:[%s6968_s3 + $0x118] sm:$0xff] }
 0x246   : > { %v4392_v39 = vpack.c.bf16 %v4434_v35, %v4433_v34  ;;  %v1028_v34 = vld [vmem:[%s5585_s18 + $0x50] sm:$0xff]  ;;  %v1029_v35 = vld [vmem:[%s5585_s18 + $0x58] sm:$0xff]  ;;  %2155 = vperm.xlu0 %4600, %v1923_v33   ;;  %4047 = vmatprep.mubr.msk.f32.mxu0 %vm2503_vm2, %v1688_v36  ;;  %v1696_v33 = vld [vmem:[%s6968_s3 + $0x48] sm:$0xff] }
 0x247   : > { %v1613_v40 = vpop.f32.mrb[4].mxu0  ;;  %v1721_v36 = vld [vmem:[%s6968_s3 + $0x110] sm:$0xff] }
 0x248   : > { %v4195_v41 = vpop.f32.mrb[5].mxu0  ;;  %4393 = vmatpush1.bf16.msra.mxu0 %v4392_v39  ;;  %4424 = vmatpush1.bf16.msra.mxu1 %v4392_v39  ;;  %v4435_v47 = vadd.f32 %v1613_v40, %v1020_v44 }
 0x249   : > { %4394 = vmatprep.subr.bf16.mxu0 %v4642_v56  ;;  %4416 = vmatprep.subr.bf16.mxu1 %v4642_v56  ;;  %v1926_v41 = vld [vmem:[%s6969_s4 + $0x118] sm:$0xff] }
 0x24a   : > { %2170 = vperm.xlu1 %4601, %v1926_v41   ;;  %2165 = vperm.xlu0 %4600, %v1925_v42   ;;  %v1945_v41 = vld [vmem:[%s6969_s4 + $0x1b0] sm:$0xff]  ;;  %v1723_v42 = vld [vmem:[%s6968_s3 + $0x120] sm:$0xff] }
 0x24b   : > { %v1618_v46 = vpop.f32.mrb[6].mxu0 }
 0x24c   : > { %v4436_v48 = vadd.f32 %v1618_v46, %v1021_v45  ;;  %v4198_v49 = vpop.f32.mrb[7].mxu0  ;;  %v1928_v46 = vld [vmem:[%s6969_s4 + $0x128] sm:$0xff] }
 0x24d   : > { %v1031_v49 = vld [vmem:[%s5585_s18 + $0x68] sm:$0xff] }
 0x24e   : > { %v4395_v52 = vpack.c.bf16 %v4436_v48, %v4435_v47  ;;  %v1927_v47 = vld [vmem:[%s6969_s4 + $0x120] sm:$0xff]  ;;  %2180 = vperm.xlu1 %4601, %v1928_v46   ;;  %v1948_v46 = vld [vmem:[%s6969_s4 + $0x1c8] sm:$0xff] }
 0x24f   : > { %v1623_v53 = vpop.f32.mrb[8].mxu0  ;;  %v1030_v48 = vld [vmem:[%s5585_s18 + $0x60] sm:$0xff]  ;;  %2175 = vperm.xlu0 %4600, %v1927_v47  }
 0x250   : > { %v4201_v54 = vpop.f32.mrb[9].mxu0  ;;  %4396 = vmatpush1.bf16.msra.mxu0 %v4395_v52  ;;  %4425 = vmatpush1.bf16.msra.mxu1 %v4395_v52  ;;  %v4437_v62 = vadd.f32 %v1623_v53, %v1022_v58  ;;  %v1947_v47 = vld [vmem:[%s6969_s4 + $0x1c0] sm:$0xff] }
 0x251   : > { %4397 = vmatprep.subr.bf16.mxu0 %v4642_v56  ;;  %4417 = vmatprep.subr.bf16.mxu1 %v4642_v56  ;;  %v1930_v54 = vld [vmem:[%s6969_s4 + $0x138] sm:$0xff] }
 0x252   : > { %2190 = vperm.xlu1 %4601, %v1930_v54   ;;  %v1727_v54 = vld [vmem:[%s6968_s3 + $0x140] sm:$0xff] }
 0x253   : > { %v1628_v61 = vpop.f32.mrb[10].mxu0  ;;  %2185 = vperm.xlu0 %4600, %v1929_v55   ;;  %v1701_v55 = vld [vmem:[%s6968_s3 + $0x70] sm:$0xff] }
 0x254   : > { %v4438_v63 = vadd.f32 %v1628_v61, %v1023_v60  ;;  %v4204_v0 = vpop.f32.mrb[11].mxu0  ;;  %v1932_v61 = vld [vmem:[%s6969_s4 + $0x148] sm:$0xff] }
 0x255   : > { %v1033_v0 = vld [vmem:[%s5585_s18 + $0x78] sm:$0xff] }
 0x256   : > { %v4398_v3 = vpack.c.bf16 %v4438_v63, %v4437_v62  ;;  %v1931_v62 = vld [vmem:[%s6969_s4 + $0x140] sm:$0xff]  ;;  %v1032_v63 = vld [vmem:[%s5585_s18 + $0x70] sm:$0xff]  ;;  %2200 = vperm.xlu1 %4601, %v1932_v61  }
 0x257   : > { %v1633_v4 = vpop.f32.mrb[12].mxu0  ;;  %2195 = vperm.xlu0 %4600, %v1931_v62   ;;  %v1951_v61 = vld [vmem:[%s6969_s4 + $0x1e0] sm:$0xff]  ;;  %v1729_v62 = vld [vmem:[%s6968_s3 + $0x150] sm:$0xff] }
 0x258   : > { %v4207_v5 = vpop.f32.mrb[13].mxu0  ;;  %4399 = vmatpush1.bf16.msra.mxu0 %v4398_v3  ;;  %4426 = vmatpush1.bf16.msra.mxu1 %v4398_v3  ;;  %v4439_v11 = vadd.f32 %v1633_v4, %v1024_v8  ;;  %v1034_v8 = vld [vmem:[%s5585_s18 + $0x80] sm:$0xff] }
 0x259   : > { %4400 = vmatprep.subr.bf16.mxu0 %v4642_v56  ;;  %4418 = vmatprep.subr.bf16.mxu1 %v4642_v56  ;;  %v1934_v5 = vld [vmem:[%s6969_s4 + $0x158] sm:$0xff] }
 0x25a   : > { %2210 = vperm.xlu1 %4601, %v1934_v5   ;;  %v1705_v5 = vld [vmem:[%s6968_s3 + $0x90] sm:$0xff] }
 0x25b   : > { %v1638_v10 = vpop.f32.mrb[14].mxu0  ;;  %2205 = vperm.xlu0 %4600, %v1933_v6   ;;  %v1734_v6 = vld [vmem:[%s6968_s3 + $0x178] sm:$0xff] }
 0x25c   : > { %v4440_v12 = vadd.f32 %v1638_v10, %v1025_v9  ;;  %v4210_v13 = vpop.f32.mrb[15].mxu0  ;;  %v1936_v10 = vld [vmem:[%s6969_s4 + $0x168] sm:$0xff] }
 0x25d   : > { %v1713_v13 = vld [vmem:[%s6968_s3 + $0xd0] sm:$0xff] }
 0x25e   : > { %v4401_v16 = vpack.c.bf16 %v4440_v12, %v4439_v11  ;;  %v1935_v11 = vld [vmem:[%s6969_s4 + $0x160] sm:$0xff]  ;;  %2220 = vperm.xlu1 %4601, %v1936_v10  }
 0x25f   : > { %v1643_v17 = vpop.f32.mrb[16].mxu0  ;;  %2215 = vperm.xlu0 %4600, %v1935_v11   ;;  %v1707_v10 = vld [vmem:[%s6968_s3 + $0xa0] sm:$0xff]  ;;  %v1736_v11 = vld [vmem:[%s6968_s3 + $0x188] sm:$0xff] }
 0x260   : > { %v4213_v18 = vpop.f32.mrb[17].mxu0  ;;  %4402 = vmatpush1.bf16.msra.mxu0 %v4401_v16  ;;  %4427 = vmatpush1.bf16.msra.mxu1 %v4401_v16  ;;  %v4441_v24 = vadd.f32 %v1643_v17, %v1026_v21  ;;  %v1690_v16 = vld [vmem:[%s6968_s3 + $0x18] sm:$0xff]  ;;  %v1937_v17 = vld [vmem:[%s6969_s4 + $0x170] sm:$0xff]  ;;  %v1692_v21 = vld [vmem:[%s6968_s3 + $0x28] sm:$0xff] }
 0x261   : > { %4403 = vmatprep.subr.bf16.mxu0 %v4642_v56  ;;  %4419 = vmatprep.subr.bf16.mxu1 %v4642_v56  ;;  %v1715_v18 = vld [vmem:[%s6968_s3 + $0xe0] sm:$0xff] }
 0x263   : > { %v1648_v23 = vpop.f32.mrb[18].mxu0  ;;  %2225 = vperm.xlu0 %4600, %v1937_v17   ;;  %v1712_v17 = vld [vmem:[%s6968_s3 + $0xc8] sm:$0xff] }
 0x264   : > { %v4442_v25 = vadd.f32 %v1648_v23, %v1027_v22  ;;  %v4216_v26 = vpop.f32.mrb[19].mxu0  ;;  %v1940_v22 = vld [vmem:[%s6969_s4 + $0x188] sm:$0xff]  ;;  %v1939_v23 = vld [vmem:[%s6969_s4 + $0x180] sm:$0xff] }
 0x265   : > { %v1720_v26 = vld [vmem:[%s6968_s3 + $0x108] sm:$0xff] }
 0x266   : > { %v4404_v29 = vpack.c.bf16 %v4442_v25, %v4441_v24  ;;  %v1717_v24 = vld [vmem:[%s6968_s3 + $0xf0] sm:$0xff]  ;;  %v1691_v25 = vld [vmem:[%s6968_s3 + $0x20] sm:$0xff] }
 0x267   : > { %v1653_v30 = vpop.f32.mrb[20].mxu0  ;;  %2235 = vperm.xlu0 %4600, %v1939_v23   ;;  %v1962_v23 = vld [vmem:[%s6969_s4 + $0x238] sm:$0xff] }
 0x268   : > { %v4219_v31 = vpop.f32.mrb[21].mxu0  ;;  %4405 = vmatpush1.bf16.msra.mxu0 %v4404_v29  ;;  %4428 = vmatpush1.bf16.msra.mxu1 %v4404_v29  ;;  %v4443_v38 = vadd.f32 %v1653_v30, %v1028_v34  ;;  %v1941_v29 = vld [vmem:[%s6969_s4 + $0x190] sm:$0xff]  ;;  %v1719_v30 = vld [vmem:[%s6968_s3 + $0x100] sm:$0xff]  ;;  %v1944_v34 = vld [vmem:[%s6969_s4 + $0x1a8] sm:$0xff] }
 0x269   : > { %4406 = vmatprep.subr.bf16.mxu0 %v4642_v56  ;;  %4420 = vmatprep.subr.bf16.mxu1 %v4642_v56  ;;  %v1693_v31 = vld [vmem:[%s6968_s3 + $0x30] sm:$0xff] }
 0x26b   : > { %v1658_v37 = vpop.f32.mrb[22].mxu0  ;;  %2245 = vperm.xlu0 %4600, %v1941_v29   ;;  %v1741_v29 = vld [vmem:[%s6968_s3 + $0x1b0] sm:$0xff] }
 0x26c   : > { %v4444_v39 = vadd.f32 %v1658_v37, %v1029_v35  ;;  %v4222_v40 = vpop.f32.mrb[23].mxu0  ;;  %v1943_v35 = vld [vmem:[%s6969_s4 + $0x1a0] sm:$0xff] }
 0x26d   : > { %v1695_v37 = vld [vmem:[%s6968_s3 + $0x40] sm:$0xff]  ;;  %v1946_v40 = vld [vmem:[%s6969_s4 + $0x1b8] sm:$0xff] }
 0x26e   : > { %v4407_v43 = vpack.c.bf16 %v4444_v39, %v4443_v38  ;;  %v1724_v38 = vld [vmem:[%s6968_s3 + $0x128] sm:$0xff]  ;;  %v1698_v39 = vld [vmem:[%s6968_s3 + $0x58] sm:$0xff] }
 0x26f   : > { %v1663_v44 = vpop.f32.mrb[24].mxu0  ;;  %2255 = vperm.xlu0 %4600, %v1943_v35   ;;  %v1968_v35 = vld [vmem:[%s6969_s4 + $0x268] sm:$0xff] }
 0x270   : > { %v4225_v45 = vpop.f32.mrb[25].mxu0  ;;  %4408 = vmatpush1.bf16.msra.mxu0 %v4407_v43  ;;  %4429 = vmatpush1.bf16.msra.mxu1 %v4407_v43  ;;  %v4445_v51 = vadd.f32 %v1663_v44, %v1030_v48  ;;  %v1697_v43 = vld [vmem:[%s6968_s3 + $0x50] sm:$0xff]  ;;  %v1726_v44 = vld [vmem:[%s6968_s3 + $0x138] sm:$0xff] }
 0x271   : > { %4409 = vmatprep.subr.bf16.mxu0 %v4642_v56  ;;  %4421 = vmatprep.subr.bf16.mxu1 %v4642_v56  ;;  %v1700_v45 = vld [vmem:[%s6968_s3 + $0x68] sm:$0xff]  ;;  %v1725_v48 = vld [vmem:[%s6968_s3 + $0x130] sm:$0xff] }
 0x273   : > { %v1668_v50 = vpop.f32.mrb[26].mxu0  ;;  %2265 = vperm.xlu0 %4600, %v1945_v41   ;;  %v1747_v41 = vld [vmem:[%s6968_s3 + $0x1e0] sm:$0xff] }
 0x274   : > { %v4446_v52 = vadd.f32 %v1668_v50, %v1031_v49  ;;  %v4228_v53 = vpop.f32.mrb[27].mxu0  ;;  %v1699_v49 = vld [vmem:[%s6968_s3 + $0x60] sm:$0xff]  ;;  %v1728_v50 = vld [vmem:[%s6968_s3 + $0x148] sm:$0xff] }
 0x275   : > { %v1949_v53 = vld [vmem:[%s6969_s4 + $0x1d0] sm:$0xff] }
 0x276   : > { %v4410_v57 = vpack.c.bf16 %v4446_v52, %v4445_v51  ;;  %v1702_v51 = vld [vmem:[%s6968_s3 + $0x78] sm:$0xff] }
 0x277   : > { %v1673_v58 = vpop.f32.mrb[28].mxu0  ;;  %2275 = vperm.xlu0 %4600, %v1947_v47   ;;  %v1950_v52 = vld [vmem:[%s6969_s4 + $0x1d8] sm:$0xff] }
 0x278   : > { %v4231_v60 = vpop.f32.mrb[29].mxu0  ;;  %4411 = vmatpush1.bf16.msra.mxu0 %v4410_v57  ;;  %4430 = vmatpush1.bf16.msra.mxu1 %v4410_v57  ;;  %v4447_v2 = vadd.f32 %v1673_v58, %v1032_v63  ;;  %v1730_v57 = vld [vmem:[%s6968_s3 + $0x158] sm:$0xff]  ;;  %v1704_v58 = vld [vmem:[%s6968_s3 + $0x88] sm:$0xff]  ;;  %v1703_v63 = vld [vmem:[%s6968_s3 + $0x80] sm:$0xff] }
 0x279   : > { %4412 = vmatprep.subr.bf16.mxu0 %v4642_v56  ;;  %4422 = vmatprep.subr.bf16.mxu1 %v4642_v56  ;;  %v1952_v60 = vld [vmem:[%s6969_s4 + $0x1e8] sm:$0xff]  ;;  %v1974_v47 = vld [vmem:[%s6969_s4 + $0x298] sm:$0xff] }
 0x27b   : > { %v1678_v1 = vpop.f32.mrb[30].mxu0  ;;  %2285 = vperm.xlu0 %4600, %v1949_v53   ;;  %v1753_v53 = vld [vmem:[%s6968_s3 + $0x210] sm:$0xff] }
 0x27c   : > { %v4448_v3 = vadd.f32 %v1678_v1, %v1033_v0  ;;  %v4234_v4 = vpop.f32.mrb[31].mxu0  ;;  %v1732_v0 = vld [vmem:[%s6968_s3 + $0x168] sm:$0xff]  ;;  %v1706_v1 = vld [vmem:[%s6968_s3 + $0x98] sm:$0xff] }
 0x27d   : > { %v1731_v4 = vld [vmem:[%s6968_s3 + $0x160] sm:$0xff] }
 0x27e   : > { %v4413_v7 = vpack.c.bf16 %v4448_v3, %v4447_v2  ;;  %v1954_v2 = vld [vmem:[%s6969_s4 + $0x1f8] sm:$0xff]  ;;  %v1953_v3 = vld [vmem:[%s6969_s4 + $0x1f0] sm:$0xff] }
 0x27f   : > { %v1683_v9 = vpop.f32.mrb[32].mxu0  ;;  %2295 = vperm.xlu0 %4600, %v1951_v61   ;;  %v1980_v61 = vld [vmem:[%s6969_s4 + $0x2c8] sm:$0xff] }
 0x280   : > { %v4237_v56 = vpop.f32.mrb[33].mxu0  ;;  %4414 = vmatpush1.bf16.msra.mxu0 %v4413_v7  ;;  %4431 = vmatpush1.bf16.msra.mxu1 %v4413_v7  ;;  %v4449_v12 = vadd.f32 %v1683_v9, %v1034_v8  ;;  %v1708_v7 = vld [vmem:[%s6968_s3 + $0xa8] sm:$0xff]  ;;  %v1955_v9 = vld [vmem:[%s6969_s4 + $0x200] sm:$0xff] }
 0x281   : > { %2842 = vmatprep.subr.mxu0 %v4644_v59  ;;  %4423 = vmatprep.subr.mxu1 %v4644_v59  ;;  %v1938_v59 = vld [vmem:[%s6969_s4 + $0x178] sm:$0xff]  ;;  %v1956_v8 = vld [vmem:[%s6969_s4 + $0x208] sm:$0xff]  ;;  %v1733_v56 = vld [vmem:[%s6968_s3 + $0x170] sm:$0xff] }
 0x282   : > { %2230 = vperm.xlu1 %4601, %v1938_v59   ;;  %v1738_v59 = vld [vmem:[%s6968_s3 + $0x198] sm:$0xff] }
 0x283   : > { %2305 = vperm.xlu0 %4600, %v1953_v3   ;;  %v1759_v3 = vld [vmem:[%s6968_s3 + $0x240] sm:$0xff] }
 0x284   : > { %2843 = vmatpush1.msra.mxu0 %v4449_v12  ;;  %4432 = vmatpush1.msra.mxu1 %v4449_v12  ;;  %v1710_v12 = vld [vmem:[%s6968_s3 + $0xb8] sm:$0xff] }
 0x285   : > { %2940 = vmatmul.mubr.f32.vlgmr.msra.gmra.mrb[0].mxu1 %v1713_v13  ;;  %2875 = vmatmul.mubr.f32.vlgmr.msra.gmra.mrb[34].mxu0 %v1687_v14  ;;  %v1958_v13 = vld [vmem:[%s6969_s4 + $0x218] sm:$0xff]  ;;  %v1957_v14 = vld [vmem:[%s6969_s4 + $0x210] sm:$0xff] }
 0x286   : > { %4061 = vmatprep.mubr.msk.f32.mxu1 %vm2503_vm2, %v1716_v15  ;;  %4048 = vmatprep.mubr.msk.f32.mxu0 %vm2503_vm2, %v1690_v16  ;;  %v1735_v15 = vld [vmem:[%s6968_s3 + $0x180] sm:$0xff]  ;;  %v1709_v16 = vld [vmem:[%s6968_s3 + $0xb0] sm:$0xff] }
 0x287   : > { %2240 = vperm.xlu1 %4601, %v1940_v22   ;;  %2315 = vperm.xlu0 %4600, %v1955_v9   ;;  %v1740_v22 = vld [vmem:[%s6968_s3 + $0x1a8] sm:$0xff]  ;;  %v1986_v9 = vld [vmem:[%s6969_s4 + $0x2f8] sm:$0xff] }
 0x289   : > { %2945 = vmatmul.mubr.f32.gmra.mrb[2].mxu1 %v1715_v18  ;;  %2880 = vmatmul.mubr.f32.gmra.mrb[36].mxu0 %v1689_v19  ;;  %v1960_v18 = vld [vmem:[%s6969_s4 + $0x228] sm:$0xff]  ;;  %v1959_v19 = vld [vmem:[%s6969_s4 + $0x220] sm:$0xff] }
 0x28a   : > { %4062 = vmatprep.mubr.msk.f32.mxu1 %vm2503_vm2, %v1718_v20  ;;  %4049 = vmatprep.mubr.msk.f32.mxu0 %vm2503_vm2, %v1692_v21  ;;  %v1737_v20 = vld [vmem:[%s6968_s3 + $0x190] sm:$0xff]  ;;  %v1711_v21 = vld [vmem:[%s6968_s3 + $0xc0] sm:$0xff] }
 0x28b   : > { %2250 = vperm.xlu1 %4601, %v1942_v28   ;;  %2325 = vperm.xlu0 %4600, %v1957_v14   ;;  %v1963_v28 = vld [vmem:[%s6969_s4 + $0x240] sm:$0xff]  ;;  %v1765_v14 = vld [vmem:[%s6968_s3 + $0x270] sm:$0xff] }
 0x28d   : > { %2950 = vmatmul.mubr.f32.gmra.mrb[4].mxu1 %v1717_v24  ;;  %2885 = vmatmul.mubr.f32.gmra.mrb[38].mxu0 %v1691_v25  ;;  %v1961_v24 = vld [vmem:[%s6969_s4 + $0x230] sm:$0xff]  ;;  %v1739_v25 = vld [vmem:[%s6968_s3 + $0x1a0] sm:$0xff] }
 0x28e   : > { %4063 = vmatprep.mubr.msk.f32.mxu1 %vm2503_vm2, %v1720_v26  ;;  %4050 = vmatprep.mubr.msk.f32.mxu0 %vm2503_vm2, %v1694_v27  ;;  %v1742_v26 = vld [vmem:[%s6968_s3 + $0x1b8] sm:$0xff]  ;;  %v1964_v27 = vld [vmem:[%s6969_s4 + $0x248] sm:$0xff] }
 0x28f   : > { %2260 = vperm.xlu1 %4601, %v1944_v34   ;;  %2335 = vperm.xlu0 %4600, %v1959_v19   ;;  %v1746_v34 = vld [vmem:[%s6968_s3 + $0x1d8] sm:$0xff]  ;;  %v1767_v19 = vld [vmem:[%s6968_s3 + $0x280] sm:$0xff] }
 0x291   : > { %2955 = vmatmul.mubr.f32.gmra.mrb[6].mxu1 %v1719_v30  ;;  %2890 = vmatmul.mubr.f32.gmra.mrb[40].mxu0 %v1693_v31  ;;  %v1744_v30 = vld [vmem:[%s6968_s3 + $0x1c8] sm:$0xff]  ;;  %v1966_v31 = vld [vmem:[%s6969_s4 + $0x258] sm:$0xff] }
 0x292   : > { %4064 = vmatprep.mubr.msk.f32.mxu1 %vm2503_vm2, %v1722_v32  ;;  %4051 = vmatprep.mubr.msk.f32.mxu0 %vm2503_vm2, %v1696_v33  ;;  %v1965_v32 = vld [vmem:[%s6969_s4 + $0x250] sm:$0xff]  ;;  %v1743_v33 = vld [vmem:[%s6968_s3 + $0x1c0] sm:$0xff] }
 0x293   : > { %2270 = vperm.xlu1 %4601, %v1946_v40   ;;  %2345 = vperm.xlu0 %4600, %v1961_v24   ;;  %v1969_v40 = vld [vmem:[%s6969_s4 + $0x270] sm:$0xff]  ;;  %v1772_v24 = vld [vmem:[%s6968_s3 + $0x2a8] sm:$0xff] }
 0x295   : > { %2960 = vmatmul.mubr.f32.gmra.mrb[8].mxu1 %v1721_v36  ;;  %2895 = vmatmul.mubr.f32.gmra.mrb[42].mxu0 %v1695_v37  ;;  %v1967_v36 = vld [vmem:[%s6969_s4 + $0x260] sm:$0xff]  ;;  %v1745_v37 = vld [vmem:[%s6968_s3 + $0x1d0] sm:$0xff] }
 0x296   : > { %4065 = vmatprep.mubr.msk.f32.mxu1 %vm2503_vm2, %v1724_v38  ;;  %4052 = vmatprep.mubr.msk.f32.mxu0 %vm2503_vm2, %v1698_v39  ;;  %v1748_v38 = vld [vmem:[%s6968_s3 + $0x1e8] sm:$0xff]  ;;  %v1970_v39 = vld [vmem:[%s6969_s4 + $0x278] sm:$0xff] }
 0x297   : > { %2280 = vperm.xlu1 %4601, %v1948_v46   ;;  %2355 = vperm.xlu0 %4600, %v1963_v28   ;;  %v1752_v46 = vld [vmem:[%s6968_s3 + $0x208] sm:$0xff]  ;;  %v1774_v28 = vld [vmem:[%s6968_s3 + $0x2b8] sm:$0xff] }
 0x299   : > { %2965 = vmatmul.mubr.f32.gmra.mrb[10].mxu1 %v1723_v42  ;;  %2900 = vmatmul.mubr.f32.gmra.mrb[44].mxu0 %v1697_v43  ;;  %v1750_v42 = vld [vmem:[%s6968_s3 + $0x1f8] sm:$0xff]  ;;  %v1972_v43 = vld [vmem:[%s6969_s4 + $0x288] sm:$0xff] }
 0x29a   : > { %4066 = vmatprep.mubr.msk.f32.mxu1 %vm2503_vm2, %v1726_v44  ;;  %4053 = vmatprep.mubr.msk.f32.mxu0 %vm2503_vm2, %v1700_v45  ;;  %v1971_v44 = vld [vmem:[%s6969_s4 + $0x280] sm:$0xff]  ;;  %v1749_v45 = vld [vmem:[%s6968_s3 + $0x1f0] sm:$0xff] }
 0x29b   : > { %2290 = vperm.xlu1 %4601, %v1950_v52   ;;  %2365 = vperm.xlu0 %4600, %v1965_v32   ;;  %v1975_v52 = vld [vmem:[%s6969_s4 + $0x2a0] sm:$0xff]  ;;  %v1778_v32 = vld [vmem:[%s6968_s3 + $0x2d8] sm:$0xff] }
 0x29d   : > { %2970 = vmatmul.mubr.f32.gmra.mrb[12].mxu1 %v1725_v48  ;;  %2905 = vmatmul.mubr.f32.gmra.mrb[46].mxu0 %v1699_v49  ;;  %v1973_v48 = vld [vmem:[%s6969_s4 + $0x290] sm:$0xff]  ;;  %v1751_v49 = vld [vmem:[%s6968_s3 + $0x200] sm:$0xff] }
 0x29e   : > { %4067 = vmatprep.mubr.msk.f32.mxu1 %vm2503_vm2, %v1728_v50  ;;  %4054 = vmatprep.mubr.msk.f32.mxu0 %vm2503_vm2, %v1702_v51  ;;  %v1754_v50 = vld [vmem:[%s6968_s3 + $0x218] sm:$0xff]  ;;  %v1976_v51 = vld [vmem:[%s6969_s4 + $0x2a8] sm:$0xff] }
 0x29f   : > { %2300 = vperm.xlu1 %4601, %v1952_v60   ;;  %2375 = vperm.xlu0 %4600, %v1967_v36   ;;  %v1758_v60 = vld [vmem:[%s6968_s3 + $0x238] sm:$0xff] }
 0x2a0   : > { %v1782_v36 = vld [vmem:[%s6968_s3 + $0x2f8] sm:$0xff] }
 0x2a1   : > { %2975 = vmatmul.mubr.f32.gmra.mrb[14].mxu1 %v1727_v54  ;;  %2910 = vmatmul.mubr.f32.gmra.mrb[48].mxu0 %v1701_v55  ;;  %v1756_v54 = vld [vmem:[%s6968_s3 + $0x228] sm:$0xff]  ;;  %v1978_v55 = vld [vmem:[%s6969_s4 + $0x2b8] sm:$0xff] }
 0x2a2   : > { %4068 = vmatprep.mubr.msk.f32.mxu1 %vm2503_vm2, %v1730_v57  ;;  %4055 = vmatprep.mubr.msk.f32.mxu0 %vm2503_vm2, %v1704_v58  ;;  %v1977_v57 = vld [vmem:[%s6969_s4 + $0x2b0] sm:$0xff]  ;;  %v1755_v58 = vld [vmem:[%s6968_s3 + $0x220] sm:$0xff] }
 0x2a3   : > { %2310 = vperm.xlu1 %4601, %v1954_v2   ;;  %2385 = vperm.xlu0 %4600, %v1969_v40   ;;  %v1981_v2 = vld [vmem:[%s6969_s4 + $0x2d0] sm:$0xff]  ;;  %v1786_v40 = vld [vmem:[%s6968_s3 + $0x318] sm:$0xff] }
 0x2a5   : > { %2980 = vmatmul.mubr.f32.gmra.mrb[16].mxu1 %v1729_v62  ;;  %2915 = vmatmul.mubr.f32.gmra.mrb[50].mxu0 %v1703_v63  ;;  %v1979_v62 = vld [vmem:[%s6969_s4 + $0x2c0] sm:$0xff]  ;;  %v1757_v63 = vld [vmem:[%s6968_s3 + $0x230] sm:$0xff] }
 0x2a6   : > { %4069 = vmatprep.mubr.msk.f32.mxu1 %vm2503_vm2, %v1732_v0  ;;  %4056 = vmatprep.mubr.msk.f32.mxu0 %vm2503_vm2, %v1706_v1  ;;  %v1760_v0 = vld [vmem:[%s6968_s3 + $0x248] sm:$0xff]  ;;  %v1982_v1 = vld [vmem:[%s6969_s4 + $0x2d8] sm:$0xff] }
 0x2a7   : > { %2320 = vperm.xlu1 %4601, %v1956_v8   ;;  %2395 = vperm.xlu0 %4600, %v1971_v44   ;;  %v1764_v8 = vld [vmem:[%s6968_s3 + $0x268] sm:$0xff]  ;;  %v1790_v44 = vld [vmem:[%s6968_s3 + $0x338] sm:$0xff] }
 0x2a9   : > { %2985 = vmatmul.mubr.f32.gmra.mrb[18].mxu1 %v1731_v4  ;;  %2920 = vmatmul.mubr.f32.gmra.mrb[52].mxu0 %v1705_v5  ;;  %v1762_v4 = vld [vmem:[%s6968_s3 + $0x258] sm:$0xff]  ;;  %v1984_v5 = vld [vmem:[%s6969_s4 + $0x2e8] sm:$0xff] }
 0x2aa   : > { %4070 = vmatprep.mubr.msk.f32.mxu1 %vm2503_vm2, %v1734_v6  ;;  %4057 = vmatprep.mubr.msk.f32.mxu0 %vm2503_vm2, %v1708_v7  ;;  %v1983_v6 = vld [vmem:[%s6969_s4 + $0x2e0] sm:$0xff]  ;;  %v1761_v7 = vld [vmem:[%s6968_s3 + $0x250] sm:$0xff] }
 0x2ab   : > { %2330 = vperm.xlu1 %4601, %v1958_v13   ;;  %2405 = vperm.xlu0 %4600, %v1973_v48   ;;  %v1987_v13 = vld [vmem:[%s6969_s4 + $0x300] sm:$0xff]  ;;  %v1794_v48 = vld [vmem:[%s6968_s3 + $0x358] sm:$0xff] }
 0x2ad   : > { %2990 = vmatmul.mubr.f32.gmra.mrb[20].mxu1 %v1733_v56  ;;  %2925 = vmatmul.mubr.f32.gmra.mrb[54].mxu0 %v1707_v10  ;;  %v1985_v56 = vld [vmem:[%s6969_s4 + $0x2f0] sm:$0xff]  ;;  %v1763_v10 = vld [vmem:[%s6968_s3 + $0x260] sm:$0xff] }
 0x2ae   : > { %4071 = vmatprep.mubr.msk.f32.mxu1 %vm2503_vm2, %v1736_v11  ;;  %4058 = vmatprep.mubr.msk.f32.mxu0 %vm2503_vm2, %v1710_v12  ;;  %v1766_v11 = vld [vmem:[%s6968_s3 + $0x278] sm:$0xff]  ;;  %v1988_v12 = vld [vmem:[%s6969_s4 + $0x308] sm:$0xff] }
 0x2af   : > { %2340 = vperm.xlu1 %4601, %v1960_v18   ;;  %2415 = vperm.xlu0 %4600, %v1975_v52   ;;  %v6159_v18 = vpop.permute.xlu0 %1995  ;;  %v1798_v52 = vld [vmem:[%s6968_s3 + $0x378] sm:$0xff] }
 0x2b1   : > { %2995 = vmatmul.mubr.f32.gmra.mrb[22].mxu1 %v1735_v15  ;;  %2930 = vmatmul.mubr.f32.gmra.mrb[56].mxu0 %v1709_v16  ;;  %v1768_v15 = vld [vmem:[%s6968_s3 + $0x288] sm:$0xff]  ;;  %v1990_v16 = vld [vmem:[%s6969_s4 + $0x318] sm:$0xff] }
 0x2b2   : > { %4072 = vmatprep.mubr.msk.f32.mxu1 %vm2503_vm2, %v1738_v59  ;;  %4059 = vmatprep.mubr.msk.f32.mxu0 %vm2503_vm2, %v1712_v17  ;;  %v1989_v59 = vld [vmem:[%s6969_s4 + $0x310] sm:$0xff]  ;;  %v6157_v17 = vpop.permute.xlu1 %2005 }
 0x2b3   : > { %2350 = vperm.xlu1 %4601, %v1962_v23   ;;  %2425 = vperm.xlu0 %4600, %v1977_v57   ;;  %v1769_v23 = vld [vmem:[%s6968_s3 + $0x290] sm:$0xff]  ;;  %v1802_v57 = vld [vmem:[%s6968_s3 + $0x398] sm:$0xff] }
 0x2b5   : > { %3000 = vmatmul.mubr.f32.gmra.mrb[24].mxu1 %v1737_v20  ;;  %2935 = vmatmul.mubr.f32.gmra.mrb[58].mxu0 %v1711_v21  ;;  %v1770_v20 = vld [vmem:[%s6968_s3 + $0x298] sm:$0xff]  ;;  %v1992_v21 = vld [vmem:[%s6969_s4 + $0x328] sm:$0xff] }
 0x2b6   : > { %4073 = vmatprep.mubr.msk.f32.mxu1 %vm2503_vm2, %v1740_v22  ;;  %v1991_v22 = vld [vmem:[%s6969_s4 + $0x320] sm:$0xff] }
 0x2b7   : > { %2360 = vperm.xlu1 %4601, %v1964_v27   ;;  %2435 = vperm.xlu0 %4600, %v1979_v62   ;;  %v1771_v27 = vld [vmem:[%s6968_s3 + $0x2a0] sm:$0xff]  ;;  %v1806_v62 = vld [vmem:[%s6968_s3 + $0x3b8] sm:$0xff] }
 0x2b9   : > { %3005 = vmatmul.mubr.f32.gmra.mrb[26].mxu1 %v1739_v25  ;;  %v6181_v25 = vpop.permute.xlu1 %2010 }
 0x2ba   : > { %4074 = vmatprep.mubr.msk.f32.mxu1 %vm2503_vm2, %v1742_v26  ;;  %v6183_v26 = vpop.permute.xlu0 %2000 }
 0x2bb   : > { %2370 = vperm.xlu1 %4601, %v1966_v31   ;;  %2445 = vperm.xlu0 %4600, %v1981_v2   ;;  %v1775_v31 = vld [vmem:[%s6968_s3 + $0x2c0] sm:$0xff] }
 0x2bc   : > { %v1807_v2 = vld [vmem:[%s6968_s3 + $0x3c0] sm:$0xff] }
 0x2bd   : > { %3010 = vmatmul.mubr.f32.gmra.mrb[28].mxu1 %v1741_v29  ;;  %v1773_v29 = vld [vmem:[%s6968_s3 + $0x2b0] sm:$0xff] }
 0x2be   : > { %4075 = vmatprep.mubr.msk.f32.mxu1 %vm2503_vm2, %v1744_v30  ;;  %v1776_v30 = vld [vmem:[%s6968_s3 + $0x2c8] sm:$0xff] }
 0x2bf   : > { %2380 = vperm.xlu1 %4601, %v1968_v35   ;;  %2455 = vperm.xlu0 %4600, %v1983_v6   ;;  %v1779_v35 = vld [vmem:[%s6968_s3 + $0x2e0] sm:$0xff] }
 0x2c1   : > { %3015 = vmatmul.mubr.f32.gmra.mrb[30].mxu1 %v1743_v33  ;;  %v1777_v33 = vld [vmem:[%s6968_s3 + $0x2d0] sm:$0xff] }
 0x2c2   : > { %4076 = vmatprep.mubr.msk.f32.mxu1 %vm2503_vm2, %v1746_v34  ;;  %v1780_v34 = vld [vmem:[%s6968_s3 + $0x2e8] sm:$0xff] }
 0x2c3   : > { %2390 = vperm.xlu1 %4601, %v1970_v39   ;;  %2465 = vperm.xlu0 %4600, %v1985_v56   ;;  %v1783_v39 = vld [vmem:[%s6968_s3 + $0x300] sm:$0xff]  ;;  %v1814_v56 = vld [vmem:[%s6968_s3 + $0x3f8] sm:$0xff] }
 0x2c5   : > { %3020 = vmatmul.mubr.f32.gmra.mrb[32].mxu1 %v1745_v37  ;;  %v1781_v37 = vld [vmem:[%s6968_s3 + $0x2f0] sm:$0xff] }
 0x2c6   : > { %4077 = vmatprep.mubr.msk.f32.mxu1 %vm2503_vm2, %v1748_v38  ;;  %v1784_v38 = vld [vmem:[%s6968_s3 + $0x308] sm:$0xff] }
 0x2c7   : > { %2400 = vperm.xlu1 %4601, %v1972_v43   ;;  %2475 = vperm.xlu0 %4600, %v1987_v13   ;;  %v1787_v43 = vld [vmem:[%s6968_s3 + $0x320] sm:$0xff]  ;;  %v1816_v13 = vld [vmem:[%s6968_s3 + $0x408] sm:$0xff] }
 0x2c9   : > { %3025 = vmatmul.mubr.f32.gmra.mrb[34].mxu1 %v1747_v41  ;;  %v1785_v41 = vld [vmem:[%s6968_s3 + $0x310] sm:$0xff] }
 0x2ca   : > { %4078 = vmatprep.mubr.msk.f32.mxu1 %vm2503_vm2, %v1750_v42  ;;  %v1788_v42 = vld [vmem:[%s6968_s3 + $0x328] sm:$0xff] }
 0x2cb   : > { %2410 = vperm.xlu1 %4601, %v1974_v47   ;;  %2485 = vperm.xlu0 %4600, %v1989_v59   ;;  %v1791_v47 = vld [vmem:[%s6968_s3 + $0x340] sm:$0xff] }
 0x2cd   : > { %3030 = vmatmul.mubr.f32.gmra.mrb[36].mxu1 %v1749_v45  ;;  %v1789_v45 = vld [vmem:[%s6968_s3 + $0x330] sm:$0xff] }
 0x2ce   : > { %4079 = vmatprep.mubr.msk.f32.mxu1 %vm2503_vm2, %v1752_v46  ;;  %v1792_v46 = vld [vmem:[%s6968_s3 + $0x348] sm:$0xff] }
 0x2cf   : > { %2420 = vperm.xlu1 %4601, %v1976_v51   ;;  %2495 = vperm.xlu0 %4600, %v1991_v22   ;;  %v1795_v51 = vld [vmem:[%s6968_s3 + $0x360] sm:$0xff] }
 0x2d0   : > { %v1819_v22 = vld [vmem:[%s6968_s3 + $0x420] sm:$0xff] }
 0x2d1   : > { %3035 = vmatmul.mubr.f32.gmra.mrb[38].mxu1 %v1751_v49  ;;  %v1793_v49 = vld [vmem:[%s6968_s3 + $0x350] sm:$0xff] }
 0x2d2   : > { %4080 = vmatprep.mubr.msk.f32.mxu1 %vm2503_vm2, %v1754_v50  ;;  %v1796_v50 = vld [vmem:[%s6968_s3 + $0x368] sm:$0xff] }
 0x2d3   : > { %2430 = vperm.xlu1 %4601, %v1978_v55   ;;  %v1799_v55 = vld [vmem:[%s6968_s3 + $0x380] sm:$0xff] }
 0x2d5   : > { %3040 = vmatmul.mubr.f32.gmra.mrb[40].mxu1 %v1753_v53  ;;  %v1797_v53 = vld [vmem:[%s6968_s3 + $0x370] sm:$0xff] }
 0x2d6   : > { %4081 = vmatprep.mubr.msk.f32.mxu1 %vm2503_vm2, %v1756_v54  ;;  %v1800_v54 = vld [vmem:[%s6968_s3 + $0x388] sm:$0xff] }
 0x2d7   : > { %2440 = vperm.xlu1 %4601, %v1980_v61   ;;  %v1803_v61 = vld [vmem:[%s6968_s3 + $0x3a0] sm:$0xff] }
 0x2d9   : > { %3045 = vmatmul.mubr.f32.gmra.mrb[42].mxu1 %v1755_v58  ;;  %v1801_v58 = vld [vmem:[%s6968_s3 + $0x390] sm:$0xff] }
 0x2da   : > { %4082 = vmatprep.mubr.msk.f32.mxu1 %vm2503_vm2, %v1758_v60  ;;  %v1804_v60 = vld [vmem:[%s6968_s3 + $0x3a8] sm:$0xff] }
 0x2db   : > { %2450 = vperm.xlu1 %4601, %v1982_v1   ;;  %v6311_v1 = vpop.permute.xlu0 %2015 }
 0x2dd   : > { %3050 = vmatmul.mubr.f32.gmra.mrb[44].mxu1 %v1757_v63  ;;  %v1805_v63 = vld [vmem:[%s6968_s3 + $0x3b0] sm:$0xff] }
 0x2de   : > { %4083 = vmatprep.mubr.msk.f32.mxu1 %vm2503_vm2, %v1760_v0  ;;  %v1808_v0 = vld [vmem:[%s6968_s3 + $0x3c8] sm:$0xff] }
 0x2df   : > { %2460 = vperm.xlu1 %4601, %v1984_v5   ;;  %v1809_v5 = vld [vmem:[%s6968_s3 + $0x3d0] sm:$0xff]  ;;  %v6326_v6 = vpop.permute.xlu0 %2025 }
 0x2e1   : > { %3055 = vmatmul.mubr.f32.gmra.mrb[46].mxu1 %v1759_v3  ;;  %v6317_v3 = vpop.permute.xlu1 %2020 }
 0x2e2   : > { %4084 = vmatprep.mubr.msk.f32.mxu1 %vm2503_vm2, %v1762_v4  ;;  %v1810_v4 = vld [vmem:[%s6968_s3 + $0x3d8] sm:$0xff] }
 0x2e3   : > { %2470 = vperm.xlu1 %4601, %v1986_v9   ;;  %v1811_v9 = vld [vmem:[%s6968_s3 + $0x3e0] sm:$0xff] }
 0x2e5   : > { %3060 = vmatmul.mubr.f32.gmra.mrb[48].mxu1 %v1761_v7  ;;  %v1812_v7 = vld [vmem:[%s6968_s3 + $0x3e8] sm:$0xff] }
 0x2e6   : > { %4085 = vmatprep.mubr.msk.f32.mxu1 %vm2503_vm2, %v1764_v8  ;;  %v6331_v8 = vpop.permute.xlu1 %2030 }
 0x2e7   : > { %2480 = vperm.xlu1 %4601, %v1988_v12  }
 0x2e9   : > { %3065 = vmatmul.mubr.f32.gmra.mrb[50].mxu1 %v1763_v10  ;;  %v6340_v10 = vpop.permute.xlu0 %2035 }
 0x2ea   : > { %4086 = vmatprep.mubr.msk.f32.mxu1 %vm2503_vm2, %v1766_v11  ;;  %v1813_v11 = vld [vmem:[%s6968_s3 + $0x3f0] sm:$0xff]  ;;  %v6346_v12 = vpop.permute.xlu1 %2040 }
 0x2eb   : > { %2490 = vperm.xlu1 %4601, %v1990_v16   ;;  %v1818_v16 = vld [vmem:[%s6968_s3 + $0x418] sm:$0xff] }
 0x2ed   : > { %3070 = vmatmul.mubr.f32.gmra.mrb[52].mxu1 %v1765_v14  ;;  %v1815_v14 = vld [vmem:[%s6968_s3 + $0x400] sm:$0xff] }
 0x2ee   : > { %4087 = vmatprep.mubr.msk.f32.mxu1 %vm2503_vm2, %v1768_v15  ;;  %v6355_v15 = vpop.permute.xlu0 %2045  ;;  %v6360_v59 = vpop.permute.xlu1 %2050 }
 0x2ef   : > { %2500 = vperm.xlu1 %4601, %v1992_v21  }
 0x2f1   : > { %3075 = vmatmul.mubr.f32.gmra.mrb[54].mxu1 %v1767_v19  ;;  %v1817_v19 = vld [vmem:[%s6968_s3 + $0x410] sm:$0xff] }
 0x2f2   : > { %4088 = vmatprep.mubr.msk.f32.mxu1 %vm2503_vm2, %v1770_v20  ;;  %v1820_v20 = vld [vmem:[%s6968_s3 + $0x428] sm:$0xff]  ;;  %v6369_v21 = vpop.permute.xlu0 %2055 }
 0x2f5   : > { %3080 = vmatmul.mubr.f32.gmra.mrb[56].mxu1 %v1769_v23  ;;  %v2061_v23 = vpop.permute.xlu1 %2060 }
 0x2f6   : > { %4089 = vmatprep.mubr.msk.f32.mxu1 %vm2503_vm2, %v1772_v24  ;;  %v1822_v24 = vld [vmem:[%s6968_s3 + $0x438] sm:$0xff] }
 0x2f9   : > { %3085 = vmatmul.mubr.f32.gmra.mrb[58].mxu1 %v1771_v27 }
 0x2fa   : > { %4090 = vmatprep.mubr.msk.f32.mxu1 %vm2503_vm2, %v1774_v28 }
 0x2fd   : > { %3090 = vmatmul.mubr.f32.gmra.mrb[60].mxu1 %v1773_v29 }
 0x2fe   : > { %4091 = vmatprep.mubr.msk.f32.mxu1 %vm2503_vm2, %v1776_v30 }
 0x301   : > { %3095 = vmatmul.mubr.f32.gmra.mrb[62].mxu1 %v1775_v31 }
 0x302   : > { %4092 = vmatprep.mubr.msk.f32.mxu1 %vm2503_vm2, %v1778_v32  ;;  %v1821_v32 = vld [vmem:[%s6968_s3 + $0x430] sm:$0xff] }
 0x305   : > { %3100 = vmatmul.mubr.f32.gmra.mrb[64].mxu1 %v1777_v33  ;;  %v2066_v33 = vpop.permute.xlu0 %2065 }
 0x306   : > { %4093 = vmatprep.mubr.msk.f32.mxu1 %vm2503_vm2, %v1780_v34  ;;  %v1824_v34 = vld [vmem:[%s6968_s3 + $0x448] sm:$0xff] }
 0x309   : > { %3105 = vmatmul.mubr.f32.gmra.mrb[66].mxu1 %v1779_v35 }
 0x30a   : > { %4094 = vmatprep.mubr.msk.f32.mxu1 %vm2503_vm2, %v1782_v36 }
 0x30d   : > { %3110 = vmatmul.mubr.f32.gmra.mrb[68].mxu1 %v1781_v37 }
 0x30e   : > { %4095 = vmatprep.mubr.msk.f32.mxu1 %vm2503_vm2, %v1784_v38 }
 0x311   : > { %3115 = vmatmul.mubr.f32.gmra.mrb[70].mxu1 %v1783_v39 }
 0x312   : > { %4096 = vmatprep.mubr.msk.f32.mxu1 %vm2503_vm2, %v1786_v40 }
 0x315   : > { %3120 = vmatmul.mubr.f32.gmra.mrb[72].mxu1 %v1785_v41 }
 0x316   : > { %4097 = vmatprep.mubr.msk.f32.mxu1 %vm2503_vm2, %v1788_v42  ;;  %v1823_v42 = vld [vmem:[%s6968_s3 + $0x440] sm:$0xff] }
 0x319   : > { %3125 = vmatmul.mubr.f32.gmra.mrb[74].mxu1 %v1787_v43  ;;  %v2071_v43 = vpop.permute.xlu1 %2070 }
 0x31a   : > { %4098 = vmatprep.mubr.msk.f32.mxu1 %vm2503_vm2, %v1790_v44 }
 0x31d   : > { %3130 = vmatmul.mubr.f32.gmra.mrb[76].mxu1 %v1789_v45 }
 0x31e   : > { %4099 = vmatprep.mubr.msk.f32.mxu1 %vm2503_vm2, %v1792_v46 }
 0x321   : > { %3135 = vmatmul.mubr.f32.gmra.mrb[78].mxu1 %v1791_v47 }
 0x322   : > { %4100 = vmatprep.mubr.msk.f32.mxu1 %vm2503_vm2, %v1794_v48 }
 0x325   : > { %3140 = vmatmul.mubr.f32.gmra.mrb[80].mxu1 %v1793_v49  ;;  %v1825_v49 = vld [vmem:[%s6968_s3 + $0x450] sm:$0xff] }
 0x326   : > { %4101 = vmatprep.mubr.msk.f32.mxu1 %vm2503_vm2, %v1796_v50  ;;  %v2076_v50 = vpop.permute.xlu0 %2075 }
 0x329   : > { %3145 = vmatmul.mubr.f32.gmra.mrb[82].mxu1 %v1795_v51  ;;  %v1828_v51 = vld [vmem:[%s6968_s3 + $0x468] sm:$0xff] }
 0x32a   : > { %4102 = vmatprep.mubr.msk.f32.mxu1 %vm2503_vm2, %v1798_v52 }
 0x32d   : > { %3150 = vmatmul.mubr.f32.gmra.mrb[84].mxu1 %v1797_v53 }
 0x32e   : > { %4103 = vmatprep.mubr.msk.f32.mxu1 %vm2503_vm2, %v1800_v54 }
 0x331   : > { %3155 = vmatmul.mubr.f32.gmra.mrb[86].mxu1 %v1799_v55 }
 0x332   : > { %4104 = vmatprep.mubr.msk.f32.mxu1 %vm2503_vm2, %v1802_v57 }
 0x335   : > { %3160 = vmatmul.mubr.f32.gmra.mrb[88].mxu1 %v1801_v58  ;;  %v1827_v58 = vld [vmem:[%s6968_s3 + $0x460] sm:$0xff] }
 0x336   : > { %4105 = vmatprep.mubr.msk.f32.mxu1 %vm2503_vm2, %v1804_v60  ;;  %v2081_v60 = vpop.permute.xlu1 %2080 }
 0x339   : > { %3165 = vmatmul.mubr.f32.gmra.mrb[90].mxu1 %v1803_v61  ;;  %v1830_v61 = vld [vmem:[%s6968_s3 + $0x478] sm:$0xff] }
 0x33a   : > { %4106 = vmatprep.mubr.msk.f32.mxu1 %vm2503_vm2, %v1806_v62 }
 0x33d   : > { %3170 = vmatmul.mubr.f32.gmra.mrb[92].mxu1 %v1805_v63 }
 0x33e   : > { %4107 = vmatprep.mubr.msk.f32.mxu1 %vm2503_vm2, %v1808_v0 }
 0x341   : > { %3175 = vmatmul.mubr.f32.gmra.mrb[94].mxu1 %v1807_v2 }
 0x342   : > { %4108 = vmatprep.mubr.msk.f32.mxu1 %vm2503_vm2, %v1810_v4 }
 0x345   : > { %3180 = vmatmul.mubr.f32.gmra.mrb[96].mxu1 %v1809_v5  ;;  %v1829_v5 = vld [vmem:[%s6968_s3 + $0x470] sm:$0xff] }
 0x346   : > { %4109 = vmatprep.mubr.msk.f32.mxu1 %vm2503_vm2, %v1812_v7  ;;  %v2086_v7 = vpop.permute.xlu0 %2085 }
 0x349   : > { %3185 = vmatmul.mubr.f32.gmra.mrb[98].mxu1 %v1811_v9  ;;  %v1832_v9 = vld [vmem:[%s6968_s3 + $0x488] sm:$0xff] }
 0x34a   : > { %4110 = vmatprep.mubr.msk.f32.mxu1 %vm2503_vm2, %v1814_v56 }
 0x34d   : > { %3190 = vmatmul.mubr.f32.gmra.mrb[100].mxu1 %v1813_v11 }
 0x34e   : > { %4111 = vmatprep.mubr.msk.f32.mxu1 %vm2503_vm2, %v1816_v13 }
 0x351   : > { %3195 = vmatmul.mubr.f32.gmra.mrb[102].mxu1 %v1815_v14 }
 0x352   : > { %4112 = vmatprep.mubr.msk.f32.mxu1 %vm2503_vm2, %v1818_v16 }
 0x355   : > { %3200 = vmatmul.mubr.f32.gmra.mrb[104].mxu1 %v1817_v19  ;;  %v1831_v19 = vld [vmem:[%s6968_s3 + $0x480] sm:$0xff] }
 0x356   : > { %4113 = vmatprep.mubr.msk.f32.mxu1 %vm2503_vm2, %v1820_v20  ;;  %v2091_v20 = vpop.permute.xlu1 %2090 }
 0x358   : > { %v2941_v27 = vpop.f32.mrb[0].mxu1  ;;  %v2876_v28 = vpop.f32.mrb[34].mxu0 }
 0x359   : > { %v2942_v29 = vadd.f32 %v2941_v27, %v2061_v23  ;;  %v2943_v30 = vpop.f32.mrb[1].mxu1  ;;  %3205 = vmatmul.mubr.f32.gmra.mrb[106].mxu1 %v1819_v22  ;;  %v2878_v31 = vpop.f32.mrb[35].mxu0  ;;  %v2877_v35 = vadd.f32 %v2876_v28, %v6159_v18  ;;  %v1826_v18 = vld [vmem:[%s6968_s3 + $0x458] sm:$0xff] }
 0x35a   : > { %4114 = vmatprep.mubr.msk.f32.mxu1 %vm2503_vm2, %v1822_v24  ;;  %v1834_v22 = vld [vmem:[%s6968_s3 + $0x498] sm:$0xff]  ;;  %v1833_v30 = vld [vmem:[%s6968_s3 + $0x490] sm:$0xff]  ;;  %v2096_v31 = vpop.permute.xlu0 %2095 }
 0x35b   : > { %3398 = vst [vmem:[%s6383_s26 + $0x68] sm:$0xff] %v2942_v29  ;;  %3385 = vst [vmem:[%s6383_s26] sm:$0xff] %v2877_v35 }
 0x35c   : > { %v2946_v36 = vpop.f32.mrb[2].mxu1  ;;  %v2881_v37 = vpop.f32.mrb[36].mxu0 }
 0x35d   : > { %v2947_v38 = vadd.f32 %v2946_v36, %v2066_v33  ;;  %v2948_v39 = vpop.f32.mrb[3].mxu1  ;;  %3210 = vmatmul.mubr.f32.gmra.mrb[108].mxu1 %v1821_v32  ;;  %v2882_v40 = vadd.f32 %v2881_v37, %v6183_v26  ;;  %v2883_v41 = vpop.f32.mrb[37].mxu0  ;;  %v1836_v32 = vld [vmem:[%s6968_s3 + $0x4a8] sm:$0xff] }
 0x35e   : > { %4115 = vmatprep.mubr.msk.f32.mxu1 %vm2503_vm2, %v1824_v34  ;;  %v2101_v39 = vpop.permute.xlu1 %2100 }
 0x35f   : > { %3399 = vst [vmem:[%s6383_s26 + $0x70] sm:$0xff] %v2947_v38  ;;  %3386 = vst [vmem:[%s6383_s26 + $0x8] sm:$0xff] %v2882_v40  ;;  %v1835_v38 = vld [vmem:[%s6968_s3 + $0x4a0] sm:$0xff]  ;;  %v1838_v40 = vld [vmem:[%s6968_s3 + $0x4b8] sm:$0xff] }
 0x360   : > { %v2951_v44 = vpop.f32.mrb[4].mxu1  ;;  %v2886_v45 = vpop.f32.mrb[38].mxu0 }
 0x361   : > { %v2952_v46 = vadd.f32 %v2951_v44, %v2071_v43  ;;  %v2953_v26 = vpop.f32.mrb[5].mxu1  ;;  %3215 = vmatmul.mubr.f32.gmra.mrb[110].mxu1 %v1823_v42  ;;  %v2887_v47 = vadd.f32 %v2886_v45, %v6157_v17  ;;  %v2888_v48 = vpop.f32.mrb[39].mxu0  ;;  %v1837_v45 = vld [vmem:[%s6968_s3 + $0x4b0] sm:$0xff] }
 0x362   : > { %4116 = vmatprep.mubr.msk.f32.mxu1 %vm2503_vm2, %v1826_v18  ;;  %v1840_v26 = vld [vmem:[%s6968_s3 + $0x4c8] sm:$0xff] }
 0x363   : > { %3400 = vst [vmem:[%s6383_s26 + $0x78] sm:$0xff] %v2952_v46  ;;  %3387 = vst [vmem:[%s6383_s26 + $0x10] sm:$0xff] %v2887_v47  ;;  %v2106_v46 = vpop.permute.xlu0 %2105 }
 0x364   : > { %v2956_v52 = vpop.f32.mrb[6].mxu1  ;;  %v2891_v53 = vpop.f32.mrb[40].mxu0 }
 0x365   : > { %v2957_v54 = vadd.f32 %v2956_v52, %v2076_v50  ;;  %v2958_v17 = vpop.f32.mrb[7].mxu1  ;;  %3220 = vmatmul.mubr.f32.gmra.mrb[112].mxu1 %v1825_v49  ;;  %v2892_v55 = vadd.f32 %v2891_v53, %v6181_v25  ;;  %v2893_v57 = vpop.f32.mrb[41].mxu0  ;;  %v1839_v52 = vld [vmem:[%s6968_s3 + $0x4c0] sm:$0xff] }
 0x366   : > { %4117 = vmatprep.mubr.msk.f32.mxu1 %vm2503_vm2, %v1828_v51  ;;  %v2111_v53 = vpop.permute.xlu1 %2110 }
 0x367   : > { %3401 = vst [vmem:[%s6383_s26 + $0x80] sm:$0xff] %v2957_v54  ;;  %3388 = vst [vmem:[%s6383_s26 + $0x18] sm:$0xff] %v2892_v55  ;;  %v1842_v54 = vld [vmem:[%s6968_s3 + $0x4d8] sm:$0xff] }
 0x368   : > { %v2961_v62 = vpop.f32.mrb[8].mxu1  ;;  %v2896_v63 = vpop.f32.mrb[42].mxu0 }
 0x369   : > { %v2962_v0 = vadd.f32 %v2961_v62, %v2081_v60  ;;  %v2963_v25 = vpop.f32.mrb[9].mxu1  ;;  %3225 = vmatmul.mubr.f32.gmra.mrb[114].mxu1 %v1827_v58  ;;  %v2897_v2 = vadd.f32 %v2896_v63, %v6311_v1  ;;  %v2898_v4 = vpop.f32.mrb[43].mxu0  ;;  %v1844_v63 = vld [vmem:[%s6968_s3 + $0x4e8] sm:$0xff] }
 0x36a   : > { %4118 = vmatprep.mubr.msk.f32.mxu1 %vm2503_vm2, %v1830_v61  ;;  %v1841_v61 = vld [vmem:[%s6968_s3 + $0x4d0] sm:$0xff]  ;;  %v2116_v62 = vpop.permute.xlu0 %2115 }
 0x36b   : > { %3402 = vst [vmem:[%s6383_s26 + $0x88] sm:$0xff] %v2962_v0  ;;  %3389 = vst [vmem:[%s6383_s26 + $0x20] sm:$0xff] %v2897_v2 }
 0x36c   : > { %v2966_v56 = vpop.f32.mrb[10].mxu1  ;;  %v2901_v11 = vpop.f32.mrb[44].mxu0 }
 0x36d   : > { %v2967_v13 = vadd.f32 %v2966_v56, %v2086_v7  ;;  %v2968_v1 = vpop.f32.mrb[11].mxu1  ;;  %3230 = vmatmul.mubr.f32.gmra.mrb[116].mxu1 %v1829_v5  ;;  %v2902_v14 = vadd.f32 %v2901_v11, %v6317_v3  ;;  %v2903_v16 = vpop.f32.mrb[45].mxu0  ;;  %v1843_v7 = vld [vmem:[%s6968_s3 + $0x4e0] sm:$0xff]  ;;  %v1846_v56 = vld [vmem:[%s6968_s3 + $0x4f8] sm:$0xff] }
 0x36e   : > { %4119 = vmatprep.mubr.msk.f32.mxu1 %vm2503_vm2, %v1832_v9  ;;  %v2121_v9 = vpop.permute.xlu1 %2120 }
 0x36f   : > { %3403 = vst [vmem:[%s6383_s26 + $0x90] sm:$0xff] %v2967_v13  ;;  %3390 = vst [vmem:[%s6383_s26 + $0x28] sm:$0xff] %v2902_v14 }
 0x370   : > { %v2971_v23 = vpop.f32.mrb[12].mxu1  ;;  %v2906_v24 = vpop.f32.mrb[46].mxu0 }
 0x371   : > { %v2972_v27 = vadd.f32 %v2971_v23, %v2091_v20  ;;  %v2973_v3 = vpop.f32.mrb[13].mxu1  ;;  %3235 = vmatmul.mubr.f32.gmra.mrb[118].mxu1 %v1831_v19  ;;  %v2907_v28 = vadd.f32 %v2906_v24, %v6326_v6  ;;  %v2908_v29 = vpop.f32.mrb[47].mxu0  ;;  %v1845_v19 = vld [vmem:[%s6968_s3 + $0x4f0] sm:$0xff]  ;;  %v1848_v20 = vld [vmem:[%s6968_s3 + $0x508] sm:$0xff] }
 0x372   : > { %4120 = vmatprep.mubr.msk.f32.mxu1 %vm2503_vm2, %v1834_v22  ;;  %v2126_v22 = vpop.permute.xlu0 %2125  ;;  %v1850_v3 = vld [vmem:[%s6968_s3 + $0x518] sm:$0xff] }
 0x373   : > { %3404 = vst [vmem:[%s6383_s26 + $0x98] sm:$0xff] %v2972_v27  ;;  %3391 = vst [vmem:[%s6383_s26 + $0x30] sm:$0xff] %v2907_v28  ;;  %v2131_v28 = vpop.permute.xlu1 %2130 }
 0x374   : > { %v2976_v33 = vpop.f32.mrb[14].mxu1  ;;  %v2911_v34 = vpop.f32.mrb[48].mxu0 }
 0x375   : > { %v2977_v35 = vadd.f32 %v2976_v33, %v2096_v31  ;;  %v2978_v6 = vpop.f32.mrb[15].mxu1  ;;  %3240 = vmatmul.mubr.f32.gmra.mrb[120].mxu1 %v1833_v30  ;;  %v2912_v36 = vadd.f32 %v2911_v34, %v6331_v8  ;;  %v2913_v37 = vpop.f32.mrb[49].mxu0  ;;  %v1852_v33 = vld [vmem:[%s6968_s3 + $0x528] sm:$0xff] }
 0x376   : > { %4121 = vmatprep.mubr.msk.f32.mxu1 %vm2503_vm2, %v1836_v32  ;;  %v1849_v32 = vld [vmem:[%s6968_s3 + $0x510] sm:$0xff]  ;;  %v2136_v34 = vpop.permute.xlu0 %2135  ;;  %v1851_v37 = vld [vmem:[%s6968_s3 + $0x520] sm:$0xff] }
 0x377   : > { %3405 = vst [vmem:[%s6383_s26 + $0xa0] sm:$0xff] %v2977_v35  ;;  %3392 = vst [vmem:[%s6383_s26 + $0x38] sm:$0xff] %v2912_v36 }
 0x378   : > { %v2981_v41 = vpop.f32.mrb[16].mxu1  ;;  %v2916_v42 = vpop.f32.mrb[50].mxu0 }
 0x379   : > { %v2982_v43 = vadd.f32 %v2981_v41, %v2101_v39  ;;  %v2983_v8 = vpop.f32.mrb[17].mxu1  ;;  %3245 = vmatmul.mubr.f32.gmra.mrb[122].mxu1 %v1835_v38  ;;  %v2917_v18 = vadd.f32 %v2916_v42, %v6340_v10  ;;  %v2918_v44 = vpop.f32.mrb[51].mxu0  ;;  %v1854_v38 = vld [vmem:[%s6968_s3 + $0x538] sm:$0xff] }
 0x37a   : > { %4122 = vmatprep.mubr.msk.f32.mxu1 %vm2503_vm2, %v1838_v40  ;;  %v2141_v39 = vpop.permute.xlu1 %2140  ;;  %v1856_v8 = vld [vmem:[%s6968_s3 + $0x548] sm:$0xff] }
 0x37b   : > { %3406 = vst [vmem:[%s6383_s26 + $0xa8] sm:$0xff] %v2982_v43  ;;  %3393 = vst [vmem:[%s6383_s26 + $0x40] sm:$0xff] %v2917_v18  ;;  %v1853_v43 = vld [vmem:[%s6968_s3 + $0x530] sm:$0xff]  ;;  %v2146_v18 = vpop.permute.xlu0 %2145 }
 0x37c   : > { %v2986_v47 = vpop.f32.mrb[18].mxu1  ;;  %v2921_v48 = vpop.f32.mrb[52].mxu0 }
 0x37d   : > { %v2987_v49 = vadd.f32 %v2986_v47, %v2106_v46  ;;  %v2988_v10 = vpop.f32.mrb[19].mxu1  ;;  %3250 = vmatmul.mubr.f32.gmra.mrb[124].mxu1 %v1837_v45  ;;  %v2922_v50 = vadd.f32 %v2921_v48, %v6346_v12  ;;  %v2923_v51 = vpop.f32.mrb[53].mxu0  ;;  %v1858_v47 = vld [vmem:[%s6968_s3 + $0x558] sm:$0xff] }
 0x37e   : > { %4123 = vmatprep.mubr.msk.f32.mxu1 %vm2503_vm2, %v1840_v26  ;;  %v1855_v26 = vld [vmem:[%s6968_s3 + $0x540] sm:$0xff]  ;;  %v2151_v48 = vpop.permute.xlu1 %2150  ;;  %v1857_v51 = vld [vmem:[%s6968_s3 + $0x550] sm:$0xff] }
 0x37f   : > { %3407 = vst [vmem:[%s6383_s26 + $0xb0] sm:$0xff] %v2987_v49  ;;  %3394 = vst [vmem:[%s6383_s26 + $0x48] sm:$0xff] %v2922_v50 }
 0x380   : > { %v2991_v17 = vpop.f32.mrb[20].mxu1  ;;  %v2926_v55 = vpop.f32.mrb[54].mxu0 }
 0x381   : > { %v2992_v57 = vadd.f32 %v2991_v17, %v2111_v53  ;;  %v2993_v12 = vpop.f32.mrb[21].mxu1  ;;  %3255 = vmatmul.mubr.f32.gmra.mrb[126].mxu1 %v1839_v52  ;;  %v2927_v58 = vadd.f32 %v2926_v55, %v6355_v15  ;;  %v2928_v60 = vpop.f32.mrb[55].mxu0  ;;  %v1860_v52 = vld [vmem:[%s6968_s3 + $0x568] sm:$0xff] }
 0x382   : > { %4124 = vmatprep.mubr.msk.f32.mxu1 %vm2503_vm2, %v1842_v54  ;;  %v2156_v53 = vpop.permute.xlu0 %2155  ;;  %v1862_v12 = vld [vmem:[%s6968_s3 + $0x578] sm:$0xff] }
 0x383   : > { %3408 = vst [vmem:[%s6383_s26 + $0xb8] sm:$0xff] %v2992_v57  ;;  %3395 = vst [vmem:[%s6383_s26 + $0x50] sm:$0xff] %v2927_v58  ;;  %v1859_v57 = vld [vmem:[%s6968_s3 + $0x560] sm:$0xff]  ;;  %v2161_v58 = vpop.permute.xlu1 %2160 }
 0x384   : > { %v2996_v0 = vpop.f32.mrb[22].mxu1  ;;  %v2931_v25 = vpop.f32.mrb[56].mxu0 }
 0x385   : > { %v2997_v2 = vadd.f32 %v2996_v0, %v2116_v62  ;;  %v2998_v15 = vpop.f32.mrb[23].mxu1  ;;  %3260 = vmatmul.mubr.f32.gmra.mrb[128].mxu1 %v1841_v61  ;;  %v2932_v4 = vadd.f32 %v2931_v25, %v6360_v59  ;;  %v2933_v5 = vpop.f32.mrb[57].mxu0  ;;  %v1864_v0 = vld [vmem:[%s6968_s3 + $0x588] sm:$0xff] }
 0x386   : > { %4125 = vmatprep.mubr.msk.f32.mxu1 %vm2503_vm2, %v1844_v63  ;;  %v1861_v63 = vld [vmem:[%s6968_s3 + $0x570] sm:$0xff]  ;;  %v2166_v25 = vpop.permute.xlu0 %2165  ;;  %v1863_v5 = vld [vmem:[%s6968_s3 + $0x580] sm:$0xff] }
 0x387   : > { %3409 = vst [vmem:[%s6383_s26 + $0xc0] sm:$0xff] %v2997_v2  ;;  %3396 = vst [vmem:[%s6383_s26 + $0x58] sm:$0xff] %v2932_v4 }
 0x388   : > { %v3001_v11 = vpop.f32.mrb[24].mxu1  ;;  %v2936_v13 = vpop.f32.mrb[58].mxu0 }
 0x389   : > { %v3002_v1 = vadd.f32 %v3001_v11, %v2121_v9  ;;  %v3003_v59 = vpop.f32.mrb[25].mxu1  ;;  %3265 = vmatmul.mubr.f32.gmra.mrb[130].mxu1 %v1843_v7  ;;  %v2937_v14 = vadd.f32 %v2936_v13, %v6369_v21  ;;  %v2938_v16 = vpop.f32.mrb[59].mxu0  ;;  %v1847_v21 = vld [vmem:[%s6968_s3 + $0x500] sm:$0xff]  ;;  %v1866_v7 = vld [vmem:[%s6968_s3 + $0x598] sm:$0xff] }
 0x38a   : > { %4126 = vmatprep.mubr.msk.f32.mxu1 %vm2503_vm2, %v1846_v56  ;;  %v2171_v9 = vpop.permute.xlu1 %2170  ;;  %v1868_v59 = vld [vmem:[%s6968_s3 + $0x5a8] sm:$0xff] }
 0x38b   : > { %3410 = vst [vmem:[%s6383_s26 + $0xc8] sm:$0xff] %v3002_v1  ;;  %3397 = vst [vmem:[%s6383_s26 + $0x60] sm:$0xff] %v2937_v14  ;;  %v1865_v1 = vld [vmem:[%s6968_s3 + $0x590] sm:$0xff]  ;;  %v2176_v14 = vpop.permute.xlu0 %2175 }
 0x38c   : > { %v3006_v23 = vpop.f32.mrb[26].mxu1 }
 0x38d   : > { %v3007_v24 = vadd.f32 %v3006_v23, %v2126_v22  ;;  %v3008_v27 = vpop.f32.mrb[27].mxu1  ;;  %3270 = vmatmul.mubr.f32.gmra.mrb[132].mxu1 %v1845_v19  ;;  %v1867_v22 = vld [vmem:[%s6968_s3 + $0x5a0] sm:$0xff]  ;;  %v1870_v23 = vld [vmem:[%s6968_s3 + $0x5b8] sm:$0xff] }
 0x38e   : > { %4127 = vmatprep.mubr.msk.f32.mxu1 %vm2503_vm2, %v1848_v20 }
 0x38f   : > { %3411 = vst [vmem:[%s6383_s26 + $0xd0] sm:$0xff] %v3007_v24  ;;  %v2181_v24 = vpop.permute.xlu1 %2180 }
 0x390   : > { %v3011_v29 = vpop.f32.mrb[28].mxu1 }
 0x391   : > { %v3012_v30 = vadd.f32 %v3011_v29, %v2131_v28  ;;  %v3013_v31 = vpop.f32.mrb[29].mxu1  ;;  %3275 = vmatmul.mubr.f32.gmra.mrb[134].mxu1 %v1847_v21  ;;  %v1869_v28 = vld [vmem:[%s6968_s3 + $0x5b0] sm:$0xff]  ;;  %v1872_v29 = vld [vmem:[%s6968_s3 + $0x5c8] sm:$0xff] }
 0x392   : > { %4128 = vmatprep.mubr.msk.f32.mxu1 %vm2503_vm2, %v1850_v3 }
 0x393   : > { %3412 = vst [vmem:[%s6383_s26 + $0xd8] sm:$0xff] %v3012_v30  ;;  %v2186_v30 = vpop.permute.xlu0 %2185 }
 0x394   : > { %v3016_v35 = vpop.f32.mrb[30].mxu1 }
 0x395   : > { %v3017_v6 = vadd.f32 %v3016_v35, %v2136_v34  ;;  %v3018_v36 = vpop.f32.mrb[31].mxu1  ;;  %3280 = vmatmul.mubr.f32.gmra.mrb[136].mxu1 %v1849_v32  ;;  %v1871_v34 = vld [vmem:[%s6968_s3 + $0x5c0] sm:$0xff]  ;;  %v1874_v35 = vld [vmem:[%s6968_s3 + $0x5d8] sm:$0xff] }
 0x396   : > { %4129 = vmatprep.mubr.msk.f32.mxu1 %vm2503_vm2, %v1852_v33 }
 0x397   : > { %3413 = vst [vmem:[%s6383_s26 + $0xe0] sm:$0xff] %v3017_v6  ;;  %v2191_v6 = vpop.permute.xlu1 %2190 }
 0x398   : > { %v3021_v40 = vpop.f32.mrb[32].mxu1 }
 0x399   : > { %v3022_v41 = vadd.f32 %v3021_v40, %v2141_v39  ;;  %v3023_v42 = vpop.f32.mrb[33].mxu1  ;;  %3285 = vmatmul.mubr.f32.gmra.mrb[138].mxu1 %v1851_v37  ;;  %v1873_v39 = vld [vmem:[%s6968_s3 + $0x5d0] sm:$0xff]  ;;  %v1876_v40 = vld [vmem:[%s6968_s3 + $0x5e8] sm:$0xff] }
 0x39a   : > { %4130 = vmatprep.mubr.msk.f32.mxu1 %vm2503_vm2, %v1854_v38 }
 0x39b   : > { %3414 = vst [vmem:[%s6383_s26 + $0xe8] sm:$0xff] %v3022_v41  ;;  %v2196_v41 = vpop.permute.xlu0 %2195 }
 0x39c   : > { %v3026_v44 = vpop.f32.mrb[34].mxu1 }
 0x39d   : > { %v3027_v45 = vadd.f32 %v3026_v44, %v2146_v18  ;;  %v3028_v46 = vpop.f32.mrb[35].mxu1  ;;  %3290 = vmatmul.mubr.f32.gmra.mrb[140].mxu1 %v1853_v43  ;;  %v1875_v18 = vld [vmem:[%s6968_s3 + $0x5e0] sm:$0xff]  ;;  %v1878_v44 = vld [vmem:[%s6968_s3 + $0x5f8] sm:$0xff] }
 0x39e   : > { %4131 = vmatprep.mubr.msk.f32.mxu1 %vm2503_vm2, %v1856_v8 }
 0x39f   : > { %3415 = vst [vmem:[%s6383_s26 + $0xf0] sm:$0xff] %v3027_v45  ;;  %v2201_v45 = vpop.permute.xlu1 %2200 }
 0x3a0   : > { %v3031_v49 = vpop.f32.mrb[36].mxu1 }
 0x3a1   : > { %v3032_v10 = vadd.f32 %v3031_v49, %v2151_v48  ;;  %v3033_v50 = vpop.f32.mrb[37].mxu1  ;;  %3295 = vmatmul.mubr.f32.gmra.mrb[142].mxu1 %v1855_v26  ;;  %v1877_v48 = vld [vmem:[%s6968_s3 + $0x5f0] sm:$0xff]  ;;  %v1880_v49 = vld [vmem:[%s6968_s3 + $0x608] sm:$0xff] }
 0x3a2   : > { %4132 = vmatprep.mubr.msk.f32.mxu1 %vm2503_vm2, %v1858_v47 }
 0x3a3   : > { %3416 = vst [vmem:[%s6383_s26 + $0xf8] sm:$0xff] %v3032_v10  ;;  %v2206_v10 = vpop.permute.xlu0 %2205 }
 0x3a4   : > { %v3036_v54 = vpop.f32.mrb[38].mxu1 }
 0x3a5   : > { %v3037_v17 = vadd.f32 %v3036_v54, %v2156_v53  ;;  %v3038_v55 = vpop.f32.mrb[39].mxu1  ;;  %3300 = vmatmul.mubr.f32.gmra.mrb[144].mxu1 %v1857_v51  ;;  %v1879_v53 = vld [vmem:[%s6968_s3 + $0x600] sm:$0xff]  ;;  %v1882_v54 = vld [vmem:[%s6968_s3 + $0x618] sm:$0xff] }
 0x3a6   : > { %4133 = vmatprep.mubr.msk.f32.mxu1 %vm2503_vm2, %v1860_v52 }
 0x3a7   : > { %3417 = vst [vmem:[%s6383_s26 + $0x100] sm:$0xff] %v3037_v17  ;;  %v2211_v17 = vpop.permute.xlu1 %2210 }
 0x3a8   : > { %v3041_v60 = vpop.f32.mrb[40].mxu1 }
 0x3a9   : > { %v3042_v61 = vadd.f32 %v3041_v60, %v2161_v58  ;;  %v3043_v62 = vpop.f32.mrb[41].mxu1  ;;  %3305 = vmatmul.mubr.f32.gmra.mrb[146].mxu1 %v1859_v57  ;;  %v1881_v58 = vld [vmem:[%s6968_s3 + $0x610] sm:$0xff]  ;;  %v1884_v60 = vld [vmem:[%s6968_s3 + $0x628] sm:$0xff] }
 0x3aa   : > { %4134 = vmatprep.mubr.msk.f32.mxu1 %vm2503_vm2, %v1862_v12 }
 0x3ab   : > { %3418 = vst [vmem:[%s6383_s26 + $0x108] sm:$0xff] %v3042_v61  ;;  %v2216_v61 = vpop.permute.xlu0 %2215 }
 0x3ac   : > { %v3046_v2 = vpop.f32.mrb[42].mxu1 }
 0x3ad   : > { %v3047_v15 = vadd.f32 %v3046_v2, %v2166_v25  ;;  %v3048_v4 = vpop.f32.mrb[43].mxu1  ;;  %3310 = vmatmul.mubr.f32.gmra.mrb[148].mxu1 %v1861_v63  ;;  %v1883_v25 = vld [vmem:[%s6968_s3 + $0x620] sm:$0xff]  ;;  %v1886_v2 = vld [vmem:[%s6968_s3 + $0x638] sm:$0xff] }
 0x3ae   : > { %4135 = vmatprep.mubr.msk.f32.mxu1 %vm2503_vm2, %v1864_v0 }
 0x3af   : > { %3419 = vst [vmem:[%s6383_s26 + $0x110] sm:$0xff] %v3047_v15  ;;  %v2221_v15 = vpop.permute.xlu1 %2220 }
 0x3b0   : > { %v3051_v56 = vpop.f32.mrb[44].mxu1 }
 0x3b1   : > { %v3052_v11 = vadd.f32 %v3051_v56, %v2171_v9  ;;  %v3053_v13 = vpop.f32.mrb[45].mxu1  ;;  %3315 = vmatmul.mubr.f32.gmra.mrb[150].mxu1 %v1863_v5  ;;  %v1885_v9 = vld [vmem:[%s6968_s3 + $0x630] sm:$0xff]  ;;  %v1888_v56 = vld [vmem:[%s6968_s3 + $0x648] sm:$0xff] }
 0x3b2   : > { %4136 = vmatprep.mubr.msk.f32.mxu1 %vm2503_vm2, %v1866_v7 }
 0x3b3   : > { %3420 = vst [vmem:[%s6383_s26 + $0x118] sm:$0xff] %v3052_v11  ;;  %v2226_v11 = vpop.permute.xlu0 %2225 }
 0x3b4   : > { %v3056_v16 = vpop.f32.mrb[46].mxu1 }
 0x3b5   : > { %v3057_v19 = vadd.f32 %v3056_v16, %v2176_v14  ;;  %v3058_v20 = vpop.f32.mrb[47].mxu1  ;;  %3320 = vmatmul.mubr.f32.gmra.mrb[152].mxu1 %v1865_v1  ;;  %v1887_v14 = vld [vmem:[%s6968_s3 + $0x640] sm:$0xff]  ;;  %v1890_v16 = vld [vmem:[%s6968_s3 + $0x658] sm:$0xff] }
 0x3b6   : > { %4137 = vmatprep.mubr.msk.f32.mxu1 %vm2503_vm2, %v1868_v59 }
 0x3b7   : > { %3421 = vst [vmem:[%s6383_s26 + $0x120] sm:$0xff] %v3057_v19  ;;  %v2231_v19 = vpop.permute.xlu1 %2230 }
 0x3b8   : > { %v3061_v27 = vpop.f32.mrb[48].mxu1 }
 0x3b9   : > { %v3062_v21 = vadd.f32 %v3061_v27, %v2181_v24  ;;  %v3063_v3 = vpop.f32.mrb[49].mxu1  ;;  %3325 = vmatmul.mubr.f32.gmra.mrb[154].mxu1 %v1867_v22  ;;  %v1889_v24 = vld [vmem:[%s6968_s3 + $0x650] sm:$0xff]  ;;  %v2236_v27 = vpop.permute.xlu0 %2235 }
 0x3ba   : > { %4138 = vmatprep.mubr.msk.f32.mxu1 %vm2503_vm2, %v1870_v23 }
 0x3bb   : > { %3422 = vst [vmem:[%s6383_s26 + $0x128] sm:$0xff] %v3062_v21 }
 0x3bc   : > { %v3066_v31 = vpop.f32.mrb[50].mxu1 }
 0x3bd   : > { %v3067_v32 = vadd.f32 %v3066_v31, %v2186_v30  ;;  %v3068_v33 = vpop.f32.mrb[51].mxu1  ;;  %3330 = vmatmul.mubr.f32.gmra.mrb[156].mxu1 %v1869_v28 }
 0x3be   : > { %4139 = vmatprep.mubr.msk.f32.mxu1 %vm2503_vm2, %v1872_v29  ;;  %v2241_v29 = vpop.permute.xlu1 %2240  ;;  %v2246_v33 = vpop.permute.xlu0 %2245 }
 0x3bf   : > { %3423 = vst [vmem:[%s6383_s26 + $0x130] sm:$0xff] %v3067_v32 }
 0x3c0   : > { %v3071_v36 = vpop.f32.mrb[52].mxu1 }
 0x3c1   : > { %v3072_v37 = vadd.f32 %v3071_v36, %v2191_v6  ;;  %v3073_v38 = vpop.f32.mrb[53].mxu1  ;;  %3335 = vmatmul.mubr.f32.gmra.mrb[158].mxu1 %v1871_v34 }
 0x3c2   : > { %4140 = vmatprep.mubr.msk.f32.mxu1 %vm2503_vm2, %v1874_v35  ;;  %v2251_v36 = vpop.permute.xlu1 %2250 }
 0x3c3   : > { %3424 = vst [vmem:[%s6383_s26 + $0x138] sm:$0xff] %v3072_v37 }
 0x3c4   : > { %v3076_v42 = vpop.f32.mrb[54].mxu1 }
 0x3c5   : > { %v3077_v43 = vadd.f32 %v3076_v42, %v2196_v41  ;;  %v3078_v8 = vpop.f32.mrb[55].mxu1  ;;  %3340 = vmatmul.mubr.f32.gmra.mrb[160].mxu1 %v1873_v39 }
 0x3c6   : > { %4141 = vmatprep.mubr.msk.f32.mxu1 %vm2503_vm2, %v1876_v40  ;;  %v2256_v40 = vpop.permute.xlu0 %2255  ;;  %v2261_v8 = vpop.permute.xlu1 %2260 }
 0x3c7   : > { %3425 = vst [vmem:[%s6383_s26 + $0x140] sm:$0xff] %v3077_v43 }
 0x3c8   : > { %v3081_v46 = vpop.f32.mrb[56].mxu1 }
 0x3c9   : > { %v3082_v26 = vadd.f32 %v3081_v46, %v2201_v45  ;;  %v3083_v47 = vpop.f32.mrb[57].mxu1  ;;  %3345 = vmatmul.mubr.f32.gmra.mrb[162].mxu1 %v1875_v18 }
 0x3ca   : > { %4142 = vmatprep.mubr.msk.f32.mxu1 %vm2503_vm2, %v1878_v44  ;;  %v2266_v46 = vpop.permute.xlu0 %2265 }
 0x3cb   : > { %3426 = vst [vmem:[%s6383_s26 + $0x148] sm:$0xff] %v3082_v26 }
 0x3cc   : > { %v3086_v50 = vpop.f32.mrb[58].mxu1 }
 0x3cd   : > { %v3087_v51 = vadd.f32 %v3086_v50, %v2206_v10  ;;  %v3088_v52 = vpop.f32.mrb[59].mxu1  ;;  %3350 = vmatmul.mubr.f32.gmra.mrb[164].mxu1 %v1877_v48 }
 0x3ce   : > { %4143 = vmatprep.mubr.msk.f32.mxu1 %vm2503_vm2, %v1880_v49  ;;  %v2271_v49 = vpop.permute.xlu1 %2270  ;;  %v2276_v52 = vpop.permute.xlu0 %2275 }
 0x3cf   : > { %3427 = vst [vmem:[%s6383_s26 + $0x150] sm:$0xff] %v3087_v51 }
 0x3d0   : > { %v3091_v55 = vpop.f32.mrb[60].mxu1 }
 0x3d1   : > { %v3092_v57 = vadd.f32 %v3091_v55, %v2211_v17  ;;  %v3093_v12 = vpop.f32.mrb[61].mxu1  ;;  %3355 = vmatmul.mubr.f32.gmra.mrb[166].mxu1 %v1879_v53 }
 0x3d2   : > { %4144 = vmatprep.mubr.msk.f32.mxu1 %vm2503_vm2, %v1882_v54  ;;  %v2281_v55 = vpop.permute.xlu1 %2280 }
 0x3d3   : > { %3428 = vst [vmem:[%s6383_s26 + $0x158] sm:$0xff] %v3092_v57 }
 0x3d4   : > { %v3096_v62 = vpop.f32.mrb[62].mxu1 }
 0x3d5   : > { %v3097_v63 = vadd.f32 %v3096_v62, %v2216_v61  ;;  %v3098_v0 = vpop.f32.mrb[63].mxu1  ;;  %3360 = vmatmul.mubr.f32.gmra.mrb[168].mxu1 %v1881_v58 }
 0x3d6   : > { %4145 = vmatprep.mubr.msk.f32.mxu1 %vm2503_vm2, %v1884_v60  ;;  %v2286_v60 = vpop.permute.xlu0 %2285  ;;  %v2291_v0 = vpop.permute.xlu1 %2290 }
 0x3d7   : > { %3429 = vst [vmem:[%s6383_s26 + $0x160] sm:$0xff] %v3097_v63 }
 0x3d8   : > { %v3101_v4 = vpop.f32.mrb[64].mxu1 }
 0x3d9   : > { %v3102_v5 = vadd.f32 %v3101_v4, %v2221_v15  ;;  %v3103_v7 = vpop.f32.mrb[65].mxu1  ;;  %3365 = vmatmul.mubr.f32.gmra.mrb[170].mxu1 %v1883_v25 }
 0x3da   : > { %4146 = vmatprep.mubr.msk.f32.mxu1 %vm2503_vm2, %v1886_v2  ;;  %v2296_v4 = vpop.permute.xlu0 %2295 }
 0x3db   : > { %3430 = vst [vmem:[%s6383_s26 + $0x168] sm:$0xff] %v3102_v5 }
 0x3dc   : > { %v3106_v13 = vpop.f32.mrb[66].mxu1 }
 0x3dd   : > { %v3107_v1 = vadd.f32 %v3106_v13, %v2226_v11  ;;  %v3108_v59 = vpop.f32.mrb[67].mxu1  ;;  %3370 = vmatmul.mubr.f32.gmra.mrb[172].mxu1 %v1885_v9 }
 0x3de   : > { %4147 = vmatprep.mubr.msk.f32.mxu1 %vm2503_vm2, %v1888_v56  ;;  %v2301_v56 = vpop.permute.xlu1 %2300  ;;  %v2306_v59 = vpop.permute.xlu0 %2305 }
 0x3df   : > { %3431 = vst [vmem:[%s6383_s26 + $0x170] sm:$0xff] %v3107_v1 }
 0x3e0   : > { %v3111_v20 = vpop.f32.mrb[68].mxu1 }
 0x3e1   : > { %v3112_v22 = vadd.f32 %v3111_v20, %v2231_v19  ;;  %v3113_v23 = vpop.f32.mrb[69].mxu1  ;;  %3375 = vmatmul.mubr.f32.gmra.mrb[174].mxu1 %v1887_v14 }
 0x3e2   : > { %4148 = vmatprep.mubr.msk.f32.mxu1 %vm2503_vm2, %v1890_v16  ;;  %v2311_v20 = vpop.permute.xlu1 %2310 }
 0x3e3   : > { %3432 = vst [vmem:[%s6383_s26 + $0x178] sm:$0xff] %v3112_v22 }
 0x3e4   : > { %v3116_v21 = vpop.f32.mrb[70].mxu1 }
 0x3e5   : > { %v3117_v3 = vadd.f32 %v3116_v21, %v2236_v27  ;;  %v3118_v28 = vpop.f32.mrb[71].mxu1  ;;  %3380 = vmatmul.mubr.f32.gmra.mrb[176].mxu1 %v1889_v24  ;;  %v2316_v27 = vpop.permute.xlu0 %2315 }
 0x3e7   : > { %3433 = vst [vmem:[%s6383_s26 + $0x180] sm:$0xff] %v3117_v3 }
 0x3e8   : > { %v3121_v30 = vpop.f32.mrb[72].mxu1 }
 0x3e9   : > { %v3122_v31 = vadd.f32 %v3121_v30, %v2241_v29  ;;  %v3123_v32 = vpop.f32.mrb[73].mxu1  ;;  %v2321_v29 = vpop.permute.xlu1 %2320 }
 0x3eb   : > { %3434 = vst [vmem:[%s6383_s26 + $0x188] sm:$0xff] %v3122_v31 }
 0x3ec   : > { %v3126_v34 = vpop.f32.mrb[74].mxu1 }
 0x3ed   : > { %v3127_v35 = vadd.f32 %v3126_v34, %v2246_v33  ;;  %v3128_v6 = vpop.f32.mrb[75].mxu1  ;;  %v2326_v33 = vpop.permute.xlu0 %2325 }
 0x3ef   : > { %3435 = vst [vmem:[%s6383_s26 + $0x190] sm:$0xff] %v3127_v35 }
 0x3f0   : > { %v3131_v37 = vpop.f32.mrb[76].mxu1 }
 0x3f1   : > { %v3132_v38 = vadd.f32 %v3131_v37, %v2251_v36  ;;  %v3133_v39 = vpop.f32.mrb[77].mxu1  ;;  %v2331_v36 = vpop.permute.xlu1 %2330 }
 0x3f3   : > { %3436 = vst [vmem:[%s6383_s26 + $0x198] sm:$0xff] %v3132_v38 }
 0x3f4   : > { %v3136_v41 = vpop.f32.mrb[78].mxu1 }
 0x3f5   : > { %v3137_v42 = vadd.f32 %v3136_v41, %v2256_v40  ;;  %v3138_v43 = vpop.f32.mrb[79].mxu1  ;;  %v2336_v40 = vpop.permute.xlu0 %2335 }
 0x3f7   : > { %3437 = vst [vmem:[%s6383_s26 + $0x1a0] sm:$0xff] %v3137_v42 }
 0x3f8   : > { %v3141_v18 = vpop.f32.mrb[80].mxu1 }
 0x3f9   : > { %v3142_v44 = vadd.f32 %v3141_v18, %v2261_v8  ;;  %v3143_v45 = vpop.f32.mrb[81].mxu1  ;;  %v2341_v8 = vpop.permute.xlu1 %2340 }
 0x3fb   : > { %3438 = vst [vmem:[%s6383_s26 + $0x1a8] sm:$0xff] %v3142_v44 }
 0x3fc   : > { %v3146_v26 = vpop.f32.mrb[82].mxu1 }
 0x3fd   : > { %v3147_v47 = vadd.f32 %v3146_v26, %v2266_v46  ;;  %v3148_v48 = vpop.f32.mrb[83].mxu1  ;;  %v2346_v46 = vpop.permute.xlu0 %2345 }
 0x3ff   : > { %3439 = vst [vmem:[%s6383_s26 + $0x1b0] sm:$0xff] %v3147_v47 }
 0x400   : > { %v3151_v10 = vpop.f32.mrb[84].mxu1 }
 0x401   : > { %v3152_v50 = vadd.f32 %v3151_v10, %v2271_v49  ;;  %v3153_v51 = vpop.f32.mrb[85].mxu1  ;;  %v2351_v49 = vpop.permute.xlu1 %2350 }
 0x403   : > { %3440 = vst [vmem:[%s6383_s26 + $0x1b8] sm:$0xff] %v3152_v50 }
 0x404   : > { %v3156_v53 = vpop.f32.mrb[86].mxu1 }
 0x405   : > { %v3157_v54 = vadd.f32 %v3156_v53, %v2276_v52  ;;  %v3158_v17 = vpop.f32.mrb[87].mxu1  ;;  %v2356_v52 = vpop.permute.xlu0 %2355 }
 0x407   : > { %3441 = vst [vmem:[%s6383_s26 + $0x1c0] sm:$0xff] %v3157_v54 }
 0x408   : > { %v3161_v57 = vpop.f32.mrb[88].mxu1 }
 0x409   : > { %v3162_v12 = vadd.f32 %v3161_v57, %v2281_v55  ;;  %v3163_v58 = vpop.f32.mrb[89].mxu1  ;;  %v2361_v55 = vpop.permute.xlu1 %2360 }
 0x40b   : > { %3442 = vst [vmem:[%s6383_s26 + $0x1c8] sm:$0xff] %v3162_v12 }
 0x40c   : > { %v3166_v61 = vpop.f32.mrb[90].mxu1 }
 0x40d   : > { %v3167_v62 = vadd.f32 %v3166_v61, %v2286_v60  ;;  %v3168_v63 = vpop.f32.mrb[91].mxu1  ;;  %v2366_v60 = vpop.permute.xlu0 %2365 }
 0x40f   : > { %3443 = vst [vmem:[%s6383_s26 + $0x1d0] sm:$0xff] %v3167_v62 }
 0x410   : > { %v3171_v25 = vpop.f32.mrb[92].mxu1 }
 0x411   : > { %v3172_v2 = vadd.f32 %v3171_v25, %v2291_v0  ;;  %v3173_v15 = vpop.f32.mrb[93].mxu1  ;;  %v2371_v0 = vpop.permute.xlu1 %2370 }
 0x413   : > { %3444 = vst [vmem:[%s6383_s26 + $0x1d8] sm:$0xff] %v3172_v2 }
 0x414   : > { %v3176_v5 = vpop.f32.mrb[94].mxu1 }
 0x415   : > { %v3177_v7 = vadd.f32 %v3176_v5, %v2296_v4  ;;  %v3178_v9 = vpop.f32.mrb[95].mxu1  ;;  %v2376_v4 = vpop.permute.xlu0 %2375 }
 0x417   : > { %3445 = vst [vmem:[%s6383_s26 + $0x1e0] sm:$0xff] %v3177_v7 }
 0x418   : > { %v3181_v11 = vpop.f32.mrb[96].mxu1 }
 0x419   : > { %v3182_v13 = vadd.f32 %v3181_v11, %v2301_v56  ;;  %v3183_v1 = vpop.f32.mrb[97].mxu1  ;;  %v2381_v56 = vpop.permute.xlu1 %2380 }
 0x41b   : > { %3446 = vst [vmem:[%s6383_s26 + $0x1e8] sm:$0xff] %v3182_v13 }
 0x41c   : > { %v3186_v14 = vpop.f32.mrb[98].mxu1 }
 0x41d   : > { %v3187_v16 = vadd.f32 %v3186_v14, %v2306_v59  ;;  %v3188_v19 = vpop.f32.mrb[99].mxu1  ;;  %v2386_v59 = vpop.permute.xlu0 %2385 }
 0x41f   : > { %3447 = vst [vmem:[%s6383_s26 + $0x1f0] sm:$0xff] %v3187_v16 }
 0x420   : > { %v3191_v22 = vpop.f32.mrb[100].mxu1 }
 0x421   : > { %v3192_v23 = vadd.f32 %v3191_v22, %v2311_v20  ;;  %v3193_v24 = vpop.f32.mrb[101].mxu1  ;;  %v2391_v20 = vpop.permute.xlu1 %2390 }
 0x423   : > { %3448 = vst [vmem:[%s6383_s26 + $0x1f8] sm:$0xff] %v3192_v23 }
 0x424   : > { %v3196_v21 = vpop.f32.mrb[102].mxu1 }
 0x425   : > { %v3197_v3 = vadd.f32 %v3196_v21, %v2316_v27  ;;  %v3198_v28 = vpop.f32.mrb[103].mxu1  ;;  %v2396_v27 = vpop.permute.xlu0 %2395 }
 0x427   : > { %3449 = vst [vmem:[%s6383_s26 + $0x200] sm:$0xff] %v3197_v3 }
 0x428   : > { %v3201_v30 = vpop.f32.mrb[104].mxu1 }
 0x429   : > { %v3202_v31 = vadd.f32 %v3201_v30, %v2321_v29  ;;  %v3203_v32 = vpop.f32.mrb[105].mxu1  ;;  %v2401_v29 = vpop.permute.xlu1 %2400 }
 0x42b   : > { %3450 = vst [vmem:[%s6383_s26 + $0x208] sm:$0xff] %v3202_v31 }
 0x42c   : > { %v3206_v34 = vpop.f32.mrb[106].mxu1 }
 0x42d   : > { %v3207_v35 = vadd.f32 %v3206_v34, %v2326_v33  ;;  %v3208_v6 = vpop.f32.mrb[107].mxu1  ;;  %v2406_v33 = vpop.permute.xlu0 %2405 }
 0x42f   : > { %3451 = vst [vmem:[%s6383_s26 + $0x210] sm:$0xff] %v3207_v35 }
 0x430   : > { %v3211_v37 = vpop.f32.mrb[108].mxu1 }
 0x431   : > { %v3212_v38 = vadd.f32 %v3211_v37, %v2331_v36  ;;  %v3213_v39 = vpop.f32.mrb[109].mxu1  ;;  %v2411_v36 = vpop.permute.xlu1 %2410 }
 0x433   : > { %3452 = vst [vmem:[%s6383_s26 + $0x218] sm:$0xff] %v3212_v38 }
 0x434   : > { %v3216_v41 = vpop.f32.mrb[110].mxu1 }
 0x435   : > { %v3217_v42 = vadd.f32 %v3216_v41, %v2336_v40  ;;  %v3218_v43 = vpop.f32.mrb[111].mxu1  ;;  %v2416_v40 = vpop.permute.xlu0 %2415 }
 0x437   : > { %3453 = vst [vmem:[%s6383_s26 + $0x220] sm:$0xff] %v3217_v42 }
 0x438   : > { %v3221_v18 = vpop.f32.mrb[112].mxu1 }
 0x439   : > { %v3222_v44 = vadd.f32 %v3221_v18, %v2341_v8  ;;  %v3223_v45 = vpop.f32.mrb[113].mxu1  ;;  %v2421_v8 = vpop.permute.xlu1 %2420 }
 0x43b   : > { %3454 = vst [vmem:[%s6383_s26 + $0x228] sm:$0xff] %v3222_v44 }
 0x43c   : > { %v3226_v26 = vpop.f32.mrb[114].mxu1 }
 0x43d   : > { %v3227_v47 = vadd.f32 %v3226_v26, %v2346_v46  ;;  %v3228_v48 = vpop.f32.mrb[115].mxu1  ;;  %v2426_v46 = vpop.permute.xlu0 %2425 }
 0x43f   : > { %3455 = vst [vmem:[%s6383_s26 + $0x230] sm:$0xff] %v3227_v47 }
 0x440   : > { %v3231_v10 = vpop.f32.mrb[116].mxu1 }
 0x441   : > { %v3232_v50 = vadd.f32 %v3231_v10, %v2351_v49  ;;  %v3233_v51 = vpop.f32.mrb[117].mxu1  ;;  %v2431_v49 = vpop.permute.xlu1 %2430 }
 0x443   : > { %3456 = vst [vmem:[%s6383_s26 + $0x238] sm:$0xff] %v3232_v50 }
 0x444   : > { %v3236_v53 = vpop.f32.mrb[118].mxu1 }
 0x445   : > { %v3237_v54 = vadd.f32 %v3236_v53, %v2356_v52  ;;  %v3238_v17 = vpop.f32.mrb[119].mxu1  ;;  %v2436_v52 = vpop.permute.xlu0 %2435 }
 0x447   : > { %3457 = vst [vmem:[%s6383_s26 + $0x240] sm:$0xff] %v3237_v54 }
 0x448   : > { %v3241_v57 = vpop.f32.mrb[120].mxu1 }
 0x449   : > { %v3242_v12 = vadd.f32 %v3241_v57, %v2361_v55  ;;  %v3243_v58 = vpop.f32.mrb[121].mxu1  ;;  %v2441_v55 = vpop.permute.xlu1 %2440 }
 0x44b   : > { %3458 = vst [vmem:[%s6383_s26 + $0x248] sm:$0xff] %v3242_v12 }
 0x44c   : > { %v3246_v61 = vpop.f32.mrb[122].mxu1 }
 0x44d   : > { %v3247_v62 = vadd.f32 %v3246_v61, %v2366_v60  ;;  %v3248_v63 = vpop.f32.mrb[123].mxu1  ;;  %v2446_v60 = vpop.permute.xlu0 %2445 }
 0x44f   : > { %3459 = vst [vmem:[%s6383_s26 + $0x250] sm:$0xff] %v3247_v62 }
 0x450   : > { %v3251_v25 = vpop.f32.mrb[124].mxu1 }
 0x451   : > { %v3252_v2 = vadd.f32 %v3251_v25, %v2371_v0  ;;  %v3253_v15 = vpop.f32.mrb[125].mxu1  ;;  %v2451_v0 = vpop.permute.xlu1 %2450 }
 0x453   : > { %3460 = vst [vmem:[%s6383_s26 + $0x258] sm:$0xff] %v3252_v2 }
 0x454   : > { %v3256_v5 = vpop.f32.mrb[126].mxu1 }
 0x455   : > { %v3257_v7 = vadd.f32 %v3256_v5, %v2376_v4  ;;  %v3258_v9 = vpop.f32.mrb[127].mxu1  ;;  %v2456_v4 = vpop.permute.xlu0 %2455 }
 0x457   : > { %3461 = vst [vmem:[%s6383_s26 + $0x260] sm:$0xff] %v3257_v7 }
 0x458   : > { %v3261_v11 = vpop.f32.mrb[128].mxu1 }
 0x459   : > { %v3262_v13 = vadd.f32 %v3261_v11, %v2381_v56  ;;  %v3263_v1 = vpop.f32.mrb[129].mxu1  ;;  %v2461_v56 = vpop.permute.xlu1 %2460 }
 0x45b   : > { %3462 = vst [vmem:[%s6383_s26 + $0x268] sm:$0xff] %v3262_v13 }
 0x45c   : > { %v3266_v14 = vpop.f32.mrb[130].mxu1 }
 0x45d   : > { %v3267_v16 = vadd.f32 %v3266_v14, %v2386_v59  ;;  %v3268_v19 = vpop.f32.mrb[131].mxu1  ;;  %v2466_v59 = vpop.permute.xlu0 %2465 }
 0x45f   : > { %3463 = vst [vmem:[%s6383_s26 + $0x270] sm:$0xff] %v3267_v16 }
 0x460   : > { %v3271_v22 = vpop.f32.mrb[132].mxu1 }
 0x461   : > { %v3272_v23 = vadd.f32 %v3271_v22, %v2391_v20  ;;  %v3273_v24 = vpop.f32.mrb[133].mxu1  ;;  %v2471_v20 = vpop.permute.xlu1 %2470 }
 0x463   : > { %3464 = vst [vmem:[%s6383_s26 + $0x278] sm:$0xff] %v3272_v23 }
 0x464   : > { %v3276_v21 = vpop.f32.mrb[134].mxu1 }
 0x465   : > { %v3277_v3 = vadd.f32 %v3276_v21, %v2396_v27  ;;  %v3278_v28 = vpop.f32.mrb[135].mxu1  ;;  %v2476_v27 = vpop.permute.xlu0 %2475 }
 0x467   : > { %3465 = vst [vmem:[%s6383_s26 + $0x280] sm:$0xff] %v3277_v3 }
 0x468   : > { %v3281_v30 = vpop.f32.mrb[136].mxu1 }
 0x469   : > { %v3282_v31 = vadd.f32 %v3281_v30, %v2401_v29  ;;  %v3283_v32 = vpop.f32.mrb[137].mxu1  ;;  %v2481_v29 = vpop.permute.xlu1 %2480 }
 0x46b   : > { %3466 = vst [vmem:[%s6383_s26 + $0x288] sm:$0xff] %v3282_v31 }
 0x46c   : > { %v3286_v34 = vpop.f32.mrb[138].mxu1 }
 0x46d   : > { %v3287_v35 = vadd.f32 %v3286_v34, %v2406_v33  ;;  %v3288_v6 = vpop.f32.mrb[139].mxu1  ;;  %v2486_v33 = vpop.permute.xlu0 %2485 }
 0x46f   : > { %3467 = vst [vmem:[%s6383_s26 + $0x290] sm:$0xff] %v3287_v35 }
 0x470   : > { %v3291_v37 = vpop.f32.mrb[140].mxu1 }
 0x471   : > { %v3292_v38 = vadd.f32 %v3291_v37, %v2411_v36  ;;  %v3293_v39 = vpop.f32.mrb[141].mxu1  ;;  %v2491_v36 = vpop.permute.xlu1 %2490 }
 0x473   : > { %3468 = vst [vmem:[%s6383_s26 + $0x298] sm:$0xff] %v3292_v38 }
 0x474   : > { %v3296_v41 = vpop.f32.mrb[142].mxu1 }
 0x475   : > { %v3297_v42 = vadd.f32 %v3296_v41, %v2416_v40  ;;  %v3298_v43 = vpop.f32.mrb[143].mxu1  ;;  %v2496_v40 = vpop.permute.xlu0 %2495 }
 0x477   : > { %3469 = vst [vmem:[%s6383_s26 + $0x2a0] sm:$0xff] %v3297_v42 }
 0x478   : > { %v3301_v18 = vpop.f32.mrb[144].mxu1 }
 0x479   : > { %v3302_v44 = vadd.f32 %v3301_v18, %v2421_v8  ;;  %v3303_v45 = vpop.f32.mrb[145].mxu1  ;;  %v2501_v8 = vpop.permute.xlu1 %2500 }
 0x47b   : > { %3470 = vst [vmem:[%s6383_s26 + $0x2a8] sm:$0xff] %v3302_v44 }
 0x47c   : > { %v3306_v26 = vpop.f32.mrb[146].mxu1 }
 0x47d   : > { %v3307_v47 = vadd.f32 %v3306_v26, %v2426_v46  ;;  %v3308_v48 = vpop.f32.mrb[147].mxu1  ;;  %v3727_v46 = vld [vmem:[%s6383_s26] sm:$0xff] (%p4715_p6)  ;;  %v3729_v26 = vld [vmem:[%s6383_s26 + $0x8] sm:$0xff] (%p4715_p6) }
 0x47e   : > { %v3733_v48 = vld [vmem:[%s6383_s26 + $0x18] sm:$0xff] (%p4715_p6)  ;;  %3728 = vst [vmem:[%s6747_s8] sm:$0xff] (%p4715_p6), %v3727_v46  ;;  %3730 = vst [vmem:[%s6747_s8 + $0x10] sm:$0xff] (%p4715_p6), %v3729_v26  ;;  %v3855_v46 = vld [vmem:[%s6383_s26 + $0x200] sm:$0xff] (%p4715_p6) }
 0x47f   : > { %3471 = vst [vmem:[%s6383_s26 + $0x2b0] sm:$0xff] %v3307_v47  ;;  %v3731_v47 = vld [vmem:[%s6383_s26 + $0x10] sm:$0xff] (%p4715_p6)  ;;  %3734 = vst [vmem:[%s6747_s8 + $0x30] sm:$0xff] (%p4715_p6), %v3733_v48  ;;  %v3857_v26 = vld [vmem:[%s6383_s26 + $0x208] sm:$0xff] (%p4715_p6) }
 0x480   : > { %v3311_v10 = vpop.f32.mrb[148].mxu1  ;;  %3732 = vst [vmem:[%s6747_s8 + $0x20] sm:$0xff] (%p4715_p6), %v3731_v47  ;;  %3856 = vst [vmem:[%s6747_s8 + $0x400] sm:$0xff] (%p4715_p6), %v3855_v46  ;;  %v3859_v47 = vld [vmem:[%s6383_s26 + $0x210] sm:$0xff] (%p4715_p6)  ;;  %v3861_v48 = vld [vmem:[%s6383_s26 + $0x218] sm:$0xff] (%p4715_p6) }
 0x481   : > { %v3312_v50 = vadd.f32 %v3311_v10, %v2431_v49  ;;  %v3313_v51 = vpop.f32.mrb[149].mxu1  ;;  %v3735_v49 = vld [vmem:[%s6383_s26 + $0x20] sm:$0xff] (%p4715_p6)  ;;  %v3737_v10 = vld [vmem:[%s6383_s26 + $0x28] sm:$0xff] (%p4715_p6)  ;;  %3858 = vst [vmem:[%s6747_s8 + $0x410] sm:$0xff] (%p4715_p6), %v3857_v26  ;;  %3860 = vst [vmem:[%s6747_s8 + $0x420] sm:$0xff] (%p4715_p6), %v3859_v47 }
 0x482   : > { %3736 = vst [vmem:[%s6747_s8 + $0x40] sm:$0xff] (%p4715_p6), %v3735_v49  ;;  %3738 = vst [vmem:[%s6747_s8 + $0x50] sm:$0xff] (%p4715_p6), %v3737_v10  ;;  %v3741_v51 = vld [vmem:[%s6383_s26 + $0x38] sm:$0xff] (%p4715_p6)  ;;  %v3863_v49 = vld [vmem:[%s6383_s26 + $0x220] sm:$0xff] (%p4715_p6) }
 0x483   : > { %3472 = vst [vmem:[%s6383_s26 + $0x2b8] sm:$0xff] %v3312_v50  ;;  %v3739_v50 = vld [vmem:[%s6383_s26 + $0x30] sm:$0xff] (%p4715_p6)  ;;  %3742 = vst [vmem:[%s6747_s8 + $0x70] sm:$0xff] (%p4715_p6), %v3741_v51  ;;  %v3865_v10 = vld [vmem:[%s6383_s26 + $0x228] sm:$0xff] (%p4715_p6) }
 0x484   : > { %v3316_v53 = vpop.f32.mrb[150].mxu1  ;;  %3740 = vst [vmem:[%s6747_s8 + $0x60] sm:$0xff] (%p4715_p6), %v3739_v50  ;;  %3862 = vst [vmem:[%s6747_s8 + $0x430] sm:$0xff] (%p4715_p6), %v3861_v48  ;;  %v3867_v50 = vld [vmem:[%s6383_s26 + $0x230] sm:$0xff] (%p4715_p6)  ;;  %v3869_v51 = vld [vmem:[%s6383_s26 + $0x238] sm:$0xff] (%p4715_p6) }
 0x485   : > { %v3317_v54 = vadd.f32 %v3316_v53, %v2436_v52  ;;  %v3318_v17 = vpop.f32.mrb[151].mxu1  ;;  %v3743_v52 = vld [vmem:[%s6383_s26 + $0x40] sm:$0xff] (%p4715_p6)  ;;  %v3745_v53 = vld [vmem:[%s6383_s26 + $0x48] sm:$0xff] (%p4715_p6)  ;;  %3864 = vst [vmem:[%s6747_s8 + $0x440] sm:$0xff] (%p4715_p6), %v3863_v49  ;;  %3866 = vst [vmem:[%s6747_s8 + $0x450] sm:$0xff] (%p4715_p6), %v3865_v10 }
 0x486   : > { %3744 = vst [vmem:[%s6747_s8 + $0x80] sm:$0xff] (%p4715_p6), %v3743_v52  ;;  %v3749_v17 = vld [vmem:[%s6383_s26 + $0x58] sm:$0xff] (%p4715_p6)  ;;  %3746 = vst [vmem:[%s6747_s8 + $0x90] sm:$0xff] (%p4715_p6), %v3745_v53  ;;  %v3871_v52 = vld [vmem:[%s6383_s26 + $0x240] sm:$0xff] (%p4715_p6) }
 0x487   : > { %3473 = vst [vmem:[%s6383_s26 + $0x2c0] sm:$0xff] %v3317_v54  ;;  %v3747_v54 = vld [vmem:[%s6383_s26 + $0x50] sm:$0xff] (%p4715_p6)  ;;  %3750 = vst [vmem:[%s6747_s8 + $0xb0] sm:$0xff] (%p4715_p6), %v3749_v17  ;;  %v3873_v53 = vld [vmem:[%s6383_s26 + $0x248] sm:$0xff] (%p4715_p6) }
 0x488   : > { %v3321_v57 = vpop.f32.mrb[152].mxu1  ;;  %3748 = vst [vmem:[%s6747_s8 + $0xa0] sm:$0xff] (%p4715_p6), %v3747_v54  ;;  %3868 = vst [vmem:[%s6747_s8 + $0x460] sm:$0xff] (%p4715_p6), %v3867_v50  ;;  %v3875_v54 = vld [vmem:[%s6383_s26 + $0x250] sm:$0xff] (%p4715_p6)  ;;  %v3877_v17 = vld [vmem:[%s6383_s26 + $0x258] sm:$0xff] (%p4715_p6) }
 0x489   : > { %v3322_v12 = vadd.f32 %v3321_v57, %v2441_v55  ;;  %v3323_v58 = vpop.f32.mrb[153].mxu1  ;;  %v3751_v55 = vld [vmem:[%s6383_s26 + $0x60] sm:$0xff] (%p4715_p6)  ;;  %v3753_v57 = vld [vmem:[%s6383_s26 + $0x68] sm:$0xff] (%p4715_p6)  ;;  %3870 = vst [vmem:[%s6747_s8 + $0x470] sm:$0xff] (%p4715_p6), %v3869_v51  ;;  %3872 = vst [vmem:[%s6747_s8 + $0x480] sm:$0xff] (%p4715_p6), %v3871_v52 }
 0x48a   : > { %3752 = vst [vmem:[%s6747_s8 + $0xc0] sm:$0xff] (%p4715_p6), %v3751_v55  ;;  %3754 = vst [vmem:[%s6747_s8 + $0xd0] sm:$0xff] (%p4715_p6), %v3753_v57  ;;  %v3757_v58 = vld [vmem:[%s6383_s26 + $0x78] sm:$0xff] (%p4715_p6)  ;;  %v3879_v55 = vld [vmem:[%s6383_s26 + $0x260] sm:$0xff] (%p4715_p6) }
 0x48b   : > { %3474 = vst [vmem:[%s6383_s26 + $0x2c8] sm:$0xff] %v3322_v12  ;;  %v3755_v12 = vld [vmem:[%s6383_s26 + $0x70] sm:$0xff] (%p4715_p6)  ;;  %3758 = vst [vmem:[%s6747_s8 + $0xf0] sm:$0xff] (%p4715_p6), %v3757_v58  ;;  %v3881_v57 = vld [vmem:[%s6383_s26 + $0x268] sm:$0xff] (%p4715_p6) }
 0x48c   : > { %v3326_v61 = vpop.f32.mrb[154].mxu1  ;;  %3756 = vst [vmem:[%s6747_s8 + $0xe0] sm:$0xff] (%p4715_p6), %v3755_v12  ;;  %3874 = vst [vmem:[%s6747_s8 + $0x490] sm:$0xff] (%p4715_p6), %v3873_v53  ;;  %v3883_v12 = vld [vmem:[%s6383_s26 + $0x270] sm:$0xff] (%p4715_p6)  ;;  %v3885_v58 = vld [vmem:[%s6383_s26 + $0x278] sm:$0xff] (%p4715_p6) }
 0x48d   : > { %v3327_v62 = vadd.f32 %v3326_v61, %v2446_v60  ;;  %v3328_v63 = vpop.f32.mrb[155].mxu1  ;;  %v3759_v60 = vld [vmem:[%s6383_s26 + $0x80] sm:$0xff] (%p4715_p6)  ;;  %v3761_v61 = vld [vmem:[%s6383_s26 + $0x88] sm:$0xff] (%p4715_p6)  ;;  %3876 = vst [vmem:[%s6747_s8 + $0x4a0] sm:$0xff] (%p4715_p6), %v3875_v54  ;;  %3878 = vst [vmem:[%s6747_s8 + $0x4b0] sm:$0xff] (%p4715_p6), %v3877_v17 }
 0x48e   : > { %3760 = vst [vmem:[%s6747_s8 + $0x100] sm:$0xff] (%p4715_p6), %v3759_v60  ;;  %3762 = vst [vmem:[%s6747_s8 + $0x110] sm:$0xff] (%p4715_p6), %v3761_v61  ;;  %v3765_v63 = vld [vmem:[%s6383_s26 + $0x98] sm:$0xff] (%p4715_p6)  ;;  %v3887_v60 = vld [vmem:[%s6383_s26 + $0x280] sm:$0xff] (%p4715_p6) }
 0x48f   : > { %3475 = vst [vmem:[%s6383_s26 + $0x2d0] sm:$0xff] %v3327_v62  ;;  %v3763_v62 = vld [vmem:[%s6383_s26 + $0x90] sm:$0xff] (%p4715_p6)  ;;  %3766 = vst [vmem:[%s6747_s8 + $0x130] sm:$0xff] (%p4715_p6), %v3765_v63  ;;  %v3889_v61 = vld [vmem:[%s6383_s26 + $0x288] sm:$0xff] (%p4715_p6) }
 0x490   : > { %v3331_v25 = vpop.f32.mrb[156].mxu1  ;;  %3764 = vst [vmem:[%s6747_s8 + $0x120] sm:$0xff] (%p4715_p6), %v3763_v62  ;;  %3880 = vst [vmem:[%s6747_s8 + $0x4c0] sm:$0xff] (%p4715_p6), %v3879_v55  ;;  %v3891_v62 = vld [vmem:[%s6383_s26 + $0x290] sm:$0xff] (%p4715_p6)  ;;  %v3893_v63 = vld [vmem:[%s6383_s26 + $0x298] sm:$0xff] (%p4715_p6) }
 0x491   : > { %v3332_v2 = vadd.f32 %v3331_v25, %v2451_v0  ;;  %v3333_v15 = vpop.f32.mrb[157].mxu1  ;;  %v3767_v0 = vld [vmem:[%s6383_s26 + $0xa0] sm:$0xff] (%p4715_p6)  ;;  %v3769_v25 = vld [vmem:[%s6383_s26 + $0xa8] sm:$0xff] (%p4715_p6)  ;;  %3882 = vst [vmem:[%s6747_s8 + $0x4d0] sm:$0xff] (%p4715_p6), %v3881_v57  ;;  %3884 = vst [vmem:[%s6747_s8 + $0x4e0] sm:$0xff] (%p4715_p6), %v3883_v12 }
 0x492   : > { %3768 = vst [vmem:[%s6747_s8 + $0x140] sm:$0xff] (%p4715_p6), %v3767_v0  ;;  %v3773_v15 = vld [vmem:[%s6383_s26 + $0xb8] sm:$0xff] (%p4715_p6)  ;;  %3770 = vst [vmem:[%s6747_s8 + $0x150] sm:$0xff] (%p4715_p6), %v3769_v25  ;;  %v3895_v0 = vld [vmem:[%s6383_s26 + $0x2a0] sm:$0xff] (%p4715_p6) }
 0x493   : > { %3476 = vst [vmem:[%s6383_s26 + $0x2d8] sm:$0xff] %v3332_v2  ;;  %v3771_v2 = vld [vmem:[%s6383_s26 + $0xb0] sm:$0xff] (%p4715_p6)  ;;  %3774 = vst [vmem:[%s6747_s8 + $0x170] sm:$0xff] (%p4715_p6), %v3773_v15  ;;  %v3897_v25 = vld [vmem:[%s6383_s26 + $0x2a8] sm:$0xff] (%p4715_p6) }
 0x494   : > { %v3336_v5 = vpop.f32.mrb[158].mxu1  ;;  %3772 = vst [vmem:[%s6747_s8 + $0x160] sm:$0xff] (%p4715_p6), %v3771_v2  ;;  %3886 = vst [vmem:[%s6747_s8 + $0x4f0] sm:$0xff] (%p4715_p6), %v3885_v58  ;;  %v3899_v2 = vld [vmem:[%s6383_s26 + $0x2b0] sm:$0xff] (%p4715_p6)  ;;  %v3901_v15 = vld [vmem:[%s6383_s26 + $0x2b8] sm:$0xff] (%p4715_p6) }
 0x495   : > { %v3337_v7 = vadd.f32 %v3336_v5, %v2456_v4  ;;  %v3338_v9 = vpop.f32.mrb[159].mxu1  ;;  %v3775_v4 = vld [vmem:[%s6383_s26 + $0xc0] sm:$0xff] (%p4715_p6)  ;;  %v3777_v5 = vld [vmem:[%s6383_s26 + $0xc8] sm:$0xff] (%p4715_p6)  ;;  %3888 = vst [vmem:[%s6747_s8 + $0x500] sm:$0xff] (%p4715_p6), %v3887_v60  ;;  %3890 = vst [vmem:[%s6747_s8 + $0x510] sm:$0xff] (%p4715_p6), %v3889_v61 }
 0x496   : > { %3776 = vst [vmem:[%s6747_s8 + $0x180] sm:$0xff] (%p4715_p6), %v3775_v4  ;;  %3778 = vst [vmem:[%s6747_s8 + $0x190] sm:$0xff] (%p4715_p6), %v3777_v5  ;;  %v3781_v9 = vld [vmem:[%s6383_s26 + $0xd8] sm:$0xff] (%p4715_p6)  ;;  %v3903_v4 = vld [vmem:[%s6383_s26 + $0x2c0] sm:$0xff] (%p4715_p6) }
 0x497   : > { %3477 = vst [vmem:[%s6383_s26 + $0x2e0] sm:$0xff] %v3337_v7  ;;  %v3779_v7 = vld [vmem:[%s6383_s26 + $0xd0] sm:$0xff] (%p4715_p6)  ;;  %3782 = vst [vmem:[%s6747_s8 + $0x1b0] sm:$0xff] (%p4715_p6), %v3781_v9  ;;  %v3905_v5 = vld [vmem:[%s6383_s26 + $0x2c8] sm:$0xff] (%p4715_p6) }
 0x498   : > { %v3341_v11 = vpop.f32.mrb[160].mxu1  ;;  %3780 = vst [vmem:[%s6747_s8 + $0x1a0] sm:$0xff] (%p4715_p6), %v3779_v7  ;;  %3892 = vst [vmem:[%s6747_s8 + $0x520] sm:$0xff] (%p4715_p6), %v3891_v62  ;;  %v3907_v7 = vld [vmem:[%s6383_s26 + $0x2d0] sm:$0xff] (%p4715_p6) }
 0x499   : > { %v3342_v13 = vadd.f32 %v3341_v11, %v2461_v56  ;;  %v3343_v1 = vpop.f32.mrb[161].mxu1  ;;  %v3783_v56 = vld [vmem:[%s6383_s26 + $0xe0] sm:$0xff] (%p4715_p6)  ;;  %v3785_v11 = vld [vmem:[%s6383_s26 + $0xe8] sm:$0xff] (%p4715_p6)  ;;  %3894 = vst [vmem:[%s6747_s8 + $0x530] sm:$0xff] (%p4715_p6), %v3893_v63  ;;  %3896 = vst [vmem:[%s6747_s8 + $0x540] sm:$0xff] (%p4715_p6), %v3895_v0 }
 0x49a   : > { %3784 = vst [vmem:[%s6747_s8 + $0x1c0] sm:$0xff] (%p4715_p6), %v3783_v56  ;;  %3786 = vst [vmem:[%s6747_s8 + $0x1d0] sm:$0xff] (%p4715_p6), %v3785_v11  ;;  %v3789_v1 = vld [vmem:[%s6383_s26 + $0xf8] sm:$0xff] (%p4715_p6) }
 0x49b   : > { %3478 = vst [vmem:[%s6383_s26 + $0x2e8] sm:$0xff] %v3342_v13  ;;  %v3787_v13 = vld [vmem:[%s6383_s26 + $0xf0] sm:$0xff] (%p4715_p6)  ;;  %3790 = vst [vmem:[%s6747_s8 + $0x1f0] sm:$0xff] (%p4715_p6), %v3789_v1  ;;  %v3909_v9 = vld [vmem:[%s6383_s26 + $0x2d8] sm:$0xff] (%p4715_p6) }
 0x49c   : > { %v3346_v14 = vpop.f32.mrb[162].mxu1  ;;  %3788 = vst [vmem:[%s6747_s8 + $0x1e0] sm:$0xff] (%p4715_p6), %v3787_v13  ;;  %3898 = vst [vmem:[%s6747_s8 + $0x550] sm:$0xff] (%p4715_p6), %v3897_v25 }
 0x49d   : > { %v3347_v16 = vadd.f32 %v3346_v14, %v2466_v59  ;;  %v3348_v19 = vpop.f32.mrb[163].mxu1  ;;  %v3791_v59 = vld [vmem:[%s6383_s26 + $0x100] sm:$0xff] (%p4715_p6)  ;;  %v3793_v14 = vld [vmem:[%s6383_s26 + $0x108] sm:$0xff] (%p4715_p6)  ;;  %3900 = vst [vmem:[%s6747_s8 + $0x560] sm:$0xff] (%p4715_p6), %v3899_v2  ;;  %3902 = vst [vmem:[%s6747_s8 + $0x570] sm:$0xff] (%p4715_p6), %v3901_v15 }
 0x49e   : > { %3792 = vst [vmem:[%s6747_s8 + $0x200] sm:$0xff] (%p4715_p6), %v3791_v59  ;;  %v3797_v19 = vld [vmem:[%s6383_s26 + $0x118] sm:$0xff] (%p4715_p6)  ;;  %3794 = vst [vmem:[%s6747_s8 + $0x210] sm:$0xff] (%p4715_p6), %v3793_v14  ;;  %v3911_v56 = vld [vmem:[%s6383_s26 + $0x2e0] sm:$0xff] (%p4715_p6) }
 0x49f   : > { %3479 = vst [vmem:[%s6383_s26 + $0x2f0] sm:$0xff] %v3347_v16  ;;  %v3795_v16 = vld [vmem:[%s6383_s26 + $0x110] sm:$0xff] (%p4715_p6)  ;;  %3798 = vst [vmem:[%s6747_s8 + $0x230] sm:$0xff] (%p4715_p6), %v3797_v19 }
 0x4a0   : > { %v3351_v22 = vpop.f32.mrb[164].mxu1  ;;  %3796 = vst [vmem:[%s6747_s8 + $0x220] sm:$0xff] (%p4715_p6), %v3795_v16  ;;  %3904 = vst [vmem:[%s6747_s8 + $0x580] sm:$0xff] (%p4715_p6), %v3903_v4 }
 0x4a1   : > { %v3352_v23 = vadd.f32 %v3351_v22, %v2471_v20  ;;  %v3353_v24 = vpop.f32.mrb[165].mxu1  ;;  %v3799_v20 = vld [vmem:[%s6383_s26 + $0x120] sm:$0xff] (%p4715_p6)  ;;  %v3801_v22 = vld [vmem:[%s6383_s26 + $0x128] sm:$0xff] (%p4715_p6)  ;;  %3906 = vst [vmem:[%s6747_s8 + $0x590] sm:$0xff] (%p4715_p6), %v3905_v5  ;;  %3908 = vst [vmem:[%s6747_s8 + $0x5a0] sm:$0xff] (%p4715_p6), %v3907_v7 }
 0x4a2   : > { %3800 = vst [vmem:[%s6747_s8 + $0x240] sm:$0xff] (%p4715_p6), %v3799_v20  ;;  %3802 = vst [vmem:[%s6747_s8 + $0x250] sm:$0xff] (%p4715_p6), %v3801_v22  ;;  %v3805_v24 = vld [vmem:[%s6383_s26 + $0x138] sm:$0xff] (%p4715_p6)  ;;  %v3913_v11 = vld [vmem:[%s6383_s26 + $0x2e8] sm:$0xff] (%p4715_p6) }
 0x4a3   : > { %3480 = vst [vmem:[%s6383_s26 + $0x2f8] sm:$0xff] %v3352_v23  ;;  %v3803_v23 = vld [vmem:[%s6383_s26 + $0x130] sm:$0xff] (%p4715_p6)  ;;  %3806 = vst [vmem:[%s6747_s8 + $0x270] sm:$0xff] (%p4715_p6), %v3805_v24 }
 0x4a4   : > { %v3356_v21 = vpop.f32.mrb[166].mxu1  ;;  %3804 = vst [vmem:[%s6747_s8 + $0x260] sm:$0xff] (%p4715_p6), %v3803_v23  ;;  %3910 = vst [vmem:[%s6747_s8 + $0x5b0] sm:$0xff] (%p4715_p6), %v3909_v9 }
 0x4a5   : > { %v3357_v3 = vadd.f32 %v3356_v21, %v2476_v27  ;;  %v3358_v28 = vpop.f32.mrb[167].mxu1  ;;  %v3807_v27 = vld [vmem:[%s6383_s26 + $0x140] sm:$0xff] (%p4715_p6)  ;;  %v3809_v21 = vld [vmem:[%s6383_s26 + $0x148] sm:$0xff] (%p4715_p6)  ;;  %3912 = vst [vmem:[%s6747_s8 + $0x5c0] sm:$0xff] (%p4715_p6), %v3911_v56  ;;  %3914 = vst [vmem:[%s6747_s8 + $0x5d0] sm:$0xff] (%p4715_p6), %v3913_v11 }
 0x4a6   : > { %3808 = vst [vmem:[%s6747_s8 + $0x280] sm:$0xff] (%p4715_p6), %v3807_v27  ;;  %3810 = vst [vmem:[%s6747_s8 + $0x290] sm:$0xff] (%p4715_p6), %v3809_v21  ;;  %v3813_v28 = vld [vmem:[%s6383_s26 + $0x158] sm:$0xff] (%p4715_p6)  ;;  %v3915_v13 = vld [vmem:[%s6383_s26 + $0x2f0] sm:$0xff] (%p4715_p6) }
 0x4a7   : > { %3481 = vst [vmem:[%s6383_s26 + $0x300] sm:$0xff] %v3357_v3  ;;  %v3811_v3 = vld [vmem:[%s6383_s26 + $0x150] sm:$0xff] (%p4715_p6)  ;;  %3814 = vst [vmem:[%s6747_s8 + $0x2b0] sm:$0xff] (%p4715_p6), %v3813_v28 }
 0x4a8   : > { %v3361_v30 = vpop.f32.mrb[168].mxu1  ;;  %3812 = vst [vmem:[%s6747_s8 + $0x2a0] sm:$0xff] (%p4715_p6), %v3811_v3  ;;  %3916 = vst [vmem:[%s6747_s8 + $0x5e0] sm:$0xff] (%p4715_p6), %v3915_v13 }
 0x4a9   : > { %v3362_v31 = vadd.f32 %v3361_v30, %v2481_v29  ;;  %v3363_v32 = vpop.f32.mrb[169].mxu1  ;;  %v3815_v29 = vld [vmem:[%s6383_s26 + $0x160] sm:$0xff] (%p4715_p6)  ;;  %v3817_v30 = vld [vmem:[%s6383_s26 + $0x168] sm:$0xff] (%p4715_p6) }
 0x4aa   : > { %3816 = vst [vmem:[%s6747_s8 + $0x2c0] sm:$0xff] (%p4715_p6), %v3815_v29  ;;  %v3821_v32 = vld [vmem:[%s6383_s26 + $0x178] sm:$0xff] (%p4715_p6)  ;;  %3818 = vst [vmem:[%s6747_s8 + $0x2d0] sm:$0xff] (%p4715_p6), %v3817_v30 }
 0x4ab   : > { %3482 = vst [vmem:[%s6383_s26 + $0x308] sm:$0xff] %v3362_v31  ;;  %v3819_v31 = vld [vmem:[%s6383_s26 + $0x170] sm:$0xff] (%p4715_p6)  ;;  %3822 = vst [vmem:[%s6747_s8 + $0x2f0] sm:$0xff] (%p4715_p6), %v3821_v32  ;;  %v3917_v1 = vld [vmem:[%s6383_s26 + $0x2f8] sm:$0xff] (%p4715_p6) }
 0x4ac   : > { %v3366_v34 = vpop.f32.mrb[170].mxu1  ;;  %3820 = vst [vmem:[%s6747_s8 + $0x2e0] sm:$0xff] (%p4715_p6), %v3819_v31  ;;  %3918 = vst [vmem:[%s6747_s8 + $0x5f0] sm:$0xff] (%p4715_p6), %v3917_v1 }
 0x4ad   : > { %v3367_v35 = vadd.f32 %v3366_v34, %v2486_v33  ;;  %v3368_v6 = vpop.f32.mrb[171].mxu1  ;;  %v3823_v33 = vld [vmem:[%s6383_s26 + $0x180] sm:$0xff] (%p4715_p6)  ;;  %v3825_v34 = vld [vmem:[%s6383_s26 + $0x188] sm:$0xff] (%p4715_p6) }
 0x4ae   : > { %3824 = vst [vmem:[%s6747_s8 + $0x300] sm:$0xff] (%p4715_p6), %v3823_v33  ;;  %3826 = vst [vmem:[%s6747_s8 + $0x310] sm:$0xff] (%p4715_p6), %v3825_v34  ;;  %v3829_v6 = vld [vmem:[%s6383_s26 + $0x198] sm:$0xff] (%p4715_p6)  ;;  %v3919_v59 = vld [vmem:[%s6383_s26 + $0x300] sm:$0xff] (%p4715_p6) }
 0x4af   : > { %3483 = vst [vmem:[%s6383_s26 + $0x310] sm:$0xff] %v3367_v35  ;;  %v3827_v35 = vld [vmem:[%s6383_s26 + $0x190] sm:$0xff] (%p4715_p6)  ;;  %3830 = vst [vmem:[%s6747_s8 + $0x330] sm:$0xff] (%p4715_p6), %v3829_v6 }
 0x4b0   : > { %v3371_v37 = vpop.f32.mrb[172].mxu1  ;;  %3828 = vst [vmem:[%s6747_s8 + $0x320] sm:$0xff] (%p4715_p6), %v3827_v35  ;;  %3920 = vst [vmem:[%s6747_s8 + $0x600] sm:$0xff] (%p4715_p6), %v3919_v59 }
 0x4b1   : > { %v3372_v38 = vadd.f32 %v3371_v37, %v2491_v36  ;;  %v3373_v39 = vpop.f32.mrb[173].mxu1  ;;  %v3831_v36 = vld [vmem:[%s6383_s26 + $0x1a0] sm:$0xff] (%p4715_p6)  ;;  %v3833_v37 = vld [vmem:[%s6383_s26 + $0x1a8] sm:$0xff] (%p4715_p6) }
 0x4b2   : > { %3832 = vst [vmem:[%s6747_s8 + $0x340] sm:$0xff] (%p4715_p6), %v3831_v36  ;;  %3834 = vst [vmem:[%s6747_s8 + $0x350] sm:$0xff] (%p4715_p6), %v3833_v37  ;;  %v3837_v39 = vld [vmem:[%s6383_s26 + $0x1b8] sm:$0xff] (%p4715_p6)  ;;  %v3921_v14 = vld [vmem:[%s6383_s26 + $0x308] sm:$0xff] (%p4715_p6) }
 0x4b3   : > { %3484 = vst [vmem:[%s6383_s26 + $0x318] sm:$0xff] %v3372_v38  ;;  %v3835_v38 = vld [vmem:[%s6383_s26 + $0x1b0] sm:$0xff] (%p4715_p6)  ;;  %3838 = vst [vmem:[%s6747_s8 + $0x370] sm:$0xff] (%p4715_p6), %v3837_v39 }
 0x4b4   : > { %v3376_v41 = vpop.f32.mrb[174].mxu1  ;;  %3836 = vst [vmem:[%s6747_s8 + $0x360] sm:$0xff] (%p4715_p6), %v3835_v38  ;;  %3922 = vst [vmem:[%s6747_s8 + $0x610] sm:$0xff] (%p4715_p6), %v3921_v14 }
 0x4b5   : > { %v3377_v42 = vadd.f32 %v3376_v41, %v2496_v40  ;;  %v3378_v43 = vpop.f32.mrb[175].mxu1  ;;  %3493 = sbr.rel (!%p4715_p6) target bundleno = 1220 (0x4c4), region = 120  ;;  %v3839_v40 = vld [vmem:[%s6383_s26 + $0x1c0] sm:$0xff] (%p4715_p6)  ;;  %v3841_v41 = vld [vmem:[%s6383_s26 + $0x1c8] sm:$0xff] (%p4715_p6) }
 0x4b6   : > { %3840 = vst [vmem:[%s6747_s8 + $0x380] sm:$0xff] (%p4715_p6), %v3839_v40  ;;  %v3845_v43 = vld [vmem:[%s6383_s26 + $0x1d8] sm:$0xff] (%p4715_p6)  ;;  %3842 = vst [vmem:[%s6747_s8 + $0x390] sm:$0xff] (%p4715_p6), %v3841_v41  ;;  %v3923_v16 = vld [vmem:[%s6383_s26 + $0x310] sm:$0xff] (%p4715_p6) }
 0x4b7   : > { %3485 = vst [vmem:[%s6383_s26 + $0x320] sm:$0xff] %v3377_v42  ;;  %v3843_v42 = vld [vmem:[%s6383_s26 + $0x1d0] sm:$0xff] (%p4715_p6)  ;;  %3846 = vst [vmem:[%s6747_s8 + $0x3b0] sm:$0xff] (%p4715_p6), %v3845_v43 }
 0x4b8   : > { %v3381_v18 = vpop.f32.mrb[176].mxu1  ;;  %3844 = vst [vmem:[%s6747_s8 + $0x3a0] sm:$0xff] (%p4715_p6), %v3843_v42  ;;  %3924 = vst [vmem:[%s6747_s8 + $0x620] sm:$0xff] (%p4715_p6), %v3923_v16 }
 0x4b9   : > { %v3382_v44 = vadd.f32 %v3381_v18, %v2501_v8  ;;  %v3383_v45 = vpop.f32.mrb[177].mxu1  ;;  %v3847_v8 = vld [vmem:[%s6383_s26 + $0x1e0] sm:$0xff] (%p4715_p6)  ;;  %v3849_v18 = vld [vmem:[%s6383_s26 + $0x1e8] sm:$0xff] (%p4715_p6) }
 0x4ba   : > { %3848 = vst [vmem:[%s6747_s8 + $0x3c0] sm:$0xff] (%p4715_p6), %v3847_v8  ;;  %3850 = vst [vmem:[%s6747_s8 + $0x3d0] sm:$0xff] (%p4715_p6), %v3849_v18  ;;  %v3853_v45 = vld [vmem:[%s6383_s26 + $0x1f8] sm:$0xff] (%p4715_p6) }
 0x4bb   : > { %3486 = vst [vmem:[%s6383_s26 + $0x328] sm:$0xff] %v3382_v44  ;;  %v3851_v44 = vld [vmem:[%s6383_s26 + $0x1f0] sm:$0xff] (%p4715_p6)  ;;  %3854 = vst [vmem:[%s6747_s8 + $0x3f0] sm:$0xff] (%p4715_p6), %v3853_v45  ;;  %v3925_v19 = vld [vmem:[%s6383_s26 + $0x318] sm:$0xff] (%p4715_p6) }
 0x4bc   : > { %3852 = vst [vmem:[%s6747_s8 + $0x3e0] sm:$0xff] %v3851_v44  ;;  %3926 = vst [vmem:[%s6747_s8 + $0x630] sm:$0xff] %v3925_v19 }
 0x4be   : > { %v3927_v20 = vld [vmem:[%s6383_s26 + $0x320] sm:$0xff] }
 0x4bf   : > { %3928 = vst [vmem:[%s6747_s8 + $0x640] sm:$0xff] %v3927_v20 }
 0x4c2   : > { %v3929_v22 = vld [vmem:[%s6383_s26 + $0x328] sm:$0xff] }
 0x4c3   : > { %3930 = vst [vmem:[%s6747_s8 + $0x650] sm:$0xff] %v3929_v22 }
 0x4c4 PF: > { %s15_s22 = sadd.s32 1, %s4640_s22   ;;  %s6973_s18 = smov %s4628_s19 }
 0x4c5   : > { %p12_p11 = scmp.ge.s32.totalorder %s15_s22, 4   ;;  %s6974_s19 = smov %s4720_s29 }
 0x4c6   : > { %s6975_s20 = smov %s4636_s21  ;;  %s6976_s21 = smov %s6978_s23 }
 0x4c7   :  { %14 = sbr.rel (!%p12_p11) target bundleno = 3 (0x3), region = 197 }

</bundles_post_ra>
